<compile_context>
chip_gen: v6e
topology: v6e:2x2x1
jax: 0.10.0
libtpu: 0.0.40
codegen_flags: <defaults>
</compile_context>

<pallas_src>
import functools

import jax
import jax.numpy as jnp
import numpy as np
from jax import lax
from jax.experimental import pallas as pl
from jax.experimental.pallas import tpu as pltpu

LN_EPS = 1e-5

# (KH, KW, sh, sw, ph, pw) for each ConvTranspose2d in the module.
_LAYER_CFG = [
    (3, 3, 1, 1, 0, 0),
    (4, 4, 3, 1, 1, 1),
    (5, 4, 4, 1, 1, 1),
    (5, 4, 2, 1, 1, 0),
    (5, 4, 2, 2, 0, 1),
]


def _round_up(x, m):
    return ((x + m - 1) // m) * m


# ----------------------------------------------------------------------------
# Pallas kernel: per-sample transposed (deconv-as-matmul) + LayerNorm / bias +
# activation, with P_pad (output pixels, 128-aligned) on the lane dimension.
# ----------------------------------------------------------------------------
def _make_layer_kernel(do_ln, has_bias, do_relu, do_softplus, vpu_dot, inv_n):
    def kernel(*refs):
        i = 0
        x_ref = refs[i]; i += 1            # (1, K, P_pad), lane-dense P
        w_ref = refs[i]; i += 1            # (Cout, K), or (K, 1) when vpu_dot
        gamma_ref = beta_ref = bias_ref = None
        if do_ln:
            gamma_ref = refs[i]; i += 1    # (Cout, P_pad), zero in padded lanes
            beta_ref = refs[i]; i += 1     # (Cout, P_pad), zero in padded lanes
        if has_bias:
            bias_ref = refs[i]; i += 1     # (Cout, 1)
        out_ref = refs[i]                  # (1, Cout, P_pad)

        x = x_ref[0]                       # (K, P_pad)

        if vpu_dot:
            # Cout == 1: an M=1 MXU matmul uses <1% of the MXU rows; do a VPU
            # broadcast-FMA and a sublane reduction over K instead.
            xf = x.astype(jnp.float32)
            wf = w_ref[...].astype(jnp.float32)            # (K, 1)
            y = jnp.sum(xf * wf, axis=0, keepdims=True)    # (1, P_pad)
        else:
            # Lane-dense MXU output (Cout, P_pad); P_pad is a multiple of 128
            # so the result store is an unmasked vst.
            y = jnp.dot(w_ref[...], x, preferred_element_type=jnp.float32)

        if has_bias:
            y = y + bias_ref[...]          # (Cout, 1) broadcast over P_pad

        if do_ln:
            # nn.LayerNorm([C, H, W]): per-sample stats over the real C*H*W
            # entries.  Padded lanes of y are exactly 0 (zero x_cols columns,
            # no bias on LN layers), so full-tile sums with the TRUE divisor
            # are exact.  The one-pass form (E[y^2]-E[y]^2) keeps the padded
            # lanes harmless (a two-pass (y-mean)^2 would add mean^2 per pad).
            mean = jnp.sum(y) * inv_n
            var = jnp.maximum(jnp.sum(y * y) * inv_n - mean * mean, 0.0)
            y = (y - mean) * lax.rsqrt(var + LN_EPS)
            y = y * gamma_ref[...] + beta_ref[...]         # padded lanes -> 0

        if do_relu:
            # ReLU of the NEXT layer's input, applied in this producer's
            # epilogue on (Cout, P_pad) instead of on the KH*KW-duplicated
            # im2col tile of the consumer.  Keeps padded lanes at 0.
            y = jnp.maximum(y, 0.0)

        if do_softplus:
            # nn.Softplus (beta=1, threshold=20); padded lanes are sliced off
            # in the glue before the NCHW reshape.
            y = jnp.where(y > 20.0, y,
                          jnp.log(1.0 + jnp.exp(jnp.minimum(y, 20.0))))

        out_ref[0] = y.astype(out_ref.dtype)

    return kernel


def _layer_pallas(x_colsT, w_t, gamma=None, beta=None, bias=None, *,
                  p_true, do_relu, do_softplus):
    N, K, P_pad = x_colsT.shape
    do_ln = gamma is not None
    has_bias = bias is not None
    vpu_dot = (w_t.shape == (K, 1))        # Cout == 1 layer
    Cout = 1 if vpu_dot else w_t.shape[0]
    inv_n = 1.0 / float(Cout * p_true)     # true LayerNorm divisor C*H*W

    inputs = [x_colsT, w_t]
    in_specs = [
        pl.BlockSpec((1, K, P_pad), lambda n: (n, 0, 0)),
        # Constant-index blocks: same (0, 0) block every grid step, so the
        # weights / LN affine params stay VMEM-resident across the batch loop.
        pl.BlockSpec(w_t.shape, lambda n: (0, 0)),
    ]
    if do_ln:
        inputs += [gamma, beta]
        in_specs += [pl.BlockSpec((Cout, P_pad), lambda n: (0, 0)),
                     pl.BlockSpec((Cout, P_pad), lambda n: (0, 0))]
    if has_bias:
        inputs.append(bias)
        in_specs.append(pl.BlockSpec((Cout, 1), lambda n: (0, 0)))

    # Advisory cost estimate so XLA schedules the surrounding glue sensibly.
    flops = 2 * N * Cout * K * P_pad + 10 * N * Cout * P_pad
    transcendentals = 2 * N * Cout * P_pad if do_softplus else N
    bytes_accessed = (sum(int(np.prod(a.shape)) * a.dtype.itemsize
                          for a in inputs) + N * Cout * P_pad * 4)

    kernel = _make_layer_kernel(do_ln, has_bias, do_relu, do_softplus,
                                vpu_dot, inv_n)
    return pl.pallas_call(
        kernel,
        out_shape=jax.ShapeDtypeStruct((N, Cout, P_pad), jnp.float32),
        grid=(N,),
        in_specs=in_specs,
        out_specs=pl.BlockSpec((1, Cout, P_pad), lambda n: (n, 0, 0)),
        compiler_params=pltpu.CompilerParams(
            dimension_semantics=("parallel",)),   # batch split across v7x TCs
        cost_estimate=pl.CostEstimate(flops=int(flops),
                                      transcendentals=int(transcendentals),
                                      bytes_accessed=int(bytes_accessed)),
    )(*inputs)


# ----------------------------------------------------------------------------
# JAX glue (NCHW end-to-end): ConvTranspose2d -> zero-upsample + pad + im2col^T
# (pure data movement; see TODO(synk) in the header).
# ----------------------------------------------------------------------------
def _upsample_pad_nchw(x, sh, sw, ph, pw, KH, KW):
    # x: (N, C, H, W).  Insert (stride-1) zeros and pad by (K-1-p) so that a
    # stride-1 VALID correlation with the flipped kernel == ConvTranspose2d.
    N, C, H, W = x.shape
    Hu = (H - 1) * sh + 1
    Wu = (W - 1) * sw + 1
    pt, plft = KH - 1 - ph, KW - 1 - pw
    xp = jnp.zeros((N, C, Hu + 2 * pt, Wu + 2 * plft), x.dtype)
    xp = xp.at[:, :, pt:pt + Hu:sh, plft:plft + Wu:sw].set(x)
    return xp


def _im2col_T_nchw(xp, KH, KW, OH, OW, p_pad):
    # xp: (N, C, Hp, Wp) -> x_cols^T: (N, K, p_pad), K = KH*KW*C ((kh,kw)-major,
    # ci-minor), pixels oh-major, zero-padded up to p_pad (multiple of 128) so
    # the Pallas kernel gets a fully lane-dense tile.
    N, C = xp.shape[0], xp.shape[1]
    taps = [xp[:, :, kh:kh + OH, kw:kw + OW]
            for kh in range(KH) for kw in range(KW)]
    patches = jnp.stack(taps, axis=1)              # (N, KH*KW, C, OH, OW)
    cols = patches.reshape(N, KH * KW * C, OH * OW)
    if p_pad > OH * OW:
        cols = jnp.pad(cols, ((0, 0), (0, 0), (0, p_pad - OH * OW)))
    return cols


# ----------------------------------------------------------------------------
# Parameter packing: done ONCE, outside the forward path.  Weights are flipped,
# reshaped to (Cout, K) (or (K, 1) for the Cout==1 layer) and optionally cast
# to the MXU operand dtype here; gamma/beta are reshaped to (C, P) and
# zero-padded to (C, P_pad).
# ----------------------------------------------------------------------------
def pack_params(params, *, nz, ngf, nc, matmul_dtype=None):
    w_dtype = jnp.float32 if matmul_dtype is None else matmul_dtype
    packed = {}
    for i in range(len(_LAYER_CFG)):
        w_pt = params[f"w{i}"]                                    # (Cin,Cout,KH,KW)
        wf = jnp.flip(w_pt, axis=(2, 3)).transpose(2, 3, 0, 1)    # (KH,KW,Cin,Cout)
        KH, KW, Cin, Cout = wf.shape
        w2 = wf.reshape(KH * KW * Cin, Cout)
        if Cout == 1:
            packed[f"wT{i}"] = w2.astype(w_dtype)                 # (K, 1) VPU path
        else:
            packed[f"wT{i}"] = w2.T.astype(w_dtype)               # (Cout, K)
        if i < 4:
            C, H, W = params[f"gamma{i}"].shape
            P = H * W
            P_pad = _round_up(P, 128)
            g = params[f"gamma{i}"].reshape(C, P)
            b = params[f"beta{i}"].reshape(C, P)
            packed[f"gamma{i}"] = jnp.pad(g, ((0, 0), (0, P_pad - P)))
            packed[f"beta{i}"] = jnp.pad(b, ((0, 0), (0, P_pad - P)))
    packed["b4"] = params["b4"].reshape(nc, 1).astype(jnp.float32)
    return packed


# ----------------------------------------------------------------------------
# Full forward pass (Pallas path).  Output layout is NCHW directly.
# ----------------------------------------------------------------------------
def netg_forward(packed, x_nchw, *, nz, ngf, nc):
    N = x_nchw.shape[0]
    mm_dtype = packed["wT0"].dtype          # f32 or bf16, set at pack time
    x = x_nchw.reshape(N, nz, 1, 1)         # input.view(N, nz, 1, 1)
    for i, (KH, KW, sh, sw, ph, pw) in enumerate(_LAYER_CFG):
        Hin, Win = x.shape[2], x.shape[3]
        OH = (Hin - 1) * sh - 2 * ph + KH
        OW = (Win - 1) * sw - 2 * pw + KW
        P = OH * OW
        P_pad = _round_up(P, 128)
        # Cast activations once in the glue (kernel never casts per step).
        xp = _upsample_pad_nchw(x.astype(mm_dtype), sh, sw, ph, pw, KH, KW)
        x_colsT = _im2col_T_nchw(xp, KH, KW, OH, OW, P_pad)
        if i < 4:
            # conv -> LayerNorm -> ReLU (ReLU of the next layer's input,
            # fused into this layer's epilogue).
            y = _layer_pallas(x_colsT, packed[f"wT{i}"],
                              gamma=packed[f"gamma{i}"],
                              beta=packed[f"beta{i}"],
                              p_true=P, do_relu=True, do_softplus=False)
        else:
            # conv (+bias) -> Softplus
            y = _layer_pallas(x_colsT, packed[f"wT{i}"], bias=packed["b4"],
                              p_true=P, do_relu=False, do_softplus=True)
        x = y[:, :, :P].reshape(N, -1, OH, OW)   # drop padded lanes, NCHW
    return x


# ----------------------------------------------------------------------------
# Pure-JAX reference (independent path via XLA's dilated conv) for checking
# ----------------------------------------------------------------------------
def netg_forward_ref(params, x_nchw, *, nz, ngf, nc, matmul_dtype=None):
    N = x_nchw.shape[0]
    x = x_nchw.reshape(N, nz)[:, None, None, :]    # NHWC
    for i, (KH, KW, sh, sw, ph, pw) in enumerate(_LAYER_CFG):
        if i > 0:
            x = jax.nn.relu(x)
        wf = jnp.flip(params[f"w{i}"], axis=(2, 3)).transpose(2, 3, 0, 1)  # HWIO
        lhs, rhs = x, wf
        if matmul_dtype is not None:
            lhs = lhs.astype(matmul_dtype)
            rhs = rhs.astype(matmul_dtype)
        y = lax.conv_general_dilated(
            lhs, rhs, window_strides=(1, 1),
            padding=[(KH - 1 - ph, KH - 1 - ph), (KW - 1 - pw, KW - 1 - pw)],
            lhs_dilation=(sh, sw),
            dimension_numbers=("NHWC", "HWIO", "NHWC"),
            precision=(lax.Precision.HIGHEST if matmul_dtype is None
                       else lax.Precision.DEFAULT),
            preferred_element_type=jnp.float32)
        if i == 4:
            y = y + params["b4"][None, None, None, :]
        else:
            mean = jnp.mean(y, axis=(1, 2, 3), keepdims=True)
            var = jnp.mean((y - mean) ** 2, axis=(1, 2, 3), keepdims=True)
            y = (y - mean) / jnp.sqrt(var + LN_EPS)
            y = (y * params[f"gamma{i}"].transpose(1, 2, 0)[None]
                 + params[f"beta{i}"].transpose(1, 2, 0)[None])
        x = y
    x = jnp.where(x > 20.0, x, jnp.log(1.0 + jnp.exp(jnp.minimum(x, 20.0))))
    return x.transpose(0, 3, 1, 2)                 # back to NCHW


# ----------------------------------------------------------------------------
# Deterministic parameter init (shapes from _netG.__init__)
# ----------------------------------------------------------------------------
def init_params(key, nz, ngf, nc):
    ks = jax.random.split(key, 16)
    p = {}
    conv_shapes = [
        (nz, ngf * 8, 3, 3),
        (ngf * 8, ngf * 4, 4, 4),
        (ngf * 4, ngf * 2, 5, 4),
        (ngf * 2, ngf, 5, 4),
        (ngf, nc, 5, 4),
    ]
    for i, s in enumerate(conv_shapes):
        fan = s[0] * s[2] * s[3]
        p[f"w{i}"] = (jax.random.normal(ks[i], s, jnp.float32)
                      / jnp.sqrt(jnp.float32(fan)))
    p["b4"] = 0.01 * jax.random.normal(ks[5], (nc,), jnp.float32)
    ln_shapes = [(ngf * 8, 3, 3), (ngf * 4, 8, 4), (ngf * 2, 31, 5), (ngf, 63, 8)]
    for i, s in enumerate(ln_shapes):
        p[f"gamma{i}"] = 1.0 + 0.1 * jax.random.normal(ks[6 + i], s, jnp.float32)
        p[f"beta{i}"] = 0.05 * jax.random.normal(ks[10 + i], s, jnp.float32)
    return p


if __name__ == "__main__":
    nz, ngf, nc, N = 16, 8, 1, 2
    key = jax.random.PRNGKey(0)
    kx, kp = jax.random.split(key)
    x = jax.random.normal(kx, (N, nz, 1, 1), jnp.float32)   # NCHW, as the module
    params = init_params(kp, nz, ngf, nc)

    fwd = jax.jit(functools.partial(netg_forward, nz=nz, ngf=ngf, nc=nc))

    # f32 path (tight check, all generations)
    packed = pack_params(params, nz=nz, ngf=ngf, nc=nc)     # packed once
    out = jax.block_until_ready(fwd(packed, x))
    assert out.shape == (N, nc, 129, 16), out.shape
    ref = netg_forward_ref(params, x, nz=nz, ngf=ngf, nc=nc)
    np.testing.assert_allclose(np.asarray(out), np.asarray(ref),
                               rtol=1e-3, atol=1e-3)

    # bf16 MXU-operand path (all generations take bf16 MXU operands): weights
    # pre-cast at pack time, activations cast once in the glue, f32 accumulation.
    packed_bf16 = pack_params(params, nz=nz, ngf=ngf, nc=nc,
                              matmul_dtype=jnp.bfloat16)
    out_bf16 = jax.block_until_ready(fwd(packed_bf16, x))
    ref_bf16 = netg_forward_ref(params, x, nz=nz, ngf=ngf, nc=nc,
                                matmul_dtype=jnp.bfloat16)
    np.testing.assert_allclose(np.asarray(out_bf16), np.asarray(ref_bf16),
                               rtol=1e-2, atol=1e-2)

    print("KERNEL_OK")
</pallas_src>

<mosaic_0001>
module attributes {stable_mosaic.version = 11 : i64} {
  func.func @kernel(%arg0: i32, %arg1: memref<1x144x128xf32, #tpu.memory_space<vmem>>, %arg2: memref<64x144xf32, #tpu.memory_space<vmem>>, %arg3: memref<64x128xf32, #tpu.memory_space<vmem>>, %arg4: memref<64x128xf32, #tpu.memory_space<vmem>>, %arg5: memref<1x64x128xf32, #tpu.memory_space<vmem>>) attributes {dimension_semantics = [#tpu.dimension_semantics<parallel>], iteration_bounds = array<i64: 2>, scalar_prefetch = 0 : i64, scratch_operands = 0 : i64, tpu.core_type = #tpu.core_type<tc>, window_params = [{transform_indices = @transform_0, window_bounds = array<i64: 1, 144, 128>}, {pipeline_mode = #tpu.pipeline_mode<synchronous>, transform_indices = @transform_1, window_bounds = array<i64: 64, 144>}, {pipeline_mode = #tpu.pipeline_mode<synchronous>, transform_indices = @transform_2, window_bounds = array<i64: 64, 128>}, {pipeline_mode = #tpu.pipeline_mode<synchronous>, transform_indices = @transform_3, window_bounds = array<i64: 64, 128>}, {transform_indices = @transform_4, window_bounds = array<i64: 1, 64, 128>}]} {
    %c0 = arith.constant 0 : index
    %c0_0 = arith.constant 0 : index
    %c0_1 = arith.constant 0 : index
    %0 = vector.load %arg1[%c0, %c0_0, %c0_1] : memref<1x144x128xf32, #tpu.memory_space<vmem>>, vector<1x144x128xf32>
    %1 = vector.shape_cast %0 : vector<1x144x128xf32> to vector<144x128xf32>
    %c0_2 = arith.constant 0 : index
    %c0_3 = arith.constant 0 : index
    %2 = vector.load %arg2[%c0_2, %c0_3] : memref<64x144xf32, #tpu.memory_space<vmem>>, vector<64x144xf32>
    %cst = arith.constant dense<0.000000e+00> : vector<64x128xf32>
    %3 = tpu.matmul %2, %1, %cst {dimension_numbers = #tpu.dot_dimension_numbers<[1], [0], [0], [1], [0, 0, 1, 1], [], []>} : vector<64x144xf32>, vector<144x128xf32>, vector<64x128xf32> -> vector<64x128xf32>
    %4 = vector.shape_cast %3 : vector<64x128xf32> to vector<1x64x128xf32>
    %cst_4 = arith.constant dense<0.000000e+00> : vector<1xf32>
    %5 = vector.multi_reduction <add>, %4, %cst_4 [1, 2] : vector<1x64x128xf32> to vector<1xf32>
    %6 = vector.shape_cast %5 : vector<1xf32> to vector<1x1x1xf32>
    %7 = vector.extract %6[0, 0, 0] : f32 from vector<1x1x1xf32>
    %cst_5 = arith.constant 0.00173611112 : f32
    %8 = arith.mulf %7, %cst_5 : f32
    %9 = arith.mulf %3, %3 : vector<64x128xf32>
    %10 = vector.shape_cast %9 : vector<64x128xf32> to vector<1x64x128xf32>
    %cst_6 = arith.constant dense<0.000000e+00> : vector<1xf32>
    %11 = vector.multi_reduction <add>, %10, %cst_6 [1, 2] : vector<1x64x128xf32> to vector<1xf32>
    %12 = vector.shape_cast %11 : vector<1xf32> to vector<1x1x1xf32>
    %13 = vector.extract %12[0, 0, 0] : f32 from vector<1x1x1xf32>
    %cst_7 = arith.constant 0.00173611112 : f32
    %14 = arith.mulf %13, %cst_7 : f32
    %15 = arith.mulf %8, %8 : f32
    %16 = arith.subf %14, %15 : f32
    %cst_8 = arith.constant 0.000000e+00 : f32
    %17 = arith.maximumf %16, %cst_8 : f32
    %18 = vector.broadcast %8 : f32 to vector<64x128xf32>
    %19 = arith.subf %3, %18 : vector<64x128xf32>
    %cst_9 = arith.constant 9.99999974E-6 : f32
    %20 = arith.addf %17, %cst_9 : f32
    %21 = math.rsqrt %20 : f32
    %22 = vector.broadcast %21 : f32 to vector<64x128xf32>
    %23 = arith.mulf %19, %22 : vector<64x128xf32>
    %c0_10 = arith.constant 0 : index
    %c0_11 = arith.constant 0 : index
    %24 = vector.load %arg3[%c0_10, %c0_11] : memref<64x128xf32, #tpu.memory_space<vmem>>, vector<64x128xf32>
    %25 = arith.mulf %23, %24 : vector<64x128xf32>
    %c0_12 = arith.constant 0 : index
    %c0_13 = arith.constant 0 : index
    %26 = vector.load %arg4[%c0_12, %c0_13] : memref<64x128xf32, #tpu.memory_space<vmem>>, vector<64x128xf32>
    %27 = arith.addf %25, %26 : vector<64x128xf32>
    %cst_14 = arith.constant 0.000000e+00 : f32
    %28 = vector.broadcast %cst_14 : f32 to vector<64x128xf32>
    %29 = arith.maximumf %27, %28 : vector<64x128xf32>
    %c0_15 = arith.constant 0 : index
    %c0_16 = arith.constant 0 : index
    %c0_17 = arith.constant 0 : index
    %30 = vector.load %arg5[%c0_15, %c0_16, %c0_17] : memref<1x64x128xf32, #tpu.memory_space<vmem>>, vector<1x64x128xf32>
    %31 = vector.shape_cast %30 : vector<1x64x128xf32> to vector<64x128xf32>
    %32 = vector.shape_cast %29 : vector<64x128xf32> to vector<1x64x128xf32>
    tpu.vector_store %arg5[%c0_15, %c0_16, %c0_17], %32 {strides = array<i32>} : memref<1x64x128xf32, #tpu.memory_space<vmem>>, vector<1x64x128xf32>,
    return
  }
  func.func @transform_0(%arg0: i32) -> (i32, i32, i32) {
    %c0_i32 = arith.constant 0 : i32
    %c0_i32_0 = arith.constant 0 : i32
    %c0_i32_1 = arith.constant 0 : i32
    return %arg0, %c0_i32, %c0_i32_0 : i32, i32, i32
  }
  func.func @transform_1(%arg0: i32) -> (i32, i32) {
    %c0_i32 = arith.constant 0 : i32
    %c0_i32_0 = arith.constant 0 : i32
    %c0_i32_1 = arith.constant 0 : i32
    return %c0_i32, %c0_i32_0 : i32, i32
  }
  func.func @transform_2(%arg0: i32) -> (i32, i32) {
    %c0_i32 = arith.constant 0 : i32
    %c0_i32_0 = arith.constant 0 : i32
    %c0_i32_1 = arith.constant 0 : i32
    return %c0_i32, %c0_i32_0 : i32, i32
  }
  func.func @transform_3(%arg0: i32) -> (i32, i32) {
    %c0_i32 = arith.constant 0 : i32
    %c0_i32_0 = arith.constant 0 : i32
    %c0_i32_1 = arith.constant 0 : i32
    return %c0_i32, %c0_i32_0 : i32, i32
  }
  func.func @transform_4(%arg0: i32) -> (i32, i32, i32) {
    %c0_i32 = arith.constant 0 : i32
    %c0_i32_0 = arith.constant 0 : i32
    %c0_i32_1 = arith.constant 0 : i32
    return %arg0, %c0_i32, %c0_i32_0 : i32, i32, i32
  }
}

module attributes {stable_mosaic.version = 11 : i64} {
  func.func @kernel(%arg0: i32, %arg1: memref<1x1024x128xf32, #tpu.memory_space<vmem>>, %arg2: memref<32x1024xf32, #tpu.memory_space<vmem>>, %arg3: memref<32x128xf32, #tpu.memory_space<vmem>>, %arg4: memref<32x128xf32, #tpu.memory_space<vmem>>, %arg5: memref<1x32x128xf32, #tpu.memory_space<vmem>>) attributes {dimension_semantics = [#tpu.dimension_semantics<parallel>], iteration_bounds = array<i64: 2>, scalar_prefetch = 0 : i64, scratch_operands = 0 : i64, tpu.core_type = #tpu.core_type<tc>, window_params = [{transform_indices = @transform_0, window_bounds = array<i64: 1, 1024, 128>}, {pipeline_mode = #tpu.pipeline_mode<synchronous>, transform_indices = @transform_1, window_bounds = array<i64: 32, 1024>}, {pipeline_mode = #tpu.pipeline_mode<synchronous>, transform_indices = @transform_2, window_bounds = array<i64: 32, 128>}, {pipeline_mode = #tpu.pipeline_mode<synchronous>, transform_indices = @transform_3, window_bounds = array<i64: 32, 128>}, {transform_indices = @transform_4, window_bounds = array<i64: 1, 32, 128>}]} {
    %c0 = arith.constant 0 : index
    %c0_0 = arith.constant 0 : index
    %c0_1 = arith.constant 0 : index
    %0 = vector.load %arg1[%c0, %c0_0, %c0_1] : memref<1x1024x128xf32, #tpu.memory_space<vmem>>, vector<1x1024x128xf32>
    %1 = vector.shape_cast %0 : vector<1x1024x128xf32> to vector<1024x128xf32>
    %c0_2 = arith.constant 0 : index
    %c0_3 = arith.constant 0 : index
    %2 = vector.load %arg2[%c0_2, %c0_3] : memref<32x1024xf32, #tpu.memory_space<vmem>>, vector<32x1024xf32>
    %cst = arith.constant dense<0.000000e+00> : vector<32x128xf32>
    %3 = tpu.matmul %2, %1, %cst {dimension_numbers = #tpu.dot_dimension_numbers<[1], [0], [0], [1], [0, 0, 1, 1], [], []>} : vector<32x1024xf32>, vector<1024x128xf32>, vector<32x128xf32> -> vector<32x128xf32>
    %4 = vector.shape_cast %3 : vector<32x128xf32> to vector<1x32x128xf32>
    %cst_4 = arith.constant dense<0.000000e+00> : vector<1xf32>
    %5 = vector.multi_reduction <add>, %4, %cst_4 [1, 2] : vector<1x32x128xf32> to vector<1xf32>
    %6 = vector.shape_cast %5 : vector<1xf32> to vector<1x1x1xf32>
    %7 = vector.extract %6[0, 0, 0] : f32 from vector<1x1x1xf32>
    %cst_5 = arith.constant 9.765625E-4 : f32
    %8 = arith.mulf %7, %cst_5 : f32
    %9 = arith.mulf %3, %3 : vector<32x128xf32>
    %10 = vector.shape_cast %9 : vector<32x128xf32> to vector<1x32x128xf32>
    %cst_6 = arith.constant dense<0.000000e+00> : vector<1xf32>
    %11 = vector.multi_reduction <add>, %10, %cst_6 [1, 2] : vector<1x32x128xf32> to vector<1xf32>
    %12 = vector.shape_cast %11 : vector<1xf32> to vector<1x1x1xf32>
    %13 = vector.extract %12[0, 0, 0] : f32 from vector<1x1x1xf32>
    %cst_7 = arith.constant 9.765625E-4 : f32
    %14 = arith.mulf %13, %cst_7 : f32
    %15 = arith.mulf %8, %8 : f32
    %16 = arith.subf %14, %15 : f32
    %cst_8 = arith.constant 0.000000e+00 : f32
    %17 = arith.maximumf %16, %cst_8 : f32
    %18 = vector.broadcast %8 : f32 to vector<32x128xf32>
    %19 = arith.subf %3, %18 : vector<32x128xf32>
    %cst_9 = arith.constant 9.99999974E-6 : f32
    %20 = arith.addf %17, %cst_9 : f32
    %21 = math.rsqrt %20 : f32
    %22 = vector.broadcast %21 : f32 to vector<32x128xf32>
    %23 = arith.mulf %19, %22 : vector<32x128xf32>
    %c0_10 = arith.constant 0 : index
    %c0_11 = arith.constant 0 : index
    %24 = vector.load %arg3[%c0_10, %c0_11] : memref<32x128xf32, #tpu.memory_space<vmem>>, vector<32x128xf32>
    %25 = arith.mulf %23, %24 : vector<32x128xf32>
    %c0_12 = arith.constant 0 : index
    %c0_13 = arith.constant 0 : index
    %26 = vector.load %arg4[%c0_12, %c0_13] : memref<32x128xf32, #tpu.memory_space<vmem>>, vector<32x128xf32>
    %27 = arith.addf %25, %26 : vector<32x128xf32>
    %cst_14 = arith.constant 0.000000e+00 : f32
    %28 = vector.broadcast %cst_14 : f32 to vector<32x128xf32>
    %29 = arith.maximumf %27, %28 : vector<32x128xf32>
    %c0_15 = arith.constant 0 : index
    %c0_16 = arith.constant 0 : index
    %c0_17 = arith.constant 0 : index
    %30 = vector.load %arg5[%c0_15, %c0_16, %c0_17] : memref<1x32x128xf32, #tpu.memory_space<vmem>>, vector<1x32x128xf32>
    %31 = vector.shape_cast %30 : vector<1x32x128xf32> to vector<32x128xf32>
    %32 = vector.shape_cast %29 : vector<32x128xf32> to vector<1x32x128xf32>
    tpu.vector_store %arg5[%c0_15, %c0_16, %c0_17], %32 {strides = array<i32>} : memref<1x32x128xf32, #tpu.memory_space<vmem>>, vector<1x32x128xf32>,
    return
  }
  func.func @transform_0(%arg0: i32) -> (i32, i32, i32) {
    %c0_i32 = arith.constant 0 : i32
    %c0_i32_0 = arith.constant 0 : i32
    %c0_i32_1 = arith.constant 0 : i32
    return %arg0, %c0_i32, %c0_i32_0 : i32, i32, i32
  }
  func.func @transform_1(%arg0: i32) -> (i32, i32) {
    %c0_i32 = arith.constant 0 : i32
    %c0_i32_0 = arith.constant 0 : i32
    %c0_i32_1 = arith.constant 0 : i32
    return %c0_i32, %c0_i32_0 : i32, i32
  }
  func.func @transform_2(%arg0: i32) -> (i32, i32) {
    %c0_i32 = arith.constant 0 : i32
    %c0_i32_0 = arith.constant 0 : i32
    %c0_i32_1 = arith.constant 0 : i32
    return %c0_i32, %c0_i32_0 : i32, i32
  }
  func.func @transform_3(%arg0: i32) -> (i32, i32) {
    %c0_i32 = arith.constant 0 : i32
    %c0_i32_0 = arith.constant 0 : i32
    %c0_i32_1 = arith.constant 0 : i32
    return %c0_i32, %c0_i32_0 : i32, i32
  }
  func.func @transform_4(%arg0: i32) -> (i32, i32, i32) {
    %c0_i32 = arith.constant 0 : i32
    %c0_i32_0 = arith.constant 0 : i32
    %c0_i32_1 = arith.constant 0 : i32
    return %arg0, %c0_i32, %c0_i32_0 : i32, i32, i32
  }
}

module attributes {stable_mosaic.version = 11 : i64} {
  func.func @kernel(%arg0: i32, %arg1: memref<1x640x256xf32, #tpu.memory_space<vmem>>, %arg2: memref<16x640xf32, #tpu.memory_space<vmem>>, %arg3: memref<16x256xf32, #tpu.memory_space<vmem>>, %arg4: memref<16x256xf32, #tpu.memory_space<vmem>>, %arg5: memref<1x16x256xf32, #tpu.memory_space<vmem>>) attributes {dimension_semantics = [#tpu.dimension_semantics<parallel>], iteration_bounds = array<i64: 2>, scalar_prefetch = 0 : i64, scratch_operands = 0 : i64, tpu.core_type = #tpu.core_type<tc>, window_params = [{transform_indices = @transform_0, window_bounds = array<i64: 1, 640, 256>}, {pipeline_mode = #tpu.pipeline_mode<synchronous>, transform_indices = @transform_1, window_bounds = array<i64: 16, 640>}, {pipeline_mode = #tpu.pipeline_mode<synchronous>, transform_indices = @transform_2, window_bounds = array<i64: 16, 256>}, {pipeline_mode = #tpu.pipeline_mode<synchronous>, transform_indices = @transform_3, window_bounds = array<i64: 16, 256>}, {transform_indices = @transform_4, window_bounds = array<i64: 1, 16, 256>}]} {
    %c0 = arith.constant 0 : index
    %c0_0 = arith.constant 0 : index
    %c0_1 = arith.constant 0 : index
    %0 = vector.load %arg1[%c0, %c0_0, %c0_1] : memref<1x640x256xf32, #tpu.memory_space<vmem>>, vector<1x640x256xf32>
    %1 = vector.shape_cast %0 : vector<1x640x256xf32> to vector<640x256xf32>
    %c0_2 = arith.constant 0 : index
    %c0_3 = arith.constant 0 : index
    %2 = vector.load %arg2[%c0_2, %c0_3] : memref<16x640xf32, #tpu.memory_space<vmem>>, vector<16x640xf32>
    %cst = arith.constant dense<0.000000e+00> : vector<16x256xf32>
    %3 = tpu.matmul %2, %1, %cst {dimension_numbers = #tpu.dot_dimension_numbers<[1], [0], [0], [1], [0, 0, 1, 1], [], []>} : vector<16x640xf32>, vector<640x256xf32>, vector<16x256xf32> -> vector<16x256xf32>
    %4 = vector.shape_cast %3 : vector<16x256xf32> to vector<1x16x256xf32>
    %cst_4 = arith.constant dense<0.000000e+00> : vector<1xf32>
    %5 = vector.multi_reduction <add>, %4, %cst_4 [1, 2] : vector<1x16x256xf32> to vector<1xf32>
    %6 = vector.shape_cast %5 : vector<1xf32> to vector<1x1x1xf32>
    %7 = vector.extract %6[0, 0, 0] : f32 from vector<1x1x1xf32>
    %cst_5 = arith.constant 4.032258E-4 : f32
    %8 = arith.mulf %7, %cst_5 : f32
    %9 = arith.mulf %3, %3 : vector<16x256xf32>
    %10 = vector.shape_cast %9 : vector<16x256xf32> to vector<1x16x256xf32>
    %cst_6 = arith.constant dense<0.000000e+00> : vector<1xf32>
    %11 = vector.multi_reduction <add>, %10, %cst_6 [1, 2] : vector<1x16x256xf32> to vector<1xf32>
    %12 = vector.shape_cast %11 : vector<1xf32> to vector<1x1x1xf32>
    %13 = vector.extract %12[0, 0, 0] : f32 from vector<1x1x1xf32>
    %cst_7 = arith.constant 4.032258E-4 : f32
    %14 = arith.mulf %13, %cst_7 : f32
    %15 = arith.mulf %8, %8 : f32
    %16 = arith.subf %14, %15 : f32
    %cst_8 = arith.constant 0.000000e+00 : f32
    %17 = arith.maximumf %16, %cst_8 : f32
    %18 = vector.broadcast %8 : f32 to vector<16x256xf32>
    %19 = arith.subf %3, %18 : vector<16x256xf32>
    %cst_9 = arith.constant 9.99999974E-6 : f32
    %20 = arith.addf %17, %cst_9 : f32
    %21 = math.rsqrt %20 : f32
    %22 = vector.broadcast %21 : f32 to vector<16x256xf32>
    %23 = arith.mulf %19, %22 : vector<16x256xf32>
    %c0_10 = arith.constant 0 : index
    %c0_11 = arith.constant 0 : index
    %24 = vector.load %arg3[%c0_10, %c0_11] : memref<16x256xf32, #tpu.memory_space<vmem>>, vector<16x256xf32>
    %25 = arith.mulf %23, %24 : vector<16x256xf32>
    %c0_12 = arith.constant 0 : index
    %c0_13 = arith.constant 0 : index
    %26 = vector.load %arg4[%c0_12, %c0_13] : memref<16x256xf32, #tpu.memory_space<vmem>>, vector<16x256xf32>
    %27 = arith.addf %25, %26 : vector<16x256xf32>
    %cst_14 = arith.constant 0.000000e+00 : f32
    %28 = vector.broadcast %cst_14 : f32 to vector<16x256xf32>
    %29 = arith.maximumf %27, %28 : vector<16x256xf32>
    %c0_15 = arith.constant 0 : index
    %c0_16 = arith.constant 0 : index
    %c0_17 = arith.constant 0 : index
    %30 = vector.load %arg5[%c0_15, %c0_16, %c0_17] : memref<1x16x256xf32, #tpu.memory_space<vmem>>, vector<1x16x256xf32>
    %31 = vector.shape_cast %30 : vector<1x16x256xf32> to vector<16x256xf32>
    %32 = vector.shape_cast %29 : vector<16x256xf32> to vector<1x16x256xf32>
    tpu.vector_store %arg5[%c0_15, %c0_16, %c0_17], %32 {strides = array<i32>} : memref<1x16x256xf32, #tpu.memory_space<vmem>>, vector<1x16x256xf32>,
    return
  }
  func.func @transform_0(%arg0: i32) -> (i32, i32, i32) {
    %c0_i32 = arith.constant 0 : i32
    %c0_i32_0 = arith.constant 0 : i32
    %c0_i32_1 = arith.constant 0 : i32
    return %arg0, %c0_i32, %c0_i32_0 : i32, i32, i32
  }
  func.func @transform_1(%arg0: i32) -> (i32, i32) {
    %c0_i32 = arith.constant 0 : i32
    %c0_i32_0 = arith.constant 0 : i32
    %c0_i32_1 = arith.constant 0 : i32
    return %c0_i32, %c0_i32_0 : i32, i32
  }
  func.func @transform_2(%arg0: i32) -> (i32, i32) {
    %c0_i32 = arith.constant 0 : i32
    %c0_i32_0 = arith.constant 0 : i32
    %c0_i32_1 = arith.constant 0 : i32
    return %c0_i32, %c0_i32_0 : i32, i32
  }
  func.func @transform_3(%arg0: i32) -> (i32, i32) {
    %c0_i32 = arith.constant 0 : i32
    %c0_i32_0 = arith.constant 0 : i32
    %c0_i32_1 = arith.constant 0 : i32
    return %c0_i32, %c0_i32_0 : i32, i32
  }
  func.func @transform_4(%arg0: i32) -> (i32, i32, i32) {
    %c0_i32 = arith.constant 0 : i32
    %c0_i32_0 = arith.constant 0 : i32
    %c0_i32_1 = arith.constant 0 : i32
    return %arg0, %c0_i32, %c0_i32_0 : i32, i32, i32
  }
}

module attributes {stable_mosaic.version = 11 : i64} {
  func.func @kernel(%arg0: i32, %arg1: memref<1x320x512xf32, #tpu.memory_space<vmem>>, %arg2: memref<8x320xf32, #tpu.memory_space<vmem>>, %arg3: memref<8x512xf32, #tpu.memory_space<vmem>>, %arg4: memref<8x512xf32, #tpu.memory_space<vmem>>, %arg5: memref<1x8x512xf32, #tpu.memory_space<vmem>>) attributes {dimension_semantics = [#tpu.dimension_semantics<parallel>], iteration_bounds = array<i64: 2>, scalar_prefetch = 0 : i64, scratch_operands = 0 : i64, tpu.core_type = #tpu.core_type<tc>, window_params = [{transform_indices = @transform_0, window_bounds = array<i64: 1, 320, 512>}, {pipeline_mode = #tpu.pipeline_mode<synchronous>, transform_indices = @transform_1, window_bounds = array<i64: 8, 320>}, {pipeline_mode = #tpu.pipeline_mode<synchronous>, transform_indices = @transform_2, window_bounds = array<i64: 8, 512>}, {pipeline_mode = #tpu.pipeline_mode<synchronous>, transform_indices = @transform_3, window_bounds = array<i64: 8, 512>}, {transform_indices = @transform_4, window_bounds = array<i64: 1, 8, 512>}]} {
    %c0 = arith.constant 0 : index
    %c0_0 = arith.constant 0 : index
    %c0_1 = arith.constant 0 : index
    %0 = vector.load %arg1[%c0, %c0_0, %c0_1] : memref<1x320x512xf32, #tpu.memory_space<vmem>>, vector<1x320x512xf32>
    %1 = vector.shape_cast %0 : vector<1x320x512xf32> to vector<320x512xf32>
    %c0_2 = arith.constant 0 : index
    %c0_3 = arith.constant 0 : index
    %2 = vector.load %arg2[%c0_2, %c0_3] : memref<8x320xf32, #tpu.memory_space<vmem>>, vector<8x320xf32>
    %cst = arith.constant dense<0.000000e+00> : vector<8x512xf32>
    %3 = tpu.matmul %2, %1, %cst {dimension_numbers = #tpu.dot_dimension_numbers<[1], [0], [0], [1], [0, 0, 1, 1], [], []>} : vector<8x320xf32>, vector<320x512xf32>, vector<8x512xf32> -> vector<8x512xf32>
    %4 = vector.shape_cast %3 : vector<8x512xf32> to vector<1x8x512xf32>
    %cst_4 = arith.constant dense<0.000000e+00> : vector<1xf32>
    %5 = vector.multi_reduction <add>, %4, %cst_4 [1, 2] : vector<1x8x512xf32> to vector<1xf32>
    %6 = vector.shape_cast %5 : vector<1xf32> to vector<1x1x1xf32>
    %7 = vector.extract %6[0, 0, 0] : f32 from vector<1x1x1xf32>
    %cst_5 = arith.constant 2.48015887E-4 : f32
    %8 = arith.mulf %7, %cst_5 : f32
    %9 = arith.mulf %3, %3 : vector<8x512xf32>
    %10 = vector.shape_cast %9 : vector<8x512xf32> to vector<1x8x512xf32>
    %cst_6 = arith.constant dense<0.000000e+00> : vector<1xf32>
    %11 = vector.multi_reduction <add>, %10, %cst_6 [1, 2] : vector<1x8x512xf32> to vector<1xf32>
    %12 = vector.shape_cast %11 : vector<1xf32> to vector<1x1x1xf32>
    %13 = vector.extract %12[0, 0, 0] : f32 from vector<1x1x1xf32>
    %cst_7 = arith.constant 2.48015887E-4 : f32
    %14 = arith.mulf %13, %cst_7 : f32
    %15 = arith.mulf %8, %8 : f32
    %16 = arith.subf %14, %15 : f32
    %cst_8 = arith.constant 0.000000e+00 : f32
    %17 = arith.maximumf %16, %cst_8 : f32
    %18 = vector.broadcast %8 : f32 to vector<8x512xf32>
    %19 = arith.subf %3, %18 : vector<8x512xf32>
    %cst_9 = arith.constant 9.99999974E-6 : f32
    %20 = arith.addf %17, %cst_9 : f32
    %21 = math.rsqrt %20 : f32
    %22 = vector.broadcast %21 : f32 to vector<8x512xf32>
    %23 = arith.mulf %19, %22 : vector<8x512xf32>
    %c0_10 = arith.constant 0 : index
    %c0_11 = arith.constant 0 : index
    %24 = vector.load %arg3[%c0_10, %c0_11] : memref<8x512xf32, #tpu.memory_space<vmem>>, vector<8x512xf32>
    %25 = arith.mulf %23, %24 : vector<8x512xf32>
    %c0_12 = arith.constant 0 : index
    %c0_13 = arith.constant 0 : index
    %26 = vector.load %arg4[%c0_12, %c0_13] : memref<8x512xf32, #tpu.memory_space<vmem>>, vector<8x512xf32>
    %27 = arith.addf %25, %26 : vector<8x512xf32>
    %cst_14 = arith.constant 0.000000e+00 : f32
    %28 = vector.broadcast %cst_14 : f32 to vector<8x512xf32>
    %29 = arith.maximumf %27, %28 : vector<8x512xf32>
    %c0_15 = arith.constant 0 : index
    %c0_16 = arith.constant 0 : index
    %c0_17 = arith.constant 0 : index
    %30 = vector.load %arg5[%c0_15, %c0_16, %c0_17] : memref<1x8x512xf32, #tpu.memory_space<vmem>>, vector<1x8x512xf32>
    %31 = vector.shape_cast %30 : vector<1x8x512xf32> to vector<8x512xf32>
    %32 = vector.shape_cast %29 : vector<8x512xf32> to vector<1x8x512xf32>
    tpu.vector_store %arg5[%c0_15, %c0_16, %c0_17], %32 {strides = array<i32>} : memref<1x8x512xf32, #tpu.memory_space<vmem>>, vector<1x8x512xf32>,
    return
  }
  func.func @transform_0(%arg0: i32) -> (i32, i32, i32) {
    %c0_i32 = arith.constant 0 : i32
    %c0_i32_0 = arith.constant 0 : i32
    %c0_i32_1 = arith.constant 0 : i32
    return %arg0, %c0_i32, %c0_i32_0 : i32, i32, i32
  }
  func.func @transform_1(%arg0: i32) -> (i32, i32) {
    %c0_i32 = arith.constant 0 : i32
    %c0_i32_0 = arith.constant 0 : i32
    %c0_i32_1 = arith.constant 0 : i32
    return %c0_i32, %c0_i32_0 : i32, i32
  }
  func.func @transform_2(%arg0: i32) -> (i32, i32) {
    %c0_i32 = arith.constant 0 : i32
    %c0_i32_0 = arith.constant 0 : i32
    %c0_i32_1 = arith.constant 0 : i32
    return %c0_i32, %c0_i32_0 : i32, i32
  }
  func.func @transform_3(%arg0: i32) -> (i32, i32) {
    %c0_i32 = arith.constant 0 : i32
    %c0_i32_0 = arith.constant 0 : i32
    %c0_i32_1 = arith.constant 0 : i32
    return %c0_i32, %c0_i32_0 : i32, i32
  }
  func.func @transform_4(%arg0: i32) -> (i32, i32, i32) {
    %c0_i32 = arith.constant 0 : i32
    %c0_i32_0 = arith.constant 0 : i32
    %c0_i32_1 = arith.constant 0 : i32
    return %arg0, %c0_i32, %c0_i32_0 : i32, i32, i32
  }
}

module attributes {stable_mosaic.version = 11 : i64} {
  func.func @kernel(%arg0: i32, %arg1: memref<1x160x2176xf32, #tpu.memory_space<vmem>>, %arg2: memref<160x1xf32, #tpu.memory_space<vmem>>, %arg3: memref<1x1xf32, #tpu.memory_space<vmem>>, %arg4: memref<1x1x2176xf32, #tpu.memory_space<vmem>>) attributes {dimension_semantics = [#tpu.dimension_semantics<parallel>], iteration_bounds = array<i64: 2>, scalar_prefetch = 0 : i64, scratch_operands = 0 : i64, tpu.core_type = #tpu.core_type<tc>, window_params = [{transform_indices = @transform_0, window_bounds = array<i64: 1, 160, 2176>}, {pipeline_mode = #tpu.pipeline_mode<synchronous>, transform_indices = @transform_1, window_bounds = array<i64: 160, 1>}, {pipeline_mode = #tpu.pipeline_mode<synchronous>, transform_indices = @transform_2, window_bounds = array<i64: 1, 1>}, {transform_indices = @transform_3, window_bounds = array<i64: 1, 1, 2176>}]} {
    %c0 = arith.constant 0 : index
    %c0_0 = arith.constant 0 : index
    %c0_1 = arith.constant 0 : index
    %0 = vector.load %arg1[%c0, %c0_0, %c0_1] : memref<1x160x2176xf32, #tpu.memory_space<vmem>>, vector<1x160x2176xf32>
    %1 = vector.shape_cast %0 : vector<1x160x2176xf32> to vector<160x2176xf32>
    %c0_2 = arith.constant 0 : index
    %c0_3 = arith.constant 0 : index
    %2 = vector.load %arg2[%c0_2, %c0_3] : memref<160x1xf32, #tpu.memory_space<vmem>>, vector<160x1xf32>
    %3 = vector.broadcast %2 : vector<160x1xf32> to vector<160x2176xf32>
    %4 = arith.mulf %1, %3 : vector<160x2176xf32>
    %cst = arith.constant dense<0.000000e+00> : vector<2176xf32>
    %5 = vector.multi_reduction <add>, %4, %cst [0] : vector<160x2176xf32> to vector<2176xf32>
    %6 = vector.shape_cast %5 : vector<2176xf32> to vector<1x2176xf32>
    %c0_4 = arith.constant 0 : index
    %c0_5 = arith.constant 0 : index
    %7 = vector.load %arg3[%c0_4, %c0_5] : memref<1x1xf32, #tpu.memory_space<vmem>>, vector<1x1xf32>
    %8 = vector.broadcast %7 : vector<1x1xf32> to vector<1x2176xf32>
    %9 = arith.addf %6, %8 : vector<1x2176xf32>
    %cst_6 = arith.constant 2.000000e+01 : f32
    %10 = vector.broadcast %cst_6 : f32 to vector<1x2176xf32>
    %11 = arith.cmpf ogt, %9, %10 : vector<1x2176xf32>
    %cst_7 = arith.constant 2.000000e+01 : f32
    %12 = vector.broadcast %cst_7 : f32 to vector<1x2176xf32>
    %13 = arith.minimumf %9, %12 : vector<1x2176xf32>
    %14 = math.exp %13 : vector<1x2176xf32>
    %cst_8 = arith.constant 1.000000e+00 : f32
    %15 = vector.broadcast %cst_8 : f32 to vector<1x2176xf32>
    %16 = arith.addf %15, %14 : vector<1x2176xf32>
    %17 = math.log %16 : vector<1x2176xf32>
    %18 = arith.select %11, %9, %17 : vector<1x2176xi1>, vector<1x2176xf32>
    %c0_9 = arith.constant 0 : index
    %c0_10 = arith.constant 0 : index
    %c0_11 = arith.constant 0 : index
    %19 = vector.load %arg4[%c0_9, %c0_10, %c0_11] : memref<1x1x2176xf32, #tpu.memory_space<vmem>>, vector<1x1x2176xf32>
    %20 = vector.shape_cast %19 : vector<1x1x2176xf32> to vector<1x2176xf32>
    %21 = vector.shape_cast %18 : vector<1x2176xf32> to vector<1x1x2176xf32>
    tpu.vector_store %arg4[%c0_9, %c0_10, %c0_11], %21 {strides = array<i32>} : memref<1x1x2176xf32, #tpu.memory_space<vmem>>, vector<1x1x2176xf32>,
    return
  }
  func.func @transform_0(%arg0: i32) -> (i32, i32, i32) {
    %c0_i32 = arith.constant 0 : i32
    %c0_i32_0 = arith.constant 0 : i32
    %c0_i32_1 = arith.constant 0 : i32
    return %arg0, %c0_i32, %c0_i32_0 : i32, i32, i32
  }
  func.func @transform_1(%arg0: i32) -> (i32, i32) {
    %c0_i32 = arith.constant 0 : i32
    %c0_i32_0 = arith.constant 0 : i32
    %c0_i32_1 = arith.constant 0 : i32
    return %c0_i32, %c0_i32_0 : i32, i32
  }
  func.func @transform_2(%arg0: i32) -> (i32, i32) {
    %c0_i32 = arith.constant 0 : i32
    %c0_i32_0 = arith.constant 0 : i32
    %c0_i32_1 = arith.constant 0 : i32
    return %c0_i32, %c0_i32_0 : i32, i32
  }
  func.func @transform_3(%arg0: i32) -> (i32, i32, i32) {
    %c0_i32 = arith.constant 0 : i32
    %c0_i32_0 = arith.constant 0 : i32
    %c0_i32_1 = arith.constant 0 : i32
    return %arg0, %c0_i32, %c0_i32_0 : i32, i32, i32
  }
}

</mosaic_0001>

<bundles_post_ra>
// kernel: netg_forward.5
= control target key start
LH: loop header
LB: loop body
LE: loop exit
PB: predicated region body
PF: predicated region fallthrough
CT: control target
= control target key end

     0   :  { %9 = vsyncpa [#allocation3], 0  ;;  %s1046_s0 = inlined_call_operand.vmem [shape: f32[2,144,128], index: 0, kind: input, shape index: {}]   ;;  %s1047_s1 = inlined_call_operand.hbm [shape: f32[64,144], index: 1, kind: input, shape index: {}]   ;;  %s1048_s2 = inlined_call_operand.hbm [shape: f32[64,128], index: 2, kind: input, shape index: {}]   ;;  %s1049_s3 = inlined_call_operand.hbm [shape: f32[64,128], index: 3, kind: input, shape index: {}]   ;;  %s1050_s4 = inlined_call_operand.vmem [shape: f32[2,64,128], index: 4, kind: output, shape index: {}]  }
   0x1   :  { %10 = vsyncpa [#allocation5], 0  ;;  %s850_s15 = smov 0  }
   0x2 LB: > { %s816_s16 = smov [#allocation4]   ;;  %s856_s18 = sadd.s32 4294967295, %s814_s15   ;;  %s814_s15 = sphi %s850_s15, %s16_s15  }
   0x3   : > { %s161_s17 = sshll.u32 %s816_s16, 4  ;;  %p609_p0 = scmp.ge.s32.totalorder %s814_s15, 1  ;;  %s162_s17 = int_to_ptr.vmem [resolvable:$true] %s161_s17 }
   0x4   : > { %p136_p1 = scmp.lt.s32.totalorder %s814_s15, 3  ;;  %p697_p2 = scmp.eq.s32.totalorder %s856_s18, 0 }
   0x5   : > { %s817_s20 = smov [#allocation2]   ;;  %s818_s23 = smov [#allocation6]  }
   0x6   : > { %p861_p3 = pnand %p609_p0, %p136_p1  ;;  %s148_s21 = sshll.u32 %s817_s20, 4  ;;  %s867_s21 = int_to_ptr.vmem [resolvable:$true] %s148_s21 }
   0x7   : > { %s875_s24 = sshll.u32 %s818_s23, 4  ;;  %s733_s25 = scalar_lea.vmem %s162_s17, 1024  ;;  %s175_s24 = int_to_ptr.vmem [resolvable:$true] %s875_s24 }
   0x8   : > { %p687_p4 = pneg %p861_p3  ;;  %p734_p7 = scmp.ne.s32.totalorder %s162_s17, %s733_s25 }
   0x9   : > { %p741_p10 = scmp.lt.s32.totalorder %s162_s17, %s162_s17  ;;  %p742_p11 = scmp.lt.s32.totalorder %s733_s25, %s733_s25 }
   0xa   : > { %p871_p5 = pnand %p697_p2, %p687_p4 }
   0xb   : > { %p743_p12 = por %p742_p11, %p741_p10 }
   0xc   : > { %p724_p6 = pneg %p871_p5 }
   0xe   : > { %p736_p8 = pnand %p734_p7, %p724_p6 }
  0x10   : > { %p737_p9 = pneg %p736_p8 }
  0x12   : > { %p744_p13 = pnand %p743_p12, %p737_p9 }
  0x14   : > { %747 = shalt.err (!%p744_p13)
}
  0x15   : > { %s819_s26 = smov 128   ;;  %s820_s27 = smov 8  }
  0x16   : > { %693 = dma.hbm_to_vmem [thread:$0]  (!%p871_p5), %s1048_s2, 1024, %s162_s17, [#allocation5], %s819_s26, %s819_s26, %s820_s27  }
  0x17   : > { %s759_s30 = scalar_lea.vmem %s867_s21, 2048  ;;  %p767_p7 = scmp.lt.s32.totalorder %s867_s21, %s867_s21 }
  0x18   : > { %p760_p0 = scmp.ne.s32.totalorder %s867_s21, %s759_s30  ;;  %p768_p8 = scmp.lt.s32.totalorder %s759_s30, %s759_s30 }
  0x1a   : > { %p762_p1 = pnand %p760_p0, %p724_p6  ;;  %p769_p9 = por %p768_p8, %p767_p7 }
  0x1c   : > { %p763_p4 = pneg %p762_p1 }
  0x1e   : > { %p770_p10 = pnand %p769_p9, %p763_p4 }
  0x20   : > { %773 = shalt.err (!%p770_p10)
}
  0x21   : > { %s821_s5 = smov 256   ;;  %s822_s6 = smov 16  }
  0x22   : > { %690 = dma.hbm_to_vmem [thread:$0]  (!%p871_p5), %s1047_s1, 2048, %s867_s21, [#allocation3], %s821_s5, %s821_s5, %s822_s6  }
  0x23   : > { %s785_s9 = scalar_lea.vmem %s175_s24, 1024  ;;  %p793_p0 = scmp.lt.s32.totalorder %s175_s24, %s175_s24 }
  0x24   : > { %p786_p11 = scmp.ne.s32.totalorder %s175_s24, %s785_s9  ;;  %p794_p1 = scmp.lt.s32.totalorder %s785_s9, %s785_s9 }
  0x26   : > { %p788_p12 = pnand %p786_p11, %p724_p6  ;;  %p795_p4 = por %p794_p1, %p793_p0 }
  0x28   : > { %p789_p13 = pneg %p788_p12 }
  0x2a   : > { %p796_p7 = pnand %p795_p4, %p789_p13 }
  0x2c   : > { %799 = shalt.err (!%p796_p7)
}
  0x2d   : > { %696 = dma.hbm_to_vmem [thread:$0]  (!%p871_p5), %s1049_s3, 1024, %s175_s24, [#allocation5], %s819_s26, %s819_s26, %s820_s27  }
  0x2e   : > { %198 = sbr.rel (%p861_p3) target bundleno = 600 (0x258), region = 36 }
  0x33   : > { %805 = dma.done.wait (%p697_p2), [#allocation3], 2048  }
  0x34   : > { %807 = vsyncadd (%p697_p2), [#allocation3], 4294965248 }
  0x35   : > { %809 = dma.done.wait (%p697_p2), [#allocation5], 2048  }
  0x36   : > { %811 = vsyncadd (%p697_p2), [#allocation5], 4294965248  ;;  %p232_p6 = scmp.lt.s32.totalorder %s856_s18, 1  ;;  %v823_v0 = vmov 0.0   ;;  %v261_v16 = vld [vmem:[#allocation2 + $0x8] sm:$0xff]  ;;  %vm276_vm0 = vcmask 130048  }
  0x37   : > { %301 = vmatprep.subr.mxu0 %v823_v0  ;;  %632 = vmatprep.subr.mxu1 %v823_v0  ;;  %v260_v20 = vld [vmem:[#allocation2] sm:$0xff]  ;;  %v263_v21 = vld [vmem:[#allocation2 + $0x18] sm:$0xff]  ;;  %v269_v22 = vld [vmem:[#allocation2 + $0x48] sm:$0xff]  ;;  %s824_s24 = smov 0.0  }
  0x38   : > { %s1054_s18 = smov (!%p232_p6, %s856_s18), 1  ;;  %621 = vmatprep.mubr.msk.f32.mxu0 %vm276_vm0, %v261_v16  ;;  %v268_v23 = vld [vmem:[#allocation2 + $0x40] sm:$0xff]  ;;  %v271_v24 = vld [vmem:[#allocation2 + $0x58] sm:$0xff]  ;;  %v262_v25 = vld [vmem:[#allocation2 + $0x10] sm:$0xff]  ;;  %625 = vmatprep.mubr.msk.f32.mxu1 %vm276_vm0, %v269_v22 }
  0x39   : > { %s668_s12 = smul.u32 144, %s1054_s18  ;;  %v265_v26 = vld [vmem:[#allocation2 + $0x28] sm:$0xff]  ;;  %v270_v27 = vld [vmem:[#allocation2 + $0x50] sm:$0xff]  ;;  %v264_v29 = vld [vmem:[#allocation2 + $0x20] sm:$0xff]  ;;  %s631_s28 = sshll.u32 %s1054_s18, 6 }
  0x3a   : > { %v273_v28 = vld [vmem:[#allocation2 + $0x68] sm:$0xff]  ;;  %v267_v30 = vld [vmem:[#allocation2 + $0x38] sm:$0xff]  ;;  %v272_v31 = vld [vmem:[#allocation2 + $0x60] sm:$0xff]  ;;  %s241_s5 = scalar_lea.vmem %s1050_s4, %s631_s28 }
  0x3b   : > { %s929_s16 = scalar_lea.vmem %s1046_s0, %s668_s12  ;;  %v275_v32 = vld [vmem:[#allocation2 + $0x78] sm:$0xff]  ;;  %v266_v33 = vld [vmem:[#allocation2 + $0x30] sm:$0xff] }
  0x3c   : > { %v257_v1 = vld [vmem:[%s929_s16 + $0x78] sm:$0xff]  ;;  %v256_v2 = vld [vmem:[%s929_s16 + $0x70] sm:$0xff]  ;;  %v255_v3 = vld [vmem:[%s929_s16 + $0x68] sm:$0xff] }
  0x3d   : > { %302 = vmatpush1.msra.mxu0 %v257_v1  ;;  %650 = vmatpush1.msra.mxu1 %v257_v1  ;;  %v254_v4 = vld [vmem:[%s929_s16 + $0x60] sm:$0xff]  ;;  %v253_v5 = vld [vmem:[%s929_s16 + $0x58] sm:$0xff]  ;;  %v252_v6 = vld [vmem:[%s929_s16 + $0x50] sm:$0xff] }
  0x3e   : > { %303 = vmatprep.subr.mxu0 %v823_v0  ;;  %633 = vmatprep.subr.mxu1 %v823_v0  ;;  %v251_v7 = vld [vmem:[%s929_s16 + $0x48] sm:$0xff]  ;;  %v250_v8 = vld [vmem:[%s929_s16 + $0x40] sm:$0xff]  ;;  %v249_v9 = vld [vmem:[%s929_s16 + $0x38] sm:$0xff] }
  0x3f   : > { %304 = vmatpush1.msra.mxu0 %v256_v2  ;;  %651 = vmatpush1.msra.mxu1 %v256_v2  ;;  %v248_v10 = vld [vmem:[%s929_s16 + $0x30] sm:$0xff]  ;;  %v247_v11 = vld [vmem:[%s929_s16 + $0x28] sm:$0xff]  ;;  %v246_v12 = vld [vmem:[%s929_s16 + $0x20] sm:$0xff] }
  0x40   : > { %305 = vmatprep.subr.mxu0 %v823_v0  ;;  %634 = vmatprep.subr.mxu1 %v823_v0  ;;  %v245_v13 = vld [vmem:[%s929_s16 + $0x18] sm:$0xff]  ;;  %v244_v14 = vld [vmem:[%s929_s16 + $0x10] sm:$0xff]  ;;  %v243_v15 = vld [vmem:[%s929_s16 + $0x8] sm:$0xff] }
  0x41   : > { %306 = vmatpush1.msra.mxu0 %v255_v3  ;;  %652 = vmatpush1.msra.mxu1 %v255_v3  ;;  %v242_v17 = vld [vmem:[%s929_s16] sm:$0xff]  ;;  %v259_v18 = vld [vmem:[%s929_s16 + $0x88] sm:$0xff]  ;;  %v274_v34 = vld [vmem:[#allocation2 + $0x70] sm:$0xff] }
  0x42   : > { %307 = vmatprep.subr.mxu0 %v823_v0  ;;  %635 = vmatprep.subr.mxu1 %v823_v0  ;;  %v258_v19 = vld [vmem:[%s929_s16 + $0x80] sm:$0xff] }
  0x43   : > { %308 = vmatpush1.msra.mxu0 %v254_v4  ;;  %653 = vmatpush1.msra.mxu1 %v254_v4 }
  0x44   : > { %309 = vmatprep.subr.mxu0 %v823_v0  ;;  %636 = vmatprep.subr.mxu1 %v823_v0 }
  0x45   : > { %310 = vmatpush1.msra.mxu0 %v253_v5  ;;  %654 = vmatpush1.msra.mxu1 %v253_v5 }
  0x46   : > { %311 = vmatprep.subr.mxu0 %v823_v0  ;;  %637 = vmatprep.subr.mxu1 %v823_v0 }
  0x47   : > { %312 = vmatpush1.msra.mxu0 %v252_v6  ;;  %655 = vmatpush1.msra.mxu1 %v252_v6 }
  0x48   : > { %313 = vmatprep.subr.mxu0 %v823_v0  ;;  %638 = vmatprep.subr.mxu1 %v823_v0 }
  0x49   : > { %314 = vmatpush1.msra.mxu0 %v251_v7  ;;  %656 = vmatpush1.msra.mxu1 %v251_v7 }
  0x4a   : > { %315 = vmatprep.subr.mxu0 %v823_v0  ;;  %639 = vmatprep.subr.mxu1 %v823_v0 }
  0x4b   : > { %316 = vmatpush1.msra.mxu0 %v250_v8  ;;  %657 = vmatpush1.msra.mxu1 %v250_v8 }
  0x4c   : > { %317 = vmatprep.subr.mxu0 %v823_v0  ;;  %640 = vmatprep.subr.mxu1 %v823_v0 }
  0x4d   : > { %318 = vmatpush1.msra.mxu0 %v249_v9  ;;  %658 = vmatpush1.msra.mxu1 %v249_v9 }
  0x4e   : > { %319 = vmatprep.subr.mxu0 %v823_v0  ;;  %641 = vmatprep.subr.mxu1 %v823_v0 }
  0x4f   : > { %320 = vmatpush1.msra.mxu0 %v248_v10  ;;  %659 = vmatpush1.msra.mxu1 %v248_v10 }
  0x50   : > { %321 = vmatprep.subr.mxu0 %v823_v0  ;;  %642 = vmatprep.subr.mxu1 %v823_v0 }
  0x51   : > { %322 = vmatpush1.msra.mxu0 %v247_v11  ;;  %660 = vmatpush1.msra.mxu1 %v247_v11 }
  0x52   : > { %323 = vmatprep.subr.mxu0 %v823_v0  ;;  %643 = vmatprep.subr.mxu1 %v823_v0 }
  0x53   : > { %324 = vmatpush1.msra.mxu0 %v246_v12  ;;  %661 = vmatpush1.msra.mxu1 %v246_v12 }
  0x54   : > { %325 = vmatprep.subr.mxu0 %v823_v0  ;;  %644 = vmatprep.subr.mxu1 %v823_v0 }
  0x55   : > { %326 = vmatpush1.msra.mxu0 %v245_v13  ;;  %662 = vmatpush1.msra.mxu1 %v245_v13 }
  0x56   : > { %327 = vmatprep.subr.mxu0 %v823_v0  ;;  %645 = vmatprep.subr.mxu1 %v823_v0 }
  0x57   : > { %328 = vmatpush1.msra.mxu0 %v244_v14  ;;  %663 = vmatpush1.msra.mxu1 %v244_v14 }
  0x58   : > { %329 = vmatprep.subr.mxu0 %v823_v0  ;;  %646 = vmatprep.subr.mxu1 %v823_v0 }
  0x59   : > { %330 = vmatpush1.msra.mxu0 %v243_v15  ;;  %664 = vmatpush1.msra.mxu1 %v243_v15 }
  0x5a   : > { %331 = vmatprep.subr.mxu0 %v823_v0  ;;  %647 = vmatprep.subr.mxu1 %v823_v0 }
  0x5b   : > { %332 = vmatpush1.msra.mxu0 %v242_v17  ;;  %665 = vmatpush1.msra.mxu1 %v242_v17 }
  0x5c   : > { %361 = vmatprep.subr.mxu0 %v823_v0  ;;  %648 = vmatprep.subr.mxu1 %v823_v0 }
  0x5d   : > { %362 = vmatpush2.msra.mxu0 %v259_v18  ;;  %666 = vmatpush2.msra.mxu1 %v259_v18 }
  0x5e   : > { %363 = vmatprep.subr.mxu0 %v823_v0  ;;  %649 = vmatprep.subr.mxu1 %v823_v0 }
  0x5f   : > { %364 = vmatpush2.msra.mxu0 %v258_v19  ;;  %667 = vmatpush2.msra.mxu1 %v258_v19 }
  0x60   : > { %366 = vmatmul.mubr.f32.vlgmr.msra.gmra.mxu0 %v260_v20  ;;  %386 = vmatmul.mubr.f32.vlgmr.msra.gmra.mxu1 %v268_v23 }
  0x61   : > { %622 = vmatprep.mubr.msk.f32.mxu0 %vm276_vm0, %v263_v21  ;;  %626 = vmatprep.mubr.msk.f32.mxu1 %vm276_vm0, %v271_v24 }
  0x64   : > { %371 = vmatmul.mubr.f32.gmra.mxu0 %v262_v25  ;;  %391 = vmatmul.mubr.f32.gmra.mxu1 %v270_v27  ;;  %v473_v27 = vld [vmem:[#allocation4] sm:$0xff] }
  0x65   : > { %623 = vmatprep.mubr.msk.f32.mxu0 %vm276_vm0, %v265_v26  ;;  %627 = vmatprep.mubr.msk.f32.mxu1 %vm276_vm0, %v273_v28 }
  0x68   : > { %376 = vmatmul.mubr.f32.gmra.mxu0 %v264_v29  ;;  %396 = vmatmul.mubr.f32.gmra.mxu1 %v272_v31 }
  0x69   : > { %624 = vmatprep.mubr.msk.f32.mxu0 %vm276_vm0, %v267_v30  ;;  %628 = vmatprep.mubr.msk.f32.mxu1 %vm276_vm0, %v275_v32  ;;  %v474_v32 = vld [vmem:[#allocation4 + $0x8] sm:$0xff] }
  0x6c   : > { %381 = vmatmul.mubr.f32.gmra.mxu0 %v266_v33  ;;  %401 = vmatmul.mubr.f32.gmra.mxu1 %v274_v34  ;;  %v475_v33 = vld [vmem:[#allocation4 + $0x10] sm:$0xff]  ;;  %v476_v34 = vld [vmem:[#allocation4 + $0x18] sm:$0xff] }
 0x120   : > { %v991_v35 = vpop.f32.mrf.mxu0  ;;  %v993_v37 = vpop.f32.mrf.mxu1 }
 0x121   : > { %v423_v45 = vmul.f32 %v991_v35, %v991_v35  ;;  %v427_v59 = vmul.f32 %v993_v37, %v993_v37 }
 0x122   : > { %v369_v36 = vpop.f32.mrf.mxu0  ;;  %v389_v39 = vpop.f32.mrf.mxu1 }
 0x124   : > { %v995_v38 = vpop.f32.mrf.mxu0  ;;  %v997_v41 = vpop.f32.mrf.mxu1 }
 0x125   : > { %v424_v42 = vmul.f32 %v995_v38, %v995_v38  ;;  %v406_v46 = vadd.f32 %v995_v38, %v991_v35  ;;  %v428_v63 = vmul.f32 %v997_v41, %v997_v41 }
 0x126   : > { %v374_v40 = vpop.f32.mrf.mxu0  ;;  %v394_v44 = vpop.f32.mrf.mxu1 }
 0x127   : > { %v431_v50 = vadd.f32 %v424_v42, %v423_v45  ;;  %v477_v42 = vld [vmem:[#allocation4 + $0x20] sm:$0xff]  ;;  %v478_v44 = vld [vmem:[#allocation4 + $0x28] sm:$0xff] }
 0x128   : > { %v1001_v43 = vpop.f32.mrf.mxu0  ;;  %v1009_v49 = vpop.f32.mrf.mxu1 }
 0x129   : > { %v425_v47 = vmul.f32 %v1001_v43, %v1001_v43  ;;  %v407_v51 = vadd.f32 %v406_v46, %v1001_v43  ;;  %v429_v2 = vmul.f32 %v1009_v49, %v1009_v49 }
 0x12a   : > { %v379_v48 = vpop.f32.mrf.mxu0  ;;  %v399_v53 = vpop.f32.mrf.mxu1 }
 0x12b   : > { %v432_v54 = vadd.f32 %v431_v50, %v425_v47  ;;  %v489_v48 = vld [vmem:[#allocation6] sm:$0xff]  ;;  %v490_v50 = vld [vmem:[#allocation6 + $0x8] sm:$0xff] }
 0x12c   : > { %v1012_v52 = vpop.f32.mrf.mxu0  ;;  %v1017_v58 = vpop.f32.mrf.mxu1 }
 0x12d   : > { %v408_v55 = vadd.f32 %v407_v51, %v1012_v52  ;;  %v426_v56 = vmul.f32 %v1012_v52, %v1012_v52  ;;  %v430_v6 = vmul.f32 %v1017_v58, %v1017_v58 }
 0x12e   : > { %v384_v57 = vpop.f32.mrf.mxu0  ;;  %v404_v62 = vpop.f32.mrf.mxu1 }
 0x12f   : > { %v409_v60 = vadd.f32 %v408_v55, %v993_v37  ;;  %v433_v61 = vadd.f32 %v432_v54, %v426_v56  ;;  %v491_v54 = vld [vmem:[#allocation6 + $0x10] sm:$0xff]  ;;  %v493_v55 = vld [vmem:[#allocation6 + $0x20] sm:$0xff]  ;;  %v496_v62 = vld [vmem:[#allocation6 + $0x38] sm:$0xff] }
 0x131   : > { %v410_v0 = vadd.f32 %v409_v60, %v997_v41  ;;  %v434_v1 = vadd.f32 %v433_v61, %v427_v59  ;;  %v494_v60 = vld [vmem:[#allocation6 + $0x28] sm:$0xff]  ;;  %v495_v61 = vld [vmem:[#allocation6 + $0x30] sm:$0xff] }
 0x133   : > { %v411_v3 = vadd.f32 %v410_v0, %v1009_v49  ;;  %v435_v4 = vadd.f32 %v434_v1, %v428_v63 }
 0x135   : > { %v412_v5 = vadd.f32 %v411_v3, %v1017_v58  ;;  %v436_v7 = vadd.f32 %v435_v4, %v429_v2 }
 0x137   : > { %413 = vadd.xlane.f32.xlu0 %v412_v5  ;;  %v437_v8 = vadd.f32 %v436_v7, %v430_v6 }
 0x13b   : > { %438 = vadd.xlane.f32.xlu0 %v437_v8 }
 0x1c0   : > { %v414_v9 = vpop.xlane.xlu0 %413 }
 0x1c1   : > { %v415_v10 = vrot.slane %v414_v9, 4 }
 0x1c3   : > { %v416_v11 = vadd.f32 %v415_v10, %v414_v9 }
 0x1c4   : > { %v439_v12 = vpop.xlane.xlu0 %438 }
 0x1c5   : > { %v417_v13 = vrot.slane %v416_v11, 2  ;;  %v440_v14 = vrot.slane %v439_v12, 4 }
 0x1c7   : > { %v441_v15 = vadd.f32 %v440_v14, %v439_v12  ;;  %v418_v16 = vadd.f32 %v417_v13, %v416_v11 }
 0x1c9   : > { %v442_v17 = vrot.slane %v441_v15, 2  ;;  %v419_v18 = vrot.slane %v418_v16, 1 }
 0x1cb   : > { %v443_v19 = vadd.f32 %v442_v17, %v441_v15  ;;  %v420_v20 = vadd.f32 %v419_v18, %v418_v16 }
 0x1cd   : > { %669 = vpush %v420_v20  ;;  %v444_v21 = vrot.slane %v443_v19, 1 }
 0x1cf   : > { %v445_v22 = vadd.f32 %v444_v21, %v443_v19 }
 0x1d1   : > { %671 = vpush %v445_v22 }
 0x1fe   : > { %s670_s17 = spop %669 }
 0x1ff   : > { %s422_s19 = smul.f32 0.0017361111, %s670_s17 }
 0x201   : > { %s448_s20 = smul.f32 %s422_s19, %s422_s19  ;;  %v451_v25 = vstv %s422_s19 }
 0x202   : > { %s672_s21 = spop %671  ;;  %v452_v26 = vsub.f32 %v991_v35, %v451_v25  ;;  %v453_v28 = vsub.f32 %v995_v38, %v451_v25  ;;  %v454_v29 = vsub.f32 %v1001_v43, %v451_v25  ;;  %v455_v30 = vsub.f32 %v1012_v52, %v451_v25  ;;  %v479_v38 = vld [vmem:[#allocation4 + $0x30] sm:$0xff] }
 0x203   : > { %s447_s22 = smul.f32 0.0017361111, %s672_s21  ;;  %v456_v31 = vsub.f32 %v993_v37, %v451_v25  ;;  %v457_v36 = vsub.f32 %v997_v41, %v451_v25  ;;  %v458_v39 = vsub.f32 %v1009_v49, %v451_v25  ;;  %v459_v40 = vsub.f32 %v1017_v58, %v451_v25  ;;  %v480_v37 = vld [vmem:[#allocation4 + $0x38] sm:$0xff] }
 0x204   : > { %v492_v49 = vld [vmem:[#allocation6 + $0x18] sm:$0xff] }
 0x205   : > { %s449_s23 = ssub.f32 %s447_s22, %s448_s20 }
 0x207   : > { %s450_s25 = smax.f32 %s824_s24, %s449_s23 }
 0x208   : > { %s460_s26 = sadd.f32 1e-05, %s450_s25 }
 0x20a   : > { %v461_v23 = vstv %s460_s26 }
 0x20b   : > { %720 = vrsqrt.f32 %v461_v23 }
 0x218   : > { %v721_v24 = vpop.eup %720 }
 0x219   : > { %673 = vpush %v721_v24 }
 0x24a   : > { %s674_s27 = spop %673 }
 0x24b   : > { %v464_v35 = vstv %s674_s27 }
 0x24c   : > { %v465_v43 = vmul.f32 %v464_v35, %v452_v26  ;;  %v466_v45 = vmul.f32 %v464_v35, %v453_v28  ;;  %v467_v46 = vmul.f32 %v464_v35, %v454_v29  ;;  %v468_v47 = vmul.f32 %v464_v35, %v455_v30 }
 0x24d   : > { %v469_v51 = vmul.f32 %v464_v35, %v456_v31  ;;  %v470_v52 = vmul.f32 %v464_v35, %v457_v36  ;;  %v471_v53 = vmul.f32 %v464_v35, %v458_v39  ;;  %v472_v41 = vmul.f32 %v464_v35, %v459_v40 }
 0x24e   : > { %v481_v56 = vmul.f32 %v473_v27, %v465_v43  ;;  %v482_v57 = vmul.f32 %v474_v32, %v466_v45  ;;  %v483_v58 = vmul.f32 %v475_v33, %v467_v46  ;;  %v484_v59 = vmul.f32 %v476_v34, %v468_v47 }
 0x24f   : > { %v485_v63 = vmul.f32 %v477_v42, %v469_v51  ;;  %v486_v0 = vmul.f32 %v478_v44, %v470_v52  ;;  %v487_v1 = vmul.f32 %v479_v38, %v471_v53  ;;  %v488_v2 = vmul.f32 %v480_v37, %v472_v41 }
 0x250   : > { %v497_v3 = vadd.f32 %v489_v48, %v481_v56  ;;  %v498_v4 = vadd.f32 %v490_v50, %v482_v57  ;;  %v499_v5 = vadd.f32 %v491_v54, %v483_v58  ;;  %v500_v6 = vadd.f32 %v492_v49, %v484_v59 }
 0x251   : > { %v501_v7 = vadd.f32 %v493_v55, %v485_v63  ;;  %v502_v8 = vadd.f32 %v494_v60, %v486_v0  ;;  %v503_v9 = vadd.f32 %v495_v61, %v487_v1  ;;  %v504_v10 = vadd.f32 %v496_v62, %v488_v2 }
 0x252   : > { %v505_v11 = vmax.f32 %v497_v3, 0.0  ;;  %v506_v12 = vmax.f32 %v498_v4, 0.0  ;;  %v507_v13 = vmax.f32 %v499_v5, 0.0  ;;  %v508_v14 = vmax.f32 %v500_v6, 0.0 }
 0x253   : > { %v509_v15 = vmax.f32 %v501_v7, 0.0  ;;  %v510_v16 = vmax.f32 %v502_v8, 0.0  ;;  %v511_v17 = vmax.f32 %v503_v9, 0.0  ;;  %v512_v18 = vmax.f32 %v504_v10, 0.0 }
 0x254   : > { %513 = vst [vmem:[%s241_s5] sm:$0xff] %v505_v11  ;;  %514 = vst [vmem:[%s241_s5 + $0x8] sm:$0xff] %v506_v12 }
 0x255   : > { %515 = vst [vmem:[%s241_s5 + $0x10] sm:$0xff] %v507_v13  ;;  %516 = vst [vmem:[%s241_s5 + $0x18] sm:$0xff] %v508_v14 }
 0x256   : > { %517 = vst [vmem:[%s241_s5 + $0x20] sm:$0xff] %v509_v15  ;;  %518 = vst [vmem:[%s241_s5 + $0x28] sm:$0xff] %v510_v16 }
 0x257   : > { %519 = vst [vmem:[%s241_s5 + $0x30] sm:$0xff] %v511_v17  ;;  %520 = vst [vmem:[%s241_s5 + $0x38] sm:$0xff] %v512_v18 }
 0x258 PF: > { %s16_s15 = sadd.s32 1, %s814_s15  }
 0x259   : > { %p13_p2 = scmp.ge.s32.totalorder %s16_s15, 4  }
 0x25b   :  { %15 = sbr.rel (!%p13_p2) target bundleno = 2 (0x2), region = 79 }
 0x260   :  { %542 = vsyncpa [#allocation3], 1 }
 0x261   :  { %544 = vsyncpa [#allocation3 + $0x1], 1 }
 0x262   :  { %545 = vsyncpa [#allocation5], 1 }

// kernel: netg_forward.6
= control target key start
LH: loop header
LB: loop body
LE: loop exit
PB: predicated region body
PF: predicated region fallthrough
CT: control target
= control target key end

     0   :  { %s1064_s15 = smov 0   ;;  %s1341_s0 = inlined_call_operand.vmem [shape: f32[2,1024,128], index: 0, kind: input, shape index: {}]   ;;  %s1342_s1 = inlined_call_operand.vmem [shape: f32[32,1024], index: 1, kind: input, shape index: {}]   ;;  %s1343_s2 = inlined_call_operand.vmem [shape: f32[32,128], index: 2, kind: input, shape index: {}]   ;;  %s1344_s3 = inlined_call_operand.vmem [shape: f32[32,128], index: 3, kind: input, shape index: {}]   ;;  %s1345_s4 = inlined_call_operand.vmem [shape: f32[2,32,128], index: 4, kind: output, shape index: {}]  }
   0x1 LB: > { %s824_s16 = sadd.s32 4294967295, %s1036_s15   ;;  %p828_p0 = scmp.ge.s32.totalorder %s1036_s15, 1  ;;  %s1036_s15 = sphi %s1064_s15, %s14_s15  }
   0x2   : > { %p162_p1 = scmp.lt.s32.totalorder %s1036_s15, 3 }
   0x4   : > { %p163_p2 = pnand %p828_p0, %p162_p1 }
   0x5   : > { %p188_p3 = scmp.lt.s32.totalorder (!%p163_p2), %s824_s16, 1  ;;  %s1038_s19 = smov (!%p163_p2), 0.0  }
   0x6   : > { %166 = sbr.rel (%p163_p2) target bundleno = 590 (0x24e), region = 36 }
   0xb   : > { %v327_v0 = vld [vmem:[%s1342_s1 + $0x8] sm:$0xff]  ;;  %v329_v1 = vld [vmem:[%s1342_s1 + $0x18] sm:$0xff]  ;;  %s1347_s16 = smov (!%p188_p3, %s824_s16), 1 }
   0xc   : > { %422 = vmatprep.mubr.f32.mxu0 %v327_v0  ;;  %507 = vmatprep.mubr.f32.mxu1 %v329_v1  ;;  %s835_s21 = sshll.u32 %s1347_s16, 10 }
   0xd   : > { %s1084_s24 = scalar_lea.vmem %s1341_s0, %s835_s21 }
   0xe   : > { %v229_v2 = vld [vmem:[%s1084_s24 + $0xf8] sm:$0xff]  ;;  %v228_v6 = vld [vmem:[%s1084_s24 + $0xf0] sm:$0xff]  ;;  %v227_v10 = vld [vmem:[%s1084_s24 + $0xe8] sm:$0xff] }
   0xf   : > { %v261_v3 = vld [vmem:[%s1084_s24 + $0x1f8] sm:$0xff]  ;;  %837 = vmatprep.subr.mxu0 %v229_v2  ;;  %v260_v7 = vld [vmem:[%s1084_s24 + $0x1f0] sm:$0xff]  ;;  %v259_v11 = vld [vmem:[%s1084_s24 + $0x1e8] sm:$0xff] }
  0x10   : > { %v213_v4 = vld [vmem:[%s1084_s24 + $0x78] sm:$0xff]  ;;  %881 = vmatprep.subr.mxu1 %v261_v3  ;;  %v212_v8 = vld [vmem:[%s1084_s24 + $0x70] sm:$0xff]  ;;  %v211_v12 = vld [vmem:[%s1084_s24 + $0x68] sm:$0xff] }
  0x11   : > { %v245_v5 = vld [vmem:[%s1084_s24 + $0x178] sm:$0xff]  ;;  %838 = vmatpush3.msra.mxu0 %v213_v4  ;;  %v244_v9 = vld [vmem:[%s1084_s24 + $0x170] sm:$0xff]  ;;  %v243_v13 = vld [vmem:[%s1084_s24 + $0x168] sm:$0xff] }
  0x12   : > { %882 = vmatpush3.msra.mxu1 %v245_v5  ;;  %839 = vmatprep.subr.mxu0 %v228_v6  ;;  %v226_v14 = vld [vmem:[%s1084_s24 + $0xe0] sm:$0xff]  ;;  %v225_v18 = vld [vmem:[%s1084_s24 + $0xd8] sm:$0xff]  ;;  %v224_v22 = vld [vmem:[%s1084_s24 + $0xd0] sm:$0xff] }
  0x13   : > { %883 = vmatprep.subr.mxu1 %v260_v7  ;;  %840 = vmatpush3.msra.mxu0 %v212_v8  ;;  %v258_v15 = vld [vmem:[%s1084_s24 + $0x1e0] sm:$0xff]  ;;  %v257_v19 = vld [vmem:[%s1084_s24 + $0x1d8] sm:$0xff]  ;;  %v256_v23 = vld [vmem:[%s1084_s24 + $0x1d0] sm:$0xff] }
  0x14   : > { %884 = vmatpush3.msra.mxu1 %v244_v9  ;;  %841 = vmatprep.subr.mxu0 %v227_v10  ;;  %v210_v16 = vld [vmem:[%s1084_s24 + $0x60] sm:$0xff]  ;;  %v209_v20 = vld [vmem:[%s1084_s24 + $0x58] sm:$0xff]  ;;  %v208_v24 = vld [vmem:[%s1084_s24 + $0x50] sm:$0xff] }
  0x15   : > { %885 = vmatprep.subr.mxu1 %v259_v11  ;;  %v242_v17 = vld [vmem:[%s1084_s24 + $0x160] sm:$0xff]  ;;  %842 = vmatpush3.msra.mxu0 %v211_v12  ;;  %v241_v21 = vld [vmem:[%s1084_s24 + $0x158] sm:$0xff]  ;;  %v240_v25 = vld [vmem:[%s1084_s24 + $0x150] sm:$0xff] }
  0x16   : > { %886 = vmatpush3.msra.mxu1 %v243_v13  ;;  %843 = vmatprep.subr.mxu0 %v226_v14  ;;  %v223_v26 = vld [vmem:[%s1084_s24 + $0xc8] sm:$0xff]  ;;  %v222_v30 = vld [vmem:[%s1084_s24 + $0xc0] sm:$0xff]  ;;  %v221_v34 = vld [vmem:[%s1084_s24 + $0xb8] sm:$0xff] }
  0x17   : > { %887 = vmatprep.subr.mxu1 %v258_v15  ;;  %844 = vmatpush3.msra.mxu0 %v210_v16  ;;  %v255_v27 = vld [vmem:[%s1084_s24 + $0x1c8] sm:$0xff]  ;;  %v254_v31 = vld [vmem:[%s1084_s24 + $0x1c0] sm:$0xff]  ;;  %v253_v35 = vld [vmem:[%s1084_s24 + $0x1b8] sm:$0xff] }
  0x18   : > { %888 = vmatpush3.msra.mxu1 %v242_v17  ;;  %845 = vmatprep.subr.mxu0 %v225_v18  ;;  %v207_v28 = vld [vmem:[%s1084_s24 + $0x48] sm:$0xff]  ;;  %v206_v32 = vld [vmem:[%s1084_s24 + $0x40] sm:$0xff]  ;;  %v205_v36 = vld [vmem:[%s1084_s24 + $0x38] sm:$0xff] }
  0x19   : > { %889 = vmatprep.subr.mxu1 %v257_v19  ;;  %846 = vmatpush3.msra.mxu0 %v209_v20  ;;  %v239_v29 = vld [vmem:[%s1084_s24 + $0x148] sm:$0xff]  ;;  %v238_v33 = vld [vmem:[%s1084_s24 + $0x140] sm:$0xff]  ;;  %v237_v37 = vld [vmem:[%s1084_s24 + $0x138] sm:$0xff] }
  0x1a   : > { %890 = vmatpush3.msra.mxu1 %v241_v21  ;;  %847 = vmatprep.subr.mxu0 %v224_v22  ;;  %v220_v38 = vld [vmem:[%s1084_s24 + $0xb0] sm:$0xff]  ;;  %v219_v42 = vld [vmem:[%s1084_s24 + $0xa8] sm:$0xff]  ;;  %v218_v46 = vld [vmem:[%s1084_s24 + $0xa0] sm:$0xff] }
  0x1b   : > { %891 = vmatprep.subr.mxu1 %v256_v23  ;;  %848 = vmatpush3.msra.mxu0 %v208_v24  ;;  %v252_v39 = vld [vmem:[%s1084_s24 + $0x1b0] sm:$0xff]  ;;  %v251_v43 = vld [vmem:[%s1084_s24 + $0x1a8] sm:$0xff]  ;;  %v250_v47 = vld [vmem:[%s1084_s24 + $0x1a0] sm:$0xff] }
  0x1c   : > { %892 = vmatpush3.msra.mxu1 %v240_v25  ;;  %849 = vmatprep.subr.mxu0 %v223_v26  ;;  %v204_v40 = vld [vmem:[%s1084_s24 + $0x30] sm:$0xff]  ;;  %v203_v44 = vld [vmem:[%s1084_s24 + $0x28] sm:$0xff]  ;;  %v202_v48 = vld [vmem:[%s1084_s24 + $0x20] sm:$0xff] }
  0x1d   : > { %893 = vmatprep.subr.mxu1 %v255_v27  ;;  %850 = vmatpush3.msra.mxu0 %v207_v28  ;;  %v236_v41 = vld [vmem:[%s1084_s24 + $0x130] sm:$0xff]  ;;  %v235_v45 = vld [vmem:[%s1084_s24 + $0x128] sm:$0xff]  ;;  %v234_v49 = vld [vmem:[%s1084_s24 + $0x120] sm:$0xff] }
  0x1e   : > { %894 = vmatpush3.msra.mxu1 %v239_v29  ;;  %851 = vmatprep.subr.mxu0 %v222_v30  ;;  %v217_v50 = vld [vmem:[%s1084_s24 + $0x98] sm:$0xff]  ;;  %v216_v54 = vld [vmem:[%s1084_s24 + $0x90] sm:$0xff]  ;;  %v215_v58 = vld [vmem:[%s1084_s24 + $0x88] sm:$0xff] }
  0x1f   : > { %895 = vmatprep.subr.mxu1 %v254_v31  ;;  %852 = vmatpush3.msra.mxu0 %v206_v32  ;;  %v249_v51 = vld [vmem:[%s1084_s24 + $0x198] sm:$0xff]  ;;  %v248_v55 = vld [vmem:[%s1084_s24 + $0x190] sm:$0xff]  ;;  %v247_v59 = vld [vmem:[%s1084_s24 + $0x188] sm:$0xff] }
  0x20   : > { %896 = vmatpush3.msra.mxu1 %v238_v33  ;;  %853 = vmatprep.subr.mxu0 %v221_v34  ;;  %v201_v52 = vld [vmem:[%s1084_s24 + $0x18] sm:$0xff]  ;;  %v200_v56 = vld [vmem:[%s1084_s24 + $0x10] sm:$0xff]  ;;  %v199_v60 = vld [vmem:[%s1084_s24 + $0x8] sm:$0xff] }
  0x21   : > { %897 = vmatprep.subr.mxu1 %v253_v35  ;;  %854 = vmatpush3.msra.mxu0 %v205_v36  ;;  %v233_v53 = vld [vmem:[%s1084_s24 + $0x118] sm:$0xff]  ;;  %v232_v57 = vld [vmem:[%s1084_s24 + $0x110] sm:$0xff]  ;;  %v231_v61 = vld [vmem:[%s1084_s24 + $0x108] sm:$0xff] }
  0x22   : > { %898 = vmatpush3.msra.mxu1 %v237_v37  ;;  %855 = vmatprep.subr.mxu0 %v220_v38  ;;  %v214_v62 = vld [vmem:[%s1084_s24 + $0x80] sm:$0xff]  ;;  %v328_v3 = vld [vmem:[%s1342_s1 + $0x10] sm:$0xff]  ;;  %v293_v4 = vld [vmem:[%s1084_s24 + $0x2f8] sm:$0xff] }
  0x23   : > { %899 = vmatprep.subr.mxu1 %v252_v39  ;;  %856 = vmatpush3.msra.mxu0 %v204_v40  ;;  %v246_v63 = vld [vmem:[%s1084_s24 + $0x180] sm:$0xff]  ;;  %v325_v5 = vld [vmem:[%s1084_s24 + $0x3f8] sm:$0xff]  ;;  %v292_v8 = vld [vmem:[%s1084_s24 + $0x2f0] sm:$0xff] }
  0x24   : > { %900 = vmatpush3.msra.mxu1 %v236_v41  ;;  %857 = vmatprep.subr.mxu0 %v219_v42  ;;  %v198_v0 = vld [vmem:[%s1084_s24] sm:$0xff]  ;;  %v277_v6 = vld [vmem:[%s1084_s24 + $0x278] sm:$0xff]  ;;  %v324_v9 = vld [vmem:[%s1084_s24 + $0x3f0] sm:$0xff] }
  0x25   : > { %901 = vmatprep.subr.mxu1 %v251_v43  ;;  %858 = vmatpush3.msra.mxu0 %v203_v44  ;;  %v230_v1 = vld [vmem:[%s1084_s24 + $0x100] sm:$0xff]  ;;  %v309_v7 = vld [vmem:[%s1084_s24 + $0x378] sm:$0xff]  ;;  %v276_v10 = vld [vmem:[%s1084_s24 + $0x270] sm:$0xff] }
  0x26   : > { %902 = vmatpush3.msra.mxu1 %v235_v45  ;;  %859 = vmatprep.subr.mxu0 %v218_v46  ;;  %v326_v2 = vld [vmem:[%s1342_s1] sm:$0xff]  ;;  %v308_v11 = vld [vmem:[%s1084_s24 + $0x370] sm:$0xff]  ;;  %v291_v12 = vld [vmem:[%s1084_s24 + $0x2e8] sm:$0xff] }
  0x27   : > { %903 = vmatprep.subr.mxu1 %v250_v47  ;;  %860 = vmatpush3.msra.mxu0 %v202_v48  ;;  %v323_v13 = vld [vmem:[%s1084_s24 + $0x3e8] sm:$0xff]  ;;  %v290_v16 = vld [vmem:[%s1084_s24 + $0x2e0] sm:$0xff]  ;;  %v289_v20 = vld [vmem:[%s1084_s24 + $0x2d8] sm:$0xff] }
  0x28   : > { %904 = vmatpush3.msra.mxu1 %v234_v49  ;;  %861 = vmatprep.subr.mxu0 %v217_v50  ;;  %v275_v14 = vld [vmem:[%s1084_s24 + $0x268] sm:$0xff]  ;;  %v322_v17 = vld [vmem:[%s1084_s24 + $0x3e0] sm:$0xff]  ;;  %v321_v21 = vld [vmem:[%s1084_s24 + $0x3d8] sm:$0xff] }
  0x29   : > { %905 = vmatprep.subr.mxu1 %v249_v51  ;;  %862 = vmatpush3.msra.mxu0 %v201_v52  ;;  %v307_v15 = vld [vmem:[%s1084_s24 + $0x368] sm:$0xff]  ;;  %v274_v18 = vld [vmem:[%s1084_s24 + $0x260] sm:$0xff]  ;;  %v273_v22 = vld [vmem:[%s1084_s24 + $0x258] sm:$0xff] }
  0x2a   : > { %906 = vmatpush3.msra.mxu1 %v233_v53  ;;  %863 = vmatprep.subr.mxu0 %v216_v54  ;;  %v306_v19 = vld [vmem:[%s1084_s24 + $0x360] sm:$0xff]  ;;  %v305_v23 = vld [vmem:[%s1084_s24 + $0x358] sm:$0xff]  ;;  %v288_v24 = vld [vmem:[%s1084_s24 + $0x2d0] sm:$0xff] }
  0x2b   : > { %907 = vmatprep.subr.mxu1 %v248_v55  ;;  %864 = vmatpush3.msra.mxu0 %v200_v56  ;;  %v320_v25 = vld [vmem:[%s1084_s24 + $0x3d0] sm:$0xff]  ;;  %v287_v28 = vld [vmem:[%s1084_s24 + $0x2c8] sm:$0xff]  ;;  %v286_v32 = vld [vmem:[%s1084_s24 + $0x2c0] sm:$0xff] }
  0x2c   : > { %908 = vmatpush3.msra.mxu1 %v232_v57  ;;  %865 = vmatprep.subr.mxu0 %v215_v58  ;;  %v272_v26 = vld [vmem:[%s1084_s24 + $0x250] sm:$0xff]  ;;  %v319_v29 = vld [vmem:[%s1084_s24 + $0x3c8] sm:$0xff]  ;;  %v318_v33 = vld [vmem:[%s1084_s24 + $0x3c0] sm:$0xff] }
  0x2d   : > { %909 = vmatprep.subr.mxu1 %v247_v59  ;;  %866 = vmatpush3.msra.mxu0 %v199_v60  ;;  %v304_v27 = vld [vmem:[%s1084_s24 + $0x350] sm:$0xff]  ;;  %v271_v30 = vld [vmem:[%s1084_s24 + $0x248] sm:$0xff]  ;;  %v270_v34 = vld [vmem:[%s1084_s24 + $0x240] sm:$0xff] }
  0x2e   : > { %910 = vmatpush3.msra.mxu1 %v231_v61  ;;  %867 = vmatprep.subr.mxu0 %v214_v62  ;;  %v303_v31 = vld [vmem:[%s1084_s24 + $0x348] sm:$0xff]  ;;  %v302_v35 = vld [vmem:[%s1084_s24 + $0x340] sm:$0xff]  ;;  %v285_v36 = vld [vmem:[%s1084_s24 + $0x2b8] sm:$0xff] }
  0x2f   : > { %911 = vmatprep.subr.mxu1 %v246_v63  ;;  %868 = vmatpush3.msra.mxu0 %v198_v0  ;;  %v317_v37 = vld [vmem:[%s1084_s24 + $0x3b8] sm:$0xff]  ;;  %v335_v38 = vld [vmem:[%s1342_s1 + $0x48] sm:$0xff]  ;;  %v334_v42 = vld [vmem:[%s1342_s1 + $0x40] sm:$0xff] }
  0x30   : > { %912 = vmatpush3.msra.mxu1 %v230_v1  ;;  %423 = vmatmul.mubr.f32.vlgmr.msra.gmra.mxu0 %v326_v2  ;;  %v337_v39 = vld [vmem:[%s1342_s1 + $0x58] sm:$0xff]  ;;  %v336_v43 = vld [vmem:[%s1342_s1 + $0x50] sm:$0xff]  ;;  %v283_v48 = vld [vmem:[%s1084_s24 + $0x2a8] sm:$0xff] }
  0x31   : > { %508 = vmatmul.mubr.f32.vlgmr.msra.gmra.mxu1 %v328_v3  ;;  %925 = vmatprep.subr.mxu0 %v293_v4  ;;  %v269_v40 = vld [vmem:[%s1084_s24 + $0x238] sm:$0xff]  ;;  %v284_v44 = vld [vmem:[%s1084_s24 + $0x2b0] sm:$0xff]  ;;  %v315_v49 = vld [vmem:[%s1084_s24 + $0x3a8] sm:$0xff] }
  0x32   : > { %969 = vmatprep.subr.mxu1 %v325_v5  ;;  %926 = vmatpush3.msra.mxu0 %v277_v6  ;;  %v301_v41 = vld [vmem:[%s1084_s24 + $0x338] sm:$0xff]  ;;  %v316_v45 = vld [vmem:[%s1084_s24 + $0x3b0] sm:$0xff]  ;;  %v343_v50 = vld [vmem:[%s1342_s1 + $0x88] sm:$0xff] }
  0x33   : > { %970 = vmatpush3.msra.mxu1 %v309_v7  ;;  %927 = vmatprep.subr.mxu0 %v292_v8  ;;  %v268_v46 = vld [vmem:[%s1084_s24 + $0x230] sm:$0xff]  ;;  %v345_v51 = vld [vmem:[%s1342_s1 + $0x98] sm:$0xff]  ;;  %v267_v52 = vld [vmem:[%s1084_s24 + $0x228] sm:$0xff] }
  0x34   : > { %971 = vmatprep.subr.mxu1 %v324_v9  ;;  %928 = vmatpush3.msra.mxu0 %v276_v10  ;;  %v300_v47 = vld [vmem:[%s1084_s24 + $0x330] sm:$0xff]  ;;  %v299_v53 = vld [vmem:[%s1084_s24 + $0x328] sm:$0xff]  ;;  %v342_v54 = vld [vmem:[%s1342_s1 + $0x80] sm:$0xff] }
  0x35   : > { %972 = vmatpush3.msra.mxu1 %v308_v11  ;;  %929 = vmatprep.subr.mxu0 %v291_v12  ;;  %v344_v55 = vld [vmem:[%s1342_s1 + $0x90] sm:$0xff]  ;;  %v282_v56 = vld [vmem:[%s1084_s24 + $0x2a0] sm:$0xff]  ;;  %v281_v60 = vld [vmem:[%s1084_s24 + $0x298] sm:$0xff] }
  0x36   : > { %973 = vmatprep.subr.mxu1 %v323_v13  ;;  %930 = vmatpush3.msra.mxu0 %v275_v14  ;;  %v314_v57 = vld [vmem:[%s1084_s24 + $0x3a0] sm:$0xff]  ;;  %v313_v61 = vld [vmem:[%s1084_s24 + $0x398] sm:$0xff]  ;;  %v351_v62 = vld [vmem:[%s1342_s1 + $0xc8] sm:$0xff] }
  0x37   : > { %974 = vmatpush3.msra.mxu1 %v307_v15  ;;  %931 = vmatprep.subr.mxu0 %v290_v16  ;;  %v266_v58 = vld [vmem:[%s1084_s24 + $0x220] sm:$0xff]  ;;  %v353_v63 = vld [vmem:[%s1342_s1 + $0xd8] sm:$0xff]  ;;  %v352_v3 = vld [vmem:[%s1342_s1 + $0xd0] sm:$0xff] }
  0x38   : > { %975 = vmatprep.subr.mxu1 %v322_v17  ;;  %932 = vmatpush3.msra.mxu0 %v274_v18  ;;  %v298_v59 = vld [vmem:[%s1084_s24 + $0x320] sm:$0xff]  ;;  %v265_v0 = vld [vmem:[%s1084_s24 + $0x218] sm:$0xff]  ;;  %v280_v4 = vld [vmem:[%s1084_s24 + $0x290] sm:$0xff] }
  0x39   : > { %976 = vmatpush3.msra.mxu1 %v306_v19  ;;  %933 = vmatprep.subr.mxu0 %v289_v20  ;;  %v297_v1 = vld [vmem:[%s1084_s24 + $0x318] sm:$0xff]  ;;  %v350_v2 = vld [vmem:[%s1342_s1 + $0xc0] sm:$0xff]  ;;  %v312_v5 = vld [vmem:[%s1084_s24 + $0x390] sm:$0xff] }
  0x3a   : > { %977 = vmatprep.subr.mxu1 %v321_v21  ;;  %934 = vmatpush3.msra.mxu0 %v273_v22  ;;  %v264_v6 = vld [vmem:[%s1084_s24 + $0x210] sm:$0xff]  ;;  %v279_v8 = vld [vmem:[%s1084_s24 + $0x288] sm:$0xff]  ;;  %v278_v12 = vld [vmem:[%s1084_s24 + $0x280] sm:$0xff] }
  0x3b   : > { %978 = vmatpush3.msra.mxu1 %v305_v23  ;;  %935 = vmatprep.subr.mxu0 %v288_v24  ;;  %v296_v7 = vld [vmem:[%s1084_s24 + $0x310] sm:$0xff]  ;;  %v311_v9 = vld [vmem:[%s1084_s24 + $0x388] sm:$0xff]  ;;  %v310_v13 = vld [vmem:[%s1084_s24 + $0x380] sm:$0xff] }
  0x3c   : > { %979 = vmatprep.subr.mxu1 %v320_v25  ;;  %936 = vmatpush3.msra.mxu0 %v272_v26  ;;  %v263_v10 = vld [vmem:[%s1084_s24 + $0x208] sm:$0xff]  ;;  %v262_v14 = vld [vmem:[%s1084_s24 + $0x200] sm:$0xff]  ;;  %v333_v17 = vld [vmem:[%s1342_s1 + $0x38] sm:$0xff] }
  0x3d   : > { %980 = vmatpush3.msra.mxu1 %v304_v27  ;;  %937 = vmatprep.subr.mxu0 %v287_v28  ;;  %v295_v11 = vld [vmem:[%s1084_s24 + $0x308] sm:$0xff]  ;;  %v294_v16 = vld [vmem:[%s1084_s24 + $0x300] sm:$0xff]  ;;  %v332_v19 = vld [vmem:[%s1342_s1 + $0x30] sm:$0xff] }
  0x3e   : > { %981 = vmatprep.subr.mxu1 %v319_v29  ;;  %938 = vmatpush3.msra.mxu0 %v271_v30  ;;  %v331_v15 = vld [vmem:[%s1342_s1 + $0x28] sm:$0xff]  ;;  %v330_v18 = vld [vmem:[%s1342_s1 + $0x20] sm:$0xff]  ;;  %v341_v21 = vld [vmem:[%s1342_s1 + $0x78] sm:$0xff] }
  0x3f   : > { %982 = vmatpush3.msra.mxu1 %v303_v31  ;;  %939 = vmatprep.subr.mxu0 %v286_v32  ;;  %v339_v20 = vld [vmem:[%s1342_s1 + $0x68] sm:$0xff]  ;;  %v338_v22 = vld [vmem:[%s1342_s1 + $0x60] sm:$0xff]  ;;  %v340_v23 = vld [vmem:[%s1342_s1 + $0x70] sm:$0xff] }
  0x40   : > { %983 = vmatprep.subr.mxu1 %v318_v33  ;;  %940 = vmatpush3.msra.mxu0 %v270_v34  ;;  %v347_v24 = vld [vmem:[%s1342_s1 + $0xa8] sm:$0xff]  ;;  %v349_v25 = vld [vmem:[%s1342_s1 + $0xb8] sm:$0xff]  ;;  %v346_v26 = vld [vmem:[%s1342_s1 + $0xa0] sm:$0xff] }
  0x41   : > { %984 = vmatpush3.msra.mxu1 %v302_v35  ;;  %941 = vmatprep.subr.mxu0 %v285_v36  ;;  %v348_v27 = vld [vmem:[%s1342_s1 + $0xb0] sm:$0xff]  ;;  %v355_v28 = vld [vmem:[%s1342_s1 + $0xe8] sm:$0xff]  ;;  %v357_v29 = vld [vmem:[%s1342_s1 + $0xf8] sm:$0xff] }
  0x42   : > { %985 = vmatprep.subr.mxu1 %v317_v37  ;;  %427 = vmatprep.mubr.f32.mxu0 %v335_v38  ;;  %v354_v30 = vld [vmem:[%s1342_s1 + $0xe0] sm:$0xff]  ;;  %v356_v31 = vld [vmem:[%s1342_s1 + $0xf0] sm:$0xff] }
  0x43   : > { %512 = vmatprep.mubr.f32.mxu1 %v337_v39  ;;  %942 = vmatpush3.msra.mxu0 %v269_v40 }
  0x44   : > { %986 = vmatpush3.msra.mxu1 %v301_v41  ;;  %428 = vmatmul.mubr.f32.gmra.mxu0 %v334_v42 }
  0x45   : > { %513 = vmatmul.mubr.f32.gmra.mxu1 %v336_v43  ;;  %943 = vmatprep.subr.mxu0 %v284_v44 }
  0x46   : > { %987 = vmatprep.subr.mxu1 %v316_v45  ;;  %944 = vmatpush3.msra.mxu0 %v268_v46 }
  0x47   : > { %988 = vmatpush3.msra.mxu1 %v300_v47  ;;  %945 = vmatprep.subr.mxu0 %v283_v48 }
  0x48   : > { %989 = vmatprep.subr.mxu1 %v315_v49  ;;  %432 = vmatprep.mubr.f32.mxu0 %v343_v50 }
  0x49   : > { %517 = vmatprep.mubr.f32.mxu1 %v345_v51  ;;  %946 = vmatpush3.msra.mxu0 %v267_v52 }
  0x4a   : > { %990 = vmatpush3.msra.mxu1 %v299_v53  ;;  %433 = vmatmul.mubr.f32.gmra.mxu0 %v342_v54 }
  0x4b   : > { %518 = vmatmul.mubr.f32.gmra.mxu1 %v344_v55  ;;  %947 = vmatprep.subr.mxu0 %v282_v56 }
  0x4c   : > { %991 = vmatprep.subr.mxu1 %v314_v57  ;;  %948 = vmatpush3.msra.mxu0 %v266_v58 }
  0x4d   : > { %992 = vmatpush3.msra.mxu1 %v298_v59  ;;  %949 = vmatprep.subr.mxu0 %v281_v60 }
  0x4e   : > { %993 = vmatprep.subr.mxu1 %v313_v61  ;;  %437 = vmatprep.mubr.f32.mxu0 %v351_v62 }
  0x4f   : > { %522 = vmatprep.mubr.f32.mxu1 %v353_v63  ;;  %950 = vmatpush3.msra.mxu0 %v265_v0 }
  0x50   : > { %994 = vmatpush3.msra.mxu1 %v297_v1  ;;  %438 = vmatmul.mubr.f32.gmra.mxu0 %v350_v2 }
  0x51   : > { %523 = vmatmul.mubr.f32.gmra.mxu1 %v352_v3  ;;  %951 = vmatprep.subr.mxu0 %v280_v4 }
  0x52   : > { %995 = vmatprep.subr.mxu1 %v312_v5  ;;  %952 = vmatpush3.msra.mxu0 %v264_v6 }
  0x53   : > { %996 = vmatpush3.msra.mxu1 %v296_v7  ;;  %953 = vmatprep.subr.mxu0 %v279_v8 }
  0x54   : > { %997 = vmatprep.subr.mxu1 %v311_v9  ;;  %954 = vmatpush3.msra.mxu0 %v263_v10 }
  0x55   : > { %998 = vmatpush3.msra.mxu1 %v295_v11  ;;  %955 = vmatprep.subr.mxu0 %v278_v12 }
  0x56   : > { %999 = vmatprep.subr.mxu1 %v310_v13  ;;  %956 = vmatpush3.msra.mxu0 %v262_v14 }
  0x57   : > { %592 = vmatprep.mubr.f32.mxu0 %v331_v15  ;;  %1000 = vmatpush3.msra.mxu1 %v294_v16 }
  0x58   : > { %677 = vmatprep.mubr.f32.mxu1 %v333_v17  ;;  %593 = vmatmul.mubr.f32.vlgmr.msra.gmra.mxu0 %v330_v18 }
  0x59   : > { %678 = vmatmul.mubr.f32.vlgmr.msra.gmra.mxu1 %v332_v19  ;;  %597 = vmatprep.mubr.f32.mxu0 %v339_v20 }
  0x5a   : > { %682 = vmatprep.mubr.f32.mxu1 %v341_v21 }
  0x5c   : > { %598 = vmatmul.mubr.f32.gmra.mxu0 %v338_v22 }
  0x5d   : > { %683 = vmatmul.mubr.f32.gmra.mxu1 %v340_v23  ;;  %602 = vmatprep.mubr.f32.mxu0 %v347_v24 }
  0x5e   : > { %687 = vmatprep.mubr.f32.mxu1 %v349_v25 }
  0x60   : > { %603 = vmatmul.mubr.f32.gmra.mxu0 %v346_v26 }
  0x61   : > { %688 = vmatmul.mubr.f32.gmra.mxu1 %v348_v27  ;;  %607 = vmatprep.mubr.f32.mxu0 %v355_v28 }
  0x62   : > { %692 = vmatprep.mubr.f32.mxu1 %v357_v29 }
  0x64   : > { %608 = vmatmul.mubr.f32.gmra.mxu0 %v354_v30 }
  0x65   : > { %693 = vmatmul.mubr.f32.gmra.mxu1 %v356_v31 }
  0xf0   : > { %v869_v32 = vpop.f32.mrf.mxu0 }
  0xf1   : > { %v913_v33 = vpop.f32.mrf.mxu1 }
  0xf2   : > { %v870_v34 = vpop.f32.mrf.mxu0 }
  0xf3   : > { %v914_v35 = vpop.f32.mrf.mxu1  ;;  %v871_v56 = vadd.f32 %v870_v34, %v869_v32 }
  0xf4   : > { %v915_v57 = vadd.f32 %v914_v35, %v913_v33 }
  0xf6   : > { %v510_v3 = vadd.f32 %v915_v57, %v871_v56 }
 0x104   : > { %v872_v36 = vpop.f32.mrf.mxu0 }
 0x105   : > { %v916_v37 = vpop.f32.mrf.mxu1 }
 0x106   : > { %v873_v38 = vpop.f32.mrf.mxu0 }
 0x107   : > { %v917_v39 = vpop.f32.mrf.mxu1  ;;  %v874_v52 = vadd.f32 %v873_v38, %v872_v36 }
 0x108   : > { %v918_v53 = vadd.f32 %v917_v39, %v916_v37 }
 0x10a   : > { %v875_v40 = vpop.f32.mrf.mxu0  ;;  %v515_v62 = vadd.f32 %v918_v53, %v874_v52 }
 0x10b   : > { %v919_v41 = vpop.f32.mrf.mxu1 }
 0x10c   : > { %v876_v42 = vpop.f32.mrf.mxu0 }
 0x10d   : > { %v920_v43 = vpop.f32.mrf.mxu1  ;;  %v877_v58 = vadd.f32 %v876_v42, %v875_v40 }
 0x10e   : > { %v921_v59 = vadd.f32 %v920_v43, %v919_v41 }
 0x110   : > { %v878_v44 = vpop.f32.mrf.mxu0  ;;  %v520_v5 = vadd.f32 %v921_v59, %v877_v58  ;;  %v745_v59 = vld [vmem:[%s1343_s2] sm:$0xff] }
 0x111   : > { %v922_v45 = vpop.f32.mrf.mxu1 }
 0x112   : > { %v879_v46 = vpop.f32.mrf.mxu0 }
 0x113   : > { %v923_v47 = vpop.f32.mrf.mxu1  ;;  %v880_v6 = vadd.f32 %v879_v46, %v878_v44 }
 0x114   : > { %v924_v9 = vadd.f32 %v923_v47, %v922_v45 }
 0x116   : > { %v525_v21 = vadd.f32 %v924_v9, %v880_v6  ;;  %v755_v6 = vld [vmem:[%s1344_s3 + $0x10] sm:$0xff] }
 0x118   : > { %v957_v48 = vpop.f32.mrf.mxu0 }
 0x119   : > { %v1001_v49 = vpop.f32.mrf.mxu1 }
 0x11a   : > { %v958_v50 = vpop.f32.mrf.mxu0 }
 0x11b   : > { %v1002_v51 = vpop.f32.mrf.mxu1  ;;  %v959_v63 = vadd.f32 %v958_v50, %v957_v48 }
 0x11c   : > { %v960_v54 = vpop.f32.mrf.mxu0  ;;  %v1003_v15 = vadd.f32 %v1002_v51, %v1001_v49 }
 0x11d   : > { %v1004_v55 = vpop.f32.mrf.mxu1  ;;  %v595_v10 = vadd.f32 %v959_v63, %v510_v3  ;;  %v748_v63 = vld [vmem:[%s1343_s2 + $0x18] sm:$0xff] }
 0x11e   : > { %v961_v60 = vpop.f32.mrf.mxu0 }
 0x11f   : > { %v1005_v61 = vpop.f32.mrf.mxu1  ;;  %v962_v0 = vadd.f32 %v961_v60, %v960_v54  ;;  %v680_v22 = vadd.f32 %v1003_v15, %v595_v10 }
 0x120   : > { %v963_v1 = vpop.f32.mrf.mxu0  ;;  %v1006_v11 = vadd.f32 %v1005_v61, %v1004_v55  ;;  %v746_v61 = vld [vmem:[%s1343_s2 + $0x8] sm:$0xff] }
 0x121   : > { %v1007_v2 = vpop.f32.mrf.mxu1  ;;  %v600_v4 = vadd.f32 %v962_v0, %v515_v62  ;;  %v711_v29 = vmul.f32 %v680_v22, %v680_v22  ;;  %v747_v62 = vld [vmem:[%s1343_s2 + $0x10] sm:$0xff] }
 0x122   : > { %v964_v7 = vpop.f32.mrf.mxu0 }
 0x123   : > { %v1008_v8 = vpop.f32.mrf.mxu1  ;;  %v965_v12 = vadd.f32 %v964_v7, %v963_v1  ;;  %v1304_v16 = vadd.f32 %v1006_v11, %v600_v4  ;;  %v753_v4 = vld [vmem:[%s1344_s3] sm:$0xff]  ;;  %v756_v7 = vld [vmem:[%s1344_s3 + $0x18] sm:$0xff] }
 0x124   : > { %v966_v13 = vpop.f32.mrf.mxu0  ;;  %v1009_v18 = vadd.f32 %v1008_v8, %v1007_v2 }
 0x125   : > { %v1010_v14 = vpop.f32.mrf.mxu1  ;;  %v605_v17 = vadd.f32 %v965_v12, %v520_v5  ;;  %v712_v25 = vmul.f32 %v1304_v16, %v1304_v16  ;;  %v698_v28 = vadd.f32 %v1304_v16, %v680_v22  ;;  %v754_v5 = vld [vmem:[%s1344_s3 + $0x8] sm:$0xff] }
 0x126   : > { %v967_v19 = vpop.f32.mrf.mxu0 }
 0x127   : > { %v1011_v20 = vpop.f32.mrf.mxu1  ;;  %v690_v23 = vadd.f32 %v1009_v18, %v605_v17  ;;  %v968_v24 = vadd.f32 %v967_v19, %v966_v13  ;;  %v715_v35 = vadd.f32 %v712_v25, %v711_v29 }
 0x128   : > { %v1012_v27 = vadd.f32 %v1011_v20, %v1010_v14 }
 0x129   : > { %v610_v26 = vadd.f32 %v968_v24, %v525_v21  ;;  %v699_v31 = vadd.f32 %v698_v28, %v690_v23  ;;  %v713_v32 = vmul.f32 %v690_v23, %v690_v23 }
 0x12b   : > { %v695_v30 = vadd.f32 %v1012_v27, %v610_v26  ;;  %v716_v36 = vadd.f32 %v715_v35, %v713_v32 }
 0x12d   : > { %v700_v33 = vadd.f32 %v699_v31, %v695_v30  ;;  %v714_v34 = vmul.f32 %v695_v30, %v695_v30 }
 0x12f   : > { %701 = vadd.xlane.f32.xlu0 %v700_v33  ;;  %v717_v37 = vadd.f32 %v716_v36, %v714_v34 }
 0x133   : > { %718 = vadd.xlane.f32.xlu0 %v717_v37 }
 0x1b8   : > { %v702_v38 = vpop.xlane.xlu0 %701 }
 0x1b9   : > { %v703_v39 = vrot.slane %v702_v38, 4 }
 0x1bb   : > { %v704_v40 = vadd.f32 %v703_v39, %v702_v38 }
 0x1bc   : > { %v719_v41 = vpop.xlane.xlu0 %718 }
 0x1bd   : > { %v705_v42 = vrot.slane %v704_v40, 2  ;;  %v720_v43 = vrot.slane %v719_v41, 4 }
 0x1bf   : > { %v721_v44 = vadd.f32 %v720_v43, %v719_v41  ;;  %v706_v45 = vadd.f32 %v705_v42, %v704_v40 }
 0x1c1   : > { %v722_v46 = vrot.slane %v721_v44, 2  ;;  %v707_v47 = vrot.slane %v706_v45, 1 }
 0x1c3   : > { %v723_v48 = vadd.f32 %v722_v46, %v721_v44  ;;  %v708_v49 = vadd.f32 %v707_v47, %v706_v45 }
 0x1c5   : > { %1013 = vpush %v708_v49  ;;  %v724_v50 = vrot.slane %v723_v48, 1 }
 0x1c7   : > { %v725_v51 = vadd.f32 %v724_v50, %v723_v48 }
 0x1c9   : > { %1015 = vpush %v725_v51 }
 0x1f6   : > { %s1014_s12 = spop %1013 }
 0x1f7   : > { %s710_s13 = smul.f32 0.0009765625, %s1014_s12 }
 0x1f9   : > { %s728_s24 = smul.f32 %s710_s13, %s710_s13  ;;  %v731_v54 = vstv %s710_s13 }
 0x1fa   : > { %s1016_s14 = spop %1015  ;;  %v732_v55 = vsub.f32 %v680_v22, %v731_v54  ;;  %v733_v56 = vsub.f32 %v1304_v16, %v731_v54  ;;  %v734_v57 = vsub.f32 %v690_v23, %v731_v54  ;;  %v735_v58 = vsub.f32 %v695_v30, %v731_v54 }
 0x1fb   : > { %s727_s17 = smul.f32 0.0009765625, %s1016_s14 }
 0x1fd   : > { %s729_s18 = ssub.f32 %s727_s17, %s728_s24  ;;  %s836_s24 = sshll.u32 %s1347_s16, 5 }
 0x1ff   : > { %s730_s20 = smax.f32 %s1038_s19, %s729_s18  ;;  %s197_s18 = scalar_lea.vmem %s1345_s4, %s836_s24 }
 0x200   : > { %s736_s21 = sadd.f32 1e-05, %s730_s20 }
 0x202   : > { %v737_v52 = vstv %s736_s21 }
 0x203   : > { %1028 = vrsqrt.f32 %v737_v52 }
 0x210   : > { %v1029_v53 = vpop.eup %1028 }
 0x211   : > { %1017 = vpush %v1029_v53 }
 0x242   : > { %s1018_s22 = spop %1017 }
 0x243   : > { %v740_v60 = vstv %s1018_s22 }
 0x244   : > { %v741_v0 = vmul.f32 %v740_v60, %v732_v55  ;;  %v742_v1 = vmul.f32 %v740_v60, %v733_v56  ;;  %v743_v2 = vmul.f32 %v740_v60, %v734_v57  ;;  %v744_v3 = vmul.f32 %v740_v60, %v735_v58 }
 0x246   : > { %v749_v8 = vmul.f32 %v745_v59, %v741_v0  ;;  %v750_v9 = vmul.f32 %v746_v61, %v742_v1  ;;  %v751_v10 = vmul.f32 %v747_v62, %v743_v2  ;;  %v752_v11 = vmul.f32 %v748_v63, %v744_v3 }
 0x248   : > { %v757_v12 = vadd.f32 %v753_v4, %v749_v8  ;;  %v758_v13 = vadd.f32 %v754_v5, %v750_v9  ;;  %v759_v14 = vadd.f32 %v755_v6, %v751_v10  ;;  %v760_v15 = vadd.f32 %v756_v7, %v752_v11 }
 0x24a   : > { %v761_v16 = vmax.f32 %v757_v12, 0.0  ;;  %v762_v17 = vmax.f32 %v758_v13, 0.0  ;;  %v763_v18 = vmax.f32 %v759_v14, 0.0  ;;  %v764_v19 = vmax.f32 %v760_v15, 0.0 }
 0x24c   : > { %765 = vst [vmem:[%s197_s18] sm:$0xff] %v761_v16  ;;  %766 = vst [vmem:[%s197_s18 + $0x8] sm:$0xff] %v762_v17 }
 0x24d   : > { %767 = vst [vmem:[%s197_s18 + $0x10] sm:$0xff] %v763_v18  ;;  %768 = vst [vmem:[%s197_s18 + $0x18] sm:$0xff] %v764_v19 }
 0x24e PF: > { %s14_s15 = sadd.s32 1, %s1036_s15  }
 0x24f   : > { %p11_p4 = scmp.ge.s32.totalorder %s14_s15, 4  }
 0x251   :  { %13 = sbr.rel (!%p11_p4) target bundleno = 1 (0x1), region = 66 }

// kernel: netg_forward.7
= control target key start
LH: loop header
LB: loop body
LE: loop exit
PB: predicated region body
PF: predicated region fallthrough
CT: control target
= control target key end

     0   :  { %s822_s15 = smov 0   ;;  %s1059_s0 = inlined_call_operand.vmem [shape: f32[2,640,256], index: 0, kind: input, shape index: {}]   ;;  %s1060_s1 = inlined_call_operand.vmem [shape: f32[16,640], index: 1, kind: input, shape index: {}]   ;;  %s1061_s2 = inlined_call_operand.vmem [shape: f32[16,256], index: 2, kind: input, shape index: {}]   ;;  %s1062_s3 = inlined_call_operand.vmem [shape: f32[16,256], index: 3, kind: input, shape index: {}]   ;;  %s1063_s4 = inlined_call_operand.vmem [shape: f32[2,16,256], index: 4, kind: output, shape index: {}]  }
   0x1 LB: > { %s725_s16 = sadd.s32 4294967295, %s793_s15   ;;  %p729_p0 = scmp.ge.s32.totalorder %s793_s15, 1  ;;  %s793_s15 = sphi %s822_s15, %s14_s15  }
   0x2   : > { %p162_p1 = scmp.lt.s32.totalorder %s793_s15, 3 }
   0x4   : > { %p163_p2 = pnand %p729_p0, %p162_p1 }
   0x5   : > { %p188_p3 = scmp.lt.s32.totalorder (!%p163_p2), %s725_s16, 1  ;;  %s796_s23 = smov (!%p163_p2), 0.0  }
   0x6   : > { %166 = sbr.rel (%p163_p2) target bundleno = 606 (0x25e), region = 36 }
   0xb   : > { %v359_v0 = vld [vmem:[%s1060_s1 + $0x8] sm:$0xff]  ;;  %v361_v1 = vld [vmem:[%s1060_s1 + $0x18] sm:$0xff]  ;;  %s1065_s16 = smov (!%p188_p3, %s725_s16), 1 }
   0xc   : > { %432 = vmatprep.mubr.f32.mxu0 %v359_v0  ;;  %509 = vmatprep.mubr.f32.mxu1 %v361_v1  ;;  %s768_s21 = smul.u32 1280, %s1065_s16 }
   0xe   : > { %s842_s24 = scalar_lea.vmem %s1059_s0, %s768_s21 }
   0xf   : > { %v229_v2 = vld [vmem:[%s842_s24 + $0xf8] sm:$0xff]  ;;  %v228_v4 = vld [vmem:[%s842_s24 + $0xf0] sm:$0xff]  ;;  %v227_v6 = vld [vmem:[%s842_s24 + $0xe8] sm:$0xff] }
  0x10   : > { %v293_v3 = vld [vmem:[%s842_s24 + $0x2f8] sm:$0xff]  ;;  %368 = vmatprep.subr.mxu0 %v229_v2  ;;  %v292_v5 = vld [vmem:[%s842_s24 + $0x2f0] sm:$0xff]  ;;  %v291_v7 = vld [vmem:[%s842_s24 + $0x2e8] sm:$0xff] }
  0x11   : > { %445 = vmatprep.subr.mxu1 %v293_v3  ;;  %369 = vmatpush1.msra.mxu0 %v228_v4  ;;  %v226_v8 = vld [vmem:[%s842_s24 + $0xe0] sm:$0xff]  ;;  %v225_v10 = vld [vmem:[%s842_s24 + $0xd8] sm:$0xff]  ;;  %v224_v12 = vld [vmem:[%s842_s24 + $0xd0] sm:$0xff] }
  0x12   : > { %446 = vmatpush1.msra.mxu1 %v292_v5  ;;  %v290_v9 = vld [vmem:[%s842_s24 + $0x2e0] sm:$0xff]  ;;  %370 = vmatprep.subr.mxu0 %v227_v6  ;;  %v289_v11 = vld [vmem:[%s842_s24 + $0x2d8] sm:$0xff]  ;;  %v288_v13 = vld [vmem:[%s842_s24 + $0x2d0] sm:$0xff] }
  0x13   : > { %447 = vmatprep.subr.mxu1 %v291_v7  ;;  %371 = vmatpush1.msra.mxu0 %v226_v8  ;;  %v223_v14 = vld [vmem:[%s842_s24 + $0xc8] sm:$0xff]  ;;  %v222_v16 = vld [vmem:[%s842_s24 + $0xc0] sm:$0xff]  ;;  %v221_v18 = vld [vmem:[%s842_s24 + $0xb8] sm:$0xff] }
  0x14   : > { %448 = vmatpush1.msra.mxu1 %v290_v9  ;;  %v287_v15 = vld [vmem:[%s842_s24 + $0x2c8] sm:$0xff]  ;;  %372 = vmatprep.subr.mxu0 %v225_v10  ;;  %v286_v17 = vld [vmem:[%s842_s24 + $0x2c0] sm:$0xff]  ;;  %v285_v19 = vld [vmem:[%s842_s24 + $0x2b8] sm:$0xff] }
  0x15   : > { %449 = vmatprep.subr.mxu1 %v289_v11  ;;  %373 = vmatpush1.msra.mxu0 %v224_v12  ;;  %v220_v20 = vld [vmem:[%s842_s24 + $0xb0] sm:$0xff]  ;;  %v219_v22 = vld [vmem:[%s842_s24 + $0xa8] sm:$0xff]  ;;  %v218_v24 = vld [vmem:[%s842_s24 + $0xa0] sm:$0xff] }
  0x16   : > { %450 = vmatpush1.msra.mxu1 %v288_v13  ;;  %374 = vmatprep.subr.mxu0 %v223_v14  ;;  %v284_v21 = vld [vmem:[%s842_s24 + $0x2b0] sm:$0xff]  ;;  %v283_v23 = vld [vmem:[%s842_s24 + $0x2a8] sm:$0xff]  ;;  %v282_v25 = vld [vmem:[%s842_s24 + $0x2a0] sm:$0xff] }
  0x17   : > { %451 = vmatprep.subr.mxu1 %v287_v15  ;;  %375 = vmatpush1.msra.mxu0 %v222_v16  ;;  %v217_v26 = vld [vmem:[%s842_s24 + $0x98] sm:$0xff]  ;;  %v216_v28 = vld [vmem:[%s842_s24 + $0x90] sm:$0xff]  ;;  %v215_v30 = vld [vmem:[%s842_s24 + $0x88] sm:$0xff] }
  0x18   : > { %452 = vmatpush1.msra.mxu1 %v286_v17  ;;  %376 = vmatprep.subr.mxu0 %v221_v18  ;;  %v281_v27 = vld [vmem:[%s842_s24 + $0x298] sm:$0xff]  ;;  %v280_v29 = vld [vmem:[%s842_s24 + $0x290] sm:$0xff]  ;;  %v279_v31 = vld [vmem:[%s842_s24 + $0x288] sm:$0xff] }
  0x19   : > { %453 = vmatprep.subr.mxu1 %v285_v19  ;;  %377 = vmatpush1.msra.mxu0 %v220_v20  ;;  %v214_v32 = vld [vmem:[%s842_s24 + $0x80] sm:$0xff]  ;;  %v213_v34 = vld [vmem:[%s842_s24 + $0x78] sm:$0xff]  ;;  %v212_v36 = vld [vmem:[%s842_s24 + $0x70] sm:$0xff] }
  0x1a   : > { %454 = vmatpush1.msra.mxu1 %v284_v21  ;;  %378 = vmatprep.subr.mxu0 %v219_v22  ;;  %v278_v33 = vld [vmem:[%s842_s24 + $0x280] sm:$0xff]  ;;  %v277_v35 = vld [vmem:[%s842_s24 + $0x278] sm:$0xff]  ;;  %v276_v37 = vld [vmem:[%s842_s24 + $0x270] sm:$0xff] }
  0x1b   : > { %455 = vmatprep.subr.mxu1 %v283_v23  ;;  %379 = vmatpush1.msra.mxu0 %v218_v24  ;;  %v211_v38 = vld [vmem:[%s842_s24 + $0x68] sm:$0xff]  ;;  %v210_v40 = vld [vmem:[%s842_s24 + $0x60] sm:$0xff]  ;;  %v209_v42 = vld [vmem:[%s842_s24 + $0x58] sm:$0xff] }
  0x1c   : > { %456 = vmatpush1.msra.mxu1 %v282_v25  ;;  %380 = vmatprep.subr.mxu0 %v217_v26  ;;  %v275_v39 = vld [vmem:[%s842_s24 + $0x268] sm:$0xff]  ;;  %v274_v41 = vld [vmem:[%s842_s24 + $0x260] sm:$0xff]  ;;  %v273_v43 = vld [vmem:[%s842_s24 + $0x258] sm:$0xff] }
  0x1d   : > { %457 = vmatprep.subr.mxu1 %v281_v27  ;;  %381 = vmatpush1.msra.mxu0 %v216_v28  ;;  %v208_v44 = vld [vmem:[%s842_s24 + $0x50] sm:$0xff]  ;;  %v207_v46 = vld [vmem:[%s842_s24 + $0x48] sm:$0xff]  ;;  %v206_v48 = vld [vmem:[%s842_s24 + $0x40] sm:$0xff] }
  0x1e   : > { %458 = vmatpush1.msra.mxu1 %v280_v29  ;;  %382 = vmatprep.subr.mxu0 %v215_v30  ;;  %v272_v45 = vld [vmem:[%s842_s24 + $0x250] sm:$0xff]  ;;  %v271_v47 = vld [vmem:[%s842_s24 + $0x248] sm:$0xff]  ;;  %v270_v49 = vld [vmem:[%s842_s24 + $0x240] sm:$0xff] }
  0x1f   : > { %459 = vmatprep.subr.mxu1 %v279_v31  ;;  %383 = vmatpush1.msra.mxu0 %v214_v32  ;;  %v205_v50 = vld [vmem:[%s842_s24 + $0x38] sm:$0xff]  ;;  %v204_v52 = vld [vmem:[%s842_s24 + $0x30] sm:$0xff]  ;;  %v203_v54 = vld [vmem:[%s842_s24 + $0x28] sm:$0xff] }
  0x20   : > { %460 = vmatpush1.msra.mxu1 %v278_v33  ;;  %384 = vmatprep.subr.mxu0 %v213_v34  ;;  %v269_v51 = vld [vmem:[%s842_s24 + $0x238] sm:$0xff]  ;;  %v268_v53 = vld [vmem:[%s842_s24 + $0x230] sm:$0xff]  ;;  %v267_v55 = vld [vmem:[%s842_s24 + $0x228] sm:$0xff] }
  0x21   : > { %461 = vmatprep.subr.mxu1 %v277_v35  ;;  %385 = vmatpush1.msra.mxu0 %v212_v36  ;;  %v202_v56 = vld [vmem:[%s842_s24 + $0x20] sm:$0xff]  ;;  %v201_v58 = vld [vmem:[%s842_s24 + $0x18] sm:$0xff]  ;;  %v200_v60 = vld [vmem:[%s842_s24 + $0x10] sm:$0xff] }
  0x22   : > { %462 = vmatpush1.msra.mxu1 %v276_v37  ;;  %386 = vmatprep.subr.mxu0 %v211_v38  ;;  %v266_v57 = vld [vmem:[%s842_s24 + $0x220] sm:$0xff]  ;;  %v265_v59 = vld [vmem:[%s842_s24 + $0x218] sm:$0xff]  ;;  %v264_v61 = vld [vmem:[%s842_s24 + $0x210] sm:$0xff] }
  0x23   : > { %463 = vmatprep.subr.mxu1 %v275_v39  ;;  %387 = vmatpush1.msra.mxu0 %v210_v40  ;;  %v199_v62 = vld [vmem:[%s842_s24 + $0x8] sm:$0xff]  ;;  %v198_v0 = vld [vmem:[%s842_s24] sm:$0xff]  ;;  %v261_v2 = vld [vmem:[%s842_s24 + $0x1f8] sm:$0xff] }
  0x24   : > { %464 = vmatpush1.msra.mxu1 %v274_v41  ;;  %388 = vmatprep.subr.mxu0 %v209_v42  ;;  %v263_v63 = vld [vmem:[%s842_s24 + $0x208] sm:$0xff]  ;;  %v262_v1 = vld [vmem:[%s842_s24 + $0x200] sm:$0xff]  ;;  %v325_v3 = vld [vmem:[%s842_s24 + $0x3f8] sm:$0xff] }
  0x25   : > { %465 = vmatprep.subr.mxu1 %v273_v43  ;;  %389 = vmatpush1.msra.mxu0 %v208_v44  ;;  %v260_v4 = vld [vmem:[%s842_s24 + $0x1f0] sm:$0xff]  ;;  %v259_v6 = vld [vmem:[%s842_s24 + $0x1e8] sm:$0xff]  ;;  %v258_v8 = vld [vmem:[%s842_s24 + $0x1e0] sm:$0xff] }
  0x26   : > { %466 = vmatpush1.msra.mxu1 %v272_v45  ;;  %390 = vmatprep.subr.mxu0 %v207_v46  ;;  %v324_v5 = vld [vmem:[%s842_s24 + $0x3f0] sm:$0xff]  ;;  %v323_v7 = vld [vmem:[%s842_s24 + $0x3e8] sm:$0xff]  ;;  %v322_v9 = vld [vmem:[%s842_s24 + $0x3e0] sm:$0xff] }
  0x27   : > { %467 = vmatprep.subr.mxu1 %v271_v47  ;;  %391 = vmatpush1.msra.mxu0 %v206_v48  ;;  %v257_v10 = vld [vmem:[%s842_s24 + $0x1d8] sm:$0xff]  ;;  %v256_v12 = vld [vmem:[%s842_s24 + $0x1d0] sm:$0xff]  ;;  %v255_v14 = vld [vmem:[%s842_s24 + $0x1c8] sm:$0xff] }
  0x28   : > { %468 = vmatpush1.msra.mxu1 %v270_v49  ;;  %392 = vmatprep.subr.mxu0 %v205_v50  ;;  %v321_v11 = vld [vmem:[%s842_s24 + $0x3d8] sm:$0xff]  ;;  %v320_v13 = vld [vmem:[%s842_s24 + $0x3d0] sm:$0xff]  ;;  %v319_v15 = vld [vmem:[%s842_s24 + $0x3c8] sm:$0xff] }
  0x29   : > { %469 = vmatprep.subr.mxu1 %v269_v51  ;;  %393 = vmatpush1.msra.mxu0 %v204_v52  ;;  %v254_v16 = vld [vmem:[%s842_s24 + $0x1c0] sm:$0xff]  ;;  %v253_v18 = vld [vmem:[%s842_s24 + $0x1b8] sm:$0xff]  ;;  %v252_v20 = vld [vmem:[%s842_s24 + $0x1b0] sm:$0xff] }
  0x2a   : > { %470 = vmatpush1.msra.mxu1 %v268_v53  ;;  %394 = vmatprep.subr.mxu0 %v203_v54  ;;  %v318_v17 = vld [vmem:[%s842_s24 + $0x3c0] sm:$0xff]  ;;  %v317_v19 = vld [vmem:[%s842_s24 + $0x3b8] sm:$0xff]  ;;  %v316_v21 = vld [vmem:[%s842_s24 + $0x3b0] sm:$0xff] }
  0x2b   : > { %471 = vmatprep.subr.mxu1 %v267_v55  ;;  %395 = vmatpush1.msra.mxu0 %v202_v56  ;;  %v251_v22 = vld [vmem:[%s842_s24 + $0x1a8] sm:$0xff]  ;;  %v250_v24 = vld [vmem:[%s842_s24 + $0x1a0] sm:$0xff]  ;;  %v249_v26 = vld [vmem:[%s842_s24 + $0x198] sm:$0xff] }
  0x2c   : > { %472 = vmatpush1.msra.mxu1 %v266_v57  ;;  %396 = vmatprep.subr.mxu0 %v201_v58  ;;  %v315_v23 = vld [vmem:[%s842_s24 + $0x3a8] sm:$0xff]  ;;  %v314_v25 = vld [vmem:[%s842_s24 + $0x3a0] sm:$0xff]  ;;  %v313_v27 = vld [vmem:[%s842_s24 + $0x398] sm:$0xff] }
  0x2d   : > { %473 = vmatprep.subr.mxu1 %v265_v59  ;;  %397 = vmatpush1.msra.mxu0 %v200_v60  ;;  %v248_v28 = vld [vmem:[%s842_s24 + $0x190] sm:$0xff]  ;;  %v247_v30 = vld [vmem:[%s842_s24 + $0x188] sm:$0xff]  ;;  %v246_v32 = vld [vmem:[%s842_s24 + $0x180] sm:$0xff] }
  0x2e   : > { %474 = vmatpush1.msra.mxu1 %v264_v61  ;;  %398 = vmatprep.subr.mxu0 %v199_v62  ;;  %v312_v29 = vld [vmem:[%s842_s24 + $0x390] sm:$0xff]  ;;  %v311_v31 = vld [vmem:[%s842_s24 + $0x388] sm:$0xff]  ;;  %v310_v33 = vld [vmem:[%s842_s24 + $0x380] sm:$0xff] }
  0x2f   : > { %475 = vmatprep.subr.mxu1 %v263_v63  ;;  %399 = vmatpush1.msra.mxu0 %v198_v0  ;;  %v245_v34 = vld [vmem:[%s842_s24 + $0x178] sm:$0xff]  ;;  %v244_v36 = vld [vmem:[%s842_s24 + $0x170] sm:$0xff]  ;;  %v243_v38 = vld [vmem:[%s842_s24 + $0x168] sm:$0xff] }
  0x30   : > { %476 = vmatpush1.msra.mxu1 %v262_v1  ;;  %400 = vmatprep.subr.mxu0 %v261_v2  ;;  %v309_v35 = vld [vmem:[%s842_s24 + $0x378] sm:$0xff]  ;;  %v308_v37 = vld [vmem:[%s842_s24 + $0x370] sm:$0xff]  ;;  %v307_v39 = vld [vmem:[%s842_s24 + $0x368] sm:$0xff] }
  0x31   : > { %477 = vmatprep.subr.mxu1 %v325_v3  ;;  %401 = vmatpush2.msra.mxu0 %v260_v4  ;;  %v242_v40 = vld [vmem:[%s842_s24 + $0x160] sm:$0xff]  ;;  %v241_v42 = vld [vmem:[%s842_s24 + $0x158] sm:$0xff]  ;;  %v240_v44 = vld [vmem:[%s842_s24 + $0x150] sm:$0xff] }
  0x32   : > { %478 = vmatpush2.msra.mxu1 %v324_v5  ;;  %402 = vmatprep.subr.mxu0 %v259_v6  ;;  %v306_v41 = vld [vmem:[%s842_s24 + $0x360] sm:$0xff]  ;;  %v305_v43 = vld [vmem:[%s842_s24 + $0x358] sm:$0xff]  ;;  %v304_v45 = vld [vmem:[%s842_s24 + $0x350] sm:$0xff] }
  0x33   : > { %479 = vmatprep.subr.mxu1 %v323_v7  ;;  %403 = vmatpush2.msra.mxu0 %v258_v8  ;;  %v239_v46 = vld [vmem:[%s842_s24 + $0x148] sm:$0xff]  ;;  %v238_v48 = vld [vmem:[%s842_s24 + $0x140] sm:$0xff]  ;;  %v237_v50 = vld [vmem:[%s842_s24 + $0x138] sm:$0xff] }
  0x34   : > { %480 = vmatpush2.msra.mxu1 %v322_v9  ;;  %404 = vmatprep.subr.mxu0 %v257_v10  ;;  %v303_v47 = vld [vmem:[%s842_s24 + $0x348] sm:$0xff]  ;;  %v302_v49 = vld [vmem:[%s842_s24 + $0x340] sm:$0xff]  ;;  %v301_v51 = vld [vmem:[%s842_s24 + $0x338] sm:$0xff] }
  0x35   : > { %481 = vmatprep.subr.mxu1 %v321_v11  ;;  %405 = vmatpush2.msra.mxu0 %v256_v12  ;;  %v236_v52 = vld [vmem:[%s842_s24 + $0x130] sm:$0xff]  ;;  %v235_v54 = vld [vmem:[%s842_s24 + $0x128] sm:$0xff]  ;;  %v234_v56 = vld [vmem:[%s842_s24 + $0x120] sm:$0xff] }
  0x36   : > { %482 = vmatpush2.msra.mxu1 %v320_v13  ;;  %406 = vmatprep.subr.mxu0 %v255_v14  ;;  %v300_v53 = vld [vmem:[%s842_s24 + $0x330] sm:$0xff]  ;;  %v299_v55 = vld [vmem:[%s842_s24 + $0x328] sm:$0xff]  ;;  %v298_v57 = vld [vmem:[%s842_s24 + $0x320] sm:$0xff] }
  0x37   : > { %483 = vmatprep.subr.mxu1 %v319_v15  ;;  %407 = vmatpush2.msra.mxu0 %v254_v16  ;;  %v233_v58 = vld [vmem:[%s842_s24 + $0x118] sm:$0xff]  ;;  %v232_v60 = vld [vmem:[%s842_s24 + $0x110] sm:$0xff]  ;;  %v231_v62 = vld [vmem:[%s842_s24 + $0x108] sm:$0xff] }
  0x38   : > { %484 = vmatpush2.msra.mxu1 %v318_v17  ;;  %408 = vmatprep.subr.mxu0 %v253_v18  ;;  %v297_v59 = vld [vmem:[%s842_s24 + $0x318] sm:$0xff]  ;;  %v296_v61 = vld [vmem:[%s842_s24 + $0x310] sm:$0xff]  ;;  %v295_v63 = vld [vmem:[%s842_s24 + $0x308] sm:$0xff] }
  0x39   : > { %485 = vmatprep.subr.mxu1 %v317_v19  ;;  %409 = vmatpush2.msra.mxu0 %v252_v20  ;;  %v230_v0 = vld [vmem:[%s842_s24 + $0x100] sm:$0xff]  ;;  %v360_v3 = vld [vmem:[%s1060_s1 + $0x10] sm:$0xff]  ;;  %v357_v4 = vld [vmem:[%s842_s24 + $0x4f8] sm:$0xff] }
  0x3a   : > { %486 = vmatpush2.msra.mxu1 %v316_v21  ;;  %410 = vmatprep.subr.mxu0 %v251_v22  ;;  %v294_v1 = vld [vmem:[%s842_s24 + $0x300] sm:$0xff]  ;;  %v356_v5 = vld [vmem:[%s842_s24 + $0x4f0] sm:$0xff]  ;;  %v355_v6 = vld [vmem:[%s842_s24 + $0x4e8] sm:$0xff] }
  0x3b   : > { %487 = vmatprep.subr.mxu1 %v315_v23  ;;  %411 = vmatpush2.msra.mxu0 %v250_v24  ;;  %v358_v2 = vld [vmem:[%s1060_s1] sm:$0xff]  ;;  %v353_v8 = vld [vmem:[%s842_s24 + $0x4d8] sm:$0xff]  ;;  %v352_v9 = vld [vmem:[%s842_s24 + $0x4d0] sm:$0xff] }
  0x3c   : > { %488 = vmatpush2.msra.mxu1 %v314_v25  ;;  %412 = vmatprep.subr.mxu0 %v249_v26  ;;  %v354_v7 = vld [vmem:[%s842_s24 + $0x4e0] sm:$0xff]  ;;  %v351_v10 = vld [vmem:[%s842_s24 + $0x4c8] sm:$0xff]  ;;  %v349_v12 = vld [vmem:[%s842_s24 + $0x4b8] sm:$0xff] }
  0x3d   : > { %489 = vmatprep.subr.mxu1 %v313_v27  ;;  %413 = vmatpush2.msra.mxu0 %v248_v28  ;;  %v350_v11 = vld [vmem:[%s842_s24 + $0x4c0] sm:$0xff]  ;;  %v348_v13 = vld [vmem:[%s842_s24 + $0x4b0] sm:$0xff]  ;;  %v347_v14 = vld [vmem:[%s842_s24 + $0x4a8] sm:$0xff] }
  0x3e   : > { %490 = vmatpush2.msra.mxu1 %v312_v29  ;;  %414 = vmatprep.subr.mxu0 %v247_v30  ;;  %v346_v15 = vld [vmem:[%s842_s24 + $0x4a0] sm:$0xff]  ;;  %v345_v16 = vld [vmem:[%s842_s24 + $0x498] sm:$0xff]  ;;  %v344_v17 = vld [vmem:[%s842_s24 + $0x490] sm:$0xff] }
  0x3f   : > { %491 = vmatprep.subr.mxu1 %v311_v31  ;;  %415 = vmatpush2.msra.mxu0 %v246_v32  ;;  %v343_v18 = vld [vmem:[%s842_s24 + $0x488] sm:$0xff]  ;;  %v342_v19 = vld [vmem:[%s842_s24 + $0x480] sm:$0xff]  ;;  %v341_v20 = vld [vmem:[%s842_s24 + $0x478] sm:$0xff] }
  0x40   : > { %492 = vmatpush2.msra.mxu1 %v310_v33  ;;  %416 = vmatprep.subr.mxu0 %v245_v34  ;;  %v340_v21 = vld [vmem:[%s842_s24 + $0x470] sm:$0xff]  ;;  %v339_v22 = vld [vmem:[%s842_s24 + $0x468] sm:$0xff]  ;;  %v338_v23 = vld [vmem:[%s842_s24 + $0x460] sm:$0xff] }
  0x41   : > { %493 = vmatprep.subr.mxu1 %v309_v35  ;;  %417 = vmatpush2.msra.mxu0 %v244_v36  ;;  %v337_v24 = vld [vmem:[%s842_s24 + $0x458] sm:$0xff]  ;;  %v336_v25 = vld [vmem:[%s842_s24 + $0x450] sm:$0xff]  ;;  %v335_v26 = vld [vmem:[%s842_s24 + $0x448] sm:$0xff] }
  0x42   : > { %494 = vmatpush2.msra.mxu1 %v308_v37  ;;  %418 = vmatprep.subr.mxu0 %v243_v38  ;;  %v334_v27 = vld [vmem:[%s842_s24 + $0x440] sm:$0xff]  ;;  %v333_v28 = vld [vmem:[%s842_s24 + $0x438] sm:$0xff]  ;;  %v364_v29 = vld [vmem:[%s1060_s1 + $0x30] sm:$0xff] }
  0x43   : > { %495 = vmatprep.subr.mxu1 %v307_v39  ;;  %419 = vmatpush2.msra.mxu0 %v242_v40  ;;  %v366_v30 = vld [vmem:[%s1060_s1 + $0x40] sm:$0xff]  ;;  %v332_v31 = vld [vmem:[%s842_s24 + $0x430] sm:$0xff]  ;;  %v363_v32 = vld [vmem:[%s1060_s1 + $0x28] sm:$0xff] }
  0x44   : > { %496 = vmatpush2.msra.mxu1 %v306_v41  ;;  %420 = vmatprep.subr.mxu0 %v241_v42  ;;  %v365_v33 = vld [vmem:[%s1060_s1 + $0x38] sm:$0xff]  ;;  %v331_v34 = vld [vmem:[%s842_s24 + $0x428] sm:$0xff]  ;;  %v330_v35 = vld [vmem:[%s842_s24 + $0x420] sm:$0xff]  ;;  %v795_v42 = vmov 0.0  }
  0x45   : > { %497 = vmatprep.subr.mxu1 %v305_v43  ;;  %421 = vmatpush2.msra.mxu0 %v240_v44  ;;  %v329_v36 = vld [vmem:[%s842_s24 + $0x418] sm:$0xff]  ;;  %v328_v37 = vld [vmem:[%s842_s24 + $0x410] sm:$0xff]  ;;  %v327_v38 = vld [vmem:[%s842_s24 + $0x408] sm:$0xff] }
  0x46   : > { %498 = vmatpush2.msra.mxu1 %v304_v45  ;;  %422 = vmatprep.subr.mxu0 %v239_v46  ;;  %v326_v39 = vld [vmem:[%s842_s24 + $0x400] sm:$0xff]  ;;  %v367_v41 = vld [vmem:[%s1060_s1 + $0x48] sm:$0xff] }
  0x47   : > { %499 = vmatprep.subr.mxu1 %v303_v47  ;;  %423 = vmatpush2.msra.mxu0 %v238_v48  ;;  %v362_v40 = vld [vmem:[%s1060_s1 + $0x20] sm:$0xff] }
  0x48   : > { %500 = vmatpush2.msra.mxu1 %v302_v49  ;;  %424 = vmatprep.subr.mxu0 %v237_v50 }
  0x49   : > { %501 = vmatprep.subr.mxu1 %v301_v51  ;;  %425 = vmatpush2.msra.mxu0 %v236_v52 }
  0x4a   : > { %502 = vmatpush2.msra.mxu1 %v300_v53  ;;  %426 = vmatprep.subr.mxu0 %v235_v54 }
  0x4b   : > { %503 = vmatprep.subr.mxu1 %v299_v55  ;;  %427 = vmatpush2.msra.mxu0 %v234_v56 }
  0x4c   : > { %504 = vmatpush2.msra.mxu1 %v298_v57  ;;  %428 = vmatprep.subr.mxu0 %v233_v58 }
  0x4d   : > { %505 = vmatprep.subr.mxu1 %v297_v59  ;;  %429 = vmatpush2.msra.mxu0 %v232_v60 }
  0x4e   : > { %506 = vmatpush2.msra.mxu1 %v296_v61  ;;  %430 = vmatprep.subr.mxu0 %v231_v62 }
  0x4f   : > { %507 = vmatprep.subr.mxu1 %v295_v63  ;;  %431 = vmatpush2.msra.mxu0 %v230_v0 }
  0x50   : > { %508 = vmatpush2.msra.mxu1 %v294_v1  ;;  %433 = vmatmul.mubr.f32.vlgmr.msra.gmra.mxu0 %v358_v2 }
  0x51   : > { %510 = vmatmul.mubr.f32.vlgmr.msra.gmra.mxu1 %v360_v3  ;;  %522 = vmatprep.subr.mxu0 %v357_v4 }
  0x52   : > { %736 = vmatprep.subr.mxu1 %v357_v4  ;;  %523 = vmatpush1.msra.mxu0 %v356_v5 }
  0x53   : > { %752 = vmatpush1.msra.mxu1 %v356_v5  ;;  %524 = vmatprep.subr.mxu0 %v355_v6 }
  0x54   : > { %737 = vmatprep.subr.mxu1 %v355_v6  ;;  %525 = vmatpush1.msra.mxu0 %v354_v7 }
  0x55   : > { %753 = vmatpush1.msra.mxu1 %v354_v7  ;;  %526 = vmatprep.subr.mxu0 %v353_v8 }
  0x56   : > { %738 = vmatprep.subr.mxu1 %v353_v8  ;;  %527 = vmatpush1.msra.mxu0 %v352_v9 }
  0x57   : > { %754 = vmatpush1.msra.mxu1 %v352_v9  ;;  %528 = vmatprep.subr.mxu0 %v351_v10 }
  0x58   : > { %739 = vmatprep.subr.mxu1 %v351_v10  ;;  %529 = vmatpush1.msra.mxu0 %v350_v11 }
  0x59   : > { %755 = vmatpush1.msra.mxu1 %v350_v11  ;;  %530 = vmatprep.subr.mxu0 %v349_v12 }
  0x5a   : > { %740 = vmatprep.subr.mxu1 %v349_v12  ;;  %531 = vmatpush1.msra.mxu0 %v348_v13 }
  0x5b   : > { %756 = vmatpush1.msra.mxu1 %v348_v13  ;;  %532 = vmatprep.subr.mxu0 %v347_v14 }
  0x5c   : > { %741 = vmatprep.subr.mxu1 %v347_v14  ;;  %533 = vmatpush1.msra.mxu0 %v346_v15 }
  0x5d   : > { %757 = vmatpush1.msra.mxu1 %v346_v15  ;;  %534 = vmatprep.subr.mxu0 %v345_v16 }
  0x5e   : > { %742 = vmatprep.subr.mxu1 %v345_v16  ;;  %535 = vmatpush1.msra.mxu0 %v344_v17 }
  0x5f   : > { %758 = vmatpush1.msra.mxu1 %v344_v17  ;;  %536 = vmatprep.subr.mxu0 %v343_v18 }
  0x60   : > { %743 = vmatprep.subr.mxu1 %v343_v18  ;;  %537 = vmatpush1.msra.mxu0 %v342_v19 }
  0x61   : > { %759 = vmatpush1.msra.mxu1 %v342_v19  ;;  %538 = vmatprep.subr.mxu0 %v341_v20 }
  0x62   : > { %744 = vmatprep.subr.mxu1 %v341_v20  ;;  %539 = vmatpush1.msra.mxu0 %v340_v21 }
  0x63   : > { %760 = vmatpush1.msra.mxu1 %v340_v21  ;;  %540 = vmatprep.subr.mxu0 %v339_v22 }
  0x64   : > { %745 = vmatprep.subr.mxu1 %v339_v22  ;;  %541 = vmatpush1.msra.mxu0 %v338_v23 }
  0x65   : > { %761 = vmatpush1.msra.mxu1 %v338_v23  ;;  %542 = vmatprep.subr.mxu0 %v337_v24 }
  0x66   : > { %746 = vmatprep.subr.mxu1 %v337_v24  ;;  %543 = vmatpush1.msra.mxu0 %v336_v25 }
  0x67   : > { %762 = vmatpush1.msra.mxu1 %v336_v25  ;;  %544 = vmatprep.subr.mxu0 %v335_v26 }
  0x68   : > { %747 = vmatprep.subr.mxu1 %v335_v26  ;;  %545 = vmatpush1.msra.mxu0 %v334_v27 }
  0x69   : > { %763 = vmatpush1.msra.mxu1 %v334_v27  ;;  %546 = vmatprep.subr.mxu0 %v333_v28 }
  0x6a   : > { %748 = vmatprep.subr.mxu1 %v333_v28  ;;  %438 = vmatprep.mubr.f32.mxu0 %v364_v29 }
  0x6b   : > { %515 = vmatprep.mubr.f32.mxu1 %v366_v30  ;;  %547 = vmatpush1.msra.mxu0 %v332_v31  ;;  %v646_v30 = vld [vmem:[%s1061_s2] sm:$0xff] }
  0x6c   : > { %764 = vmatpush1.msra.mxu1 %v332_v31  ;;  %439 = vmatmul.mubr.f32.gmra.mxu0 %v363_v32  ;;  %v647_v32 = vld [vmem:[%s1061_s2 + $0x8] sm:$0xff] }
  0x6d   : > { %516 = vmatmul.mubr.f32.gmra.mxu1 %v365_v33  ;;  %548 = vmatprep.subr.mxu0 %v331_v34  ;;  %v648_v33 = vld [vmem:[%s1061_s2 + $0x10] sm:$0xff] }
  0x6e   : > { %749 = vmatprep.subr.mxu1 %v331_v34  ;;  %549 = vmatpush1.msra.mxu0 %v330_v35  ;;  %v649_v34 = vld [vmem:[%s1061_s2 + $0x18] sm:$0xff] }
  0x6f   : > { %765 = vmatpush1.msra.mxu1 %v330_v35  ;;  %550 = vmatprep.subr.mxu0 %v329_v36 }
  0x70   : > { %750 = vmatprep.subr.mxu1 %v329_v36  ;;  %551 = vmatpush1.msra.mxu0 %v328_v37 }
  0x71   : > { %766 = vmatpush1.msra.mxu1 %v328_v37  ;;  %552 = vmatprep.subr.mxu0 %v327_v38 }
  0x72   : > { %751 = vmatprep.subr.mxu1 %v327_v38  ;;  %553 = vmatpush1.msra.mxu0 %v326_v39 }
  0x73   : > { %767 = vmatpush1.msra.mxu1 %v326_v39  ;;  %586 = vmatprep.mubr.f32.mxu0 %v795_v42  ;;  %v654_v39 = vld [vmem:[%s1062_s3] sm:$0xff] }
  0x74   : > { %592 = vmatprep.mubr.f32.mxu1 %v795_v42  ;;  %587 = vmatmul.mubr.f32.vlgmr.msra.gmra.mxu0 %v362_v40  ;;  %v655_v40 = vld [vmem:[%s1062_s3 + $0x8] sm:$0xff]  ;;  %v657_v42 = vld [vmem:[%s1062_s3 + $0x18] sm:$0xff] }
  0x75   : > { %593 = vmatmul.mubr.f32.vlgmr.msra.gmra.mxu1 %v367_v41  ;;  %v656_v41 = vld [vmem:[%s1062_s3 + $0x10] sm:$0xff] }
 0x110   : > { %v434_v43 = vpop.f32.mrf.mxu0 }
 0x111   : > { %v511_v44 = vpop.f32.mrf.mxu1 }
 0x112   : > { %v436_v45 = vpop.f32.mrf.mxu0  ;;  %v512_v51 = vadd.f32 %v511_v44, %v434_v43 }
 0x113   : > { %v513_v46 = vpop.f32.mrf.mxu1 }
 0x114   : > { %v514_v54 = vadd.f32 %v513_v46, %v436_v45 }
 0x12c   : > { %v440_v47 = vpop.f32.mrf.mxu0 }
 0x12d   : > { %v517_v48 = vpop.f32.mrf.mxu1 }
 0x12e   : > { %v442_v49 = vpop.f32.mrf.mxu0  ;;  %v518_v55 = vadd.f32 %v517_v48, %v440_v47 }
 0x12f   : > { %v519_v50 = vpop.f32.mrf.mxu1 }
 0x130   : > { %v520_v61 = vadd.f32 %v519_v50, %v442_v49 }
 0x134   : > { %v588_v52 = vpop.f32.mrf.mxu0 }
 0x135   : > { %v594_v53 = vpop.f32.mrf.mxu1  ;;  %v589_v56 = vadd.f32 %v588_v52, %v512_v51 }
 0x136   : > { %v590_v57 = vpop.f32.mrf.mxu0  ;;  %v595_v58 = vadd.f32 %v594_v53, %v518_v55 }
 0x137   : > { %v591_v59 = vadd.f32 %v590_v57, %v514_v54  ;;  %v596_v60 = vpop.f32.mrf.mxu1  ;;  %v612_v62 = vmul.f32 %v589_v56, %v589_v56 }
 0x138   : > { %v614_v1 = vmul.f32 %v595_v58, %v595_v58  ;;  %v597_v2 = vadd.f32 %v596_v60, %v520_v61 }
 0x139   : > { %v613_v63 = vmul.f32 %v591_v59, %v591_v59  ;;  %v599_v0 = vadd.f32 %v591_v59, %v589_v56 }
 0x13a   : > { %v615_v7 = vmul.f32 %v597_v2, %v597_v2 }
 0x13b   : > { %v600_v3 = vadd.f32 %v599_v0, %v595_v58  ;;  %v616_v4 = vadd.f32 %v613_v63, %v612_v62 }
 0x13d   : > { %v601_v5 = vadd.f32 %v600_v3, %v597_v2  ;;  %v617_v6 = vadd.f32 %v616_v4, %v614_v1 }
 0x13f   : > { %602 = vadd.xlane.f32.xlu0 %v601_v5  ;;  %v618_v8 = vadd.f32 %v617_v6, %v615_v7 }
 0x143   : > { %619 = vadd.xlane.f32.xlu0 %v618_v8 }
 0x1c8   : > { %v603_v9 = vpop.xlane.xlu0 %602 }
 0x1c9   : > { %v604_v10 = vrot.slane %v603_v9, 4 }
 0x1cb   : > { %v605_v11 = vadd.f32 %v604_v10, %v603_v9 }
 0x1cc   : > { %v620_v12 = vpop.xlane.xlu0 %619 }
 0x1cd   : > { %v606_v13 = vrot.slane %v605_v11, 2  ;;  %v621_v14 = vrot.slane %v620_v12, 4 }
 0x1cf   : > { %v622_v15 = vadd.f32 %v621_v14, %v620_v12  ;;  %v607_v16 = vadd.f32 %v606_v13, %v605_v11 }
 0x1d1   : > { %v623_v17 = vrot.slane %v622_v15, 2  ;;  %v608_v18 = vrot.slane %v607_v16, 1 }
 0x1d3   : > { %v624_v19 = vadd.f32 %v623_v17, %v622_v15  ;;  %v609_v20 = vadd.f32 %v608_v18, %v607_v16 }
 0x1d5   : > { %769 = vpush %v609_v20  ;;  %v625_v21 = vrot.slane %v624_v19, 1 }
 0x1d7   : > { %v626_v22 = vadd.f32 %v625_v21, %v624_v19 }
 0x1d9   : > { %771 = vpush %v626_v22 }
 0x206   : > { %s770_s17 = spop %769 }
 0x207   : > { %s611_s18 = smul.f32 0.0004032258, %s770_s17 }
 0x209   : > { %s629_s19 = smul.f32 %s611_s18, %s611_s18  ;;  %v632_v25 = vstv %s611_s18 }
 0x20a   : > { %s772_s20 = spop %771  ;;  %v633_v26 = vsub.f32 %v589_v56, %v632_v25  ;;  %v634_v27 = vsub.f32 %v591_v59, %v632_v25  ;;  %v635_v28 = vsub.f32 %v595_v58, %v632_v25  ;;  %v636_v29 = vsub.f32 %v597_v2, %v632_v25 }
 0x20b   : > { %s628_s21 = smul.f32 0.0004032258, %s772_s20 }
 0x20d   : > { %s630_s22 = ssub.f32 %s628_s21, %s629_s19  ;;  %s735_s19 = sshll.u32 %s1065_s16, 5 }
 0x20f   : > { %s631_s24 = smax.f32 %s796_s23, %s630_s22  ;;  %s197_s22 = scalar_lea.vmem %s1063_s4, %s735_s19 }
 0x210   : > { %s637_s25 = sadd.f32 1e-05, %s631_s24 }
 0x212   : > { %v638_v23 = vstv %s637_s25 }
 0x213   : > { %785 = vrsqrt.f32 %v638_v23 }
 0x220   : > { %v786_v24 = vpop.eup %785 }
 0x221   : > { %773 = vpush %v786_v24 }
 0x252   : > { %s774_s26 = spop %773 }
 0x253   : > { %v641_v31 = vstv %s774_s26 }
 0x254   : > { %v642_v35 = vmul.f32 %v641_v31, %v633_v26  ;;  %v643_v36 = vmul.f32 %v641_v31, %v634_v27  ;;  %v644_v37 = vmul.f32 %v641_v31, %v635_v28  ;;  %v645_v38 = vmul.f32 %v641_v31, %v636_v29 }
 0x256   : > { %v650_v43 = vmul.f32 %v646_v30, %v642_v35  ;;  %v651_v44 = vmul.f32 %v647_v32, %v643_v36  ;;  %v652_v45 = vmul.f32 %v648_v33, %v644_v37  ;;  %v653_v46 = vmul.f32 %v649_v34, %v645_v38 }
 0x258   : > { %v658_v47 = vadd.f32 %v654_v39, %v650_v43  ;;  %v659_v48 = vadd.f32 %v655_v40, %v651_v44  ;;  %v660_v49 = vadd.f32 %v656_v41, %v652_v45  ;;  %v661_v50 = vadd.f32 %v657_v42, %v653_v46 }
 0x25a   : > { %v662_v51 = vmax.f32 %v658_v47, 0.0  ;;  %v663_v52 = vmax.f32 %v659_v48, 0.0  ;;  %v664_v53 = vmax.f32 %v660_v49, 0.0  ;;  %v665_v54 = vmax.f32 %v661_v50, 0.0 }
 0x25c   : > { %666 = vst [vmem:[%s197_s22] sm:$0xff] %v662_v51  ;;  %667 = vst [vmem:[%s197_s22 + $0x8] sm:$0xff] %v663_v52 }
 0x25d   : > { %668 = vst [vmem:[%s197_s22 + $0x10] sm:$0xff] %v664_v53  ;;  %669 = vst [vmem:[%s197_s22 + $0x18] sm:$0xff] %v665_v54 }
 0x25e PF: > { %s14_s15 = sadd.s32 1, %s793_s15  }
 0x25f   : > { %p11_p4 = scmp.ge.s32.totalorder %s14_s15, 4  }
 0x261   :  { %13 = sbr.rel (!%p11_p4) target bundleno = 1 (0x1), region = 66 }

// kernel: netg_forward.8
= control target key start
LH: loop header
LB: loop body
LE: loop exit
PB: predicated region body
PF: predicated region fallthrough
CT: control target
= control target key end

     0   :  { %s842_s15 = smov 0   ;;  %s1074_s0 = inlined_call_operand.vmem [shape: f32[2,320,512], index: 0, kind: input, shape index: {}]   ;;  %s1075_s1 = inlined_call_operand.vmem [shape: f32[8,320], index: 1, kind: input, shape index: {}]   ;;  %s1076_s2 = inlined_call_operand.vmem [shape: f32[8,512], index: 2, kind: input, shape index: {}]   ;;  %s1077_s3 = inlined_call_operand.vmem [shape: f32[8,512], index: 3, kind: input, shape index: {}]   ;;  %s1078_s4 = inlined_call_operand.vmem [shape: f32[2,8,512], index: 4, kind: output, shape index: {}]  }
   0x1 LB: > { %s775_s16 = sadd.s32 4294967295, %s813_s15   ;;  %p779_p0 = scmp.ge.s32.totalorder %s813_s15, 1  ;;  %s813_s15 = sphi %s842_s15, %s14_s15  }
   0x2   : > { %p162_p1 = scmp.lt.s32.totalorder %s813_s15, 3 }
   0x4   : > { %p163_p2 = pnand %p779_p0, %p162_p1 }
   0x5   : > { %p188_p3 = scmp.lt.s32.totalorder (!%p163_p2), %s775_s16, 1  ;;  %s816_s7 = smov (!%p163_p2), 0.0  }
   0x6   : > { %166 = sbr.rel (%p163_p2) target bundleno = 585 (0x249), region = 36 }
   0xb   : > { %v853_v0 = vld [vmem:[%s1075_s1 + $0x8] sm:$0xff]  ;;  %v815_v1 = vmov 0.0   ;;  %s1080_s16 = smov (!%p188_p3, %s775_s16), 1  ;;  %v901_v35 = vld [vmem:[%s1075_s1 + $0x10] sm:$0xff]  ;;  %vm361_vm0 = vcmask 523264  }
   0xc   : > { %500 = vmatprep.mubr.f32.mxu1 %v815_v1  ;;  %429 = vmatprep.mubr.f32.mxu0 %v853_v0  ;;  %s788_s19 = smul.u32 1280, %s1080_s16 }
   0xe   : > { %s863_s22 = scalar_lea.vmem %s1074_s0, %s788_s19 }
   0xf   : > { %v259_v2 = vld [vmem:[%s863_s22 + $0x1e8] sm:$0xff]  ;;  %v258_v4 = vld [vmem:[%s863_s22 + $0x1e0] sm:$0xff]  ;;  %v261_v36 = vld [vmem:[%s863_s22 + $0x1f8] sm:$0xff] }
  0x10   : > { %v355_v3 = vld [vmem:[%s863_s22 + $0x4e8] sm:$0xff]  ;;  %365 = vmatprep.subr.mxu0 %v259_v2  ;;  %v354_v5 = vld [vmem:[%s863_s22 + $0x4e0] sm:$0xff]  ;;  %v260_v38 = vld [vmem:[%s863_s22 + $0x1f0] sm:$0xff] }
  0x11   : > { %452 = vmatprep.subr.mxu1 %v355_v3  ;;  %v255_v6 = vld [vmem:[%s863_s22 + $0x1c8] sm:$0xff]  ;;  %366 = vmatpush1.msra.mxu0 %v258_v4  ;;  %v254_v8 = vld [vmem:[%s863_s22 + $0x1c0] sm:$0xff]  ;;  %v257_v40 = vld [vmem:[%s863_s22 + $0x1d8] sm:$0xff] }
  0x12   : > { %v351_v7 = vld [vmem:[%s863_s22 + $0x4c8] sm:$0xff]  ;;  %453 = vmatpush1.msra.mxu1 %v354_v5  ;;  %v350_v9 = vld [vmem:[%s863_s22 + $0x4c0] sm:$0xff]  ;;  %367 = vmatprep.subr.mxu0 %v255_v6  ;;  %v256_v42 = vld [vmem:[%s863_s22 + $0x1d0] sm:$0xff] }
  0x13   : > { %v251_v10 = vld [vmem:[%s863_s22 + $0x1a8] sm:$0xff]  ;;  %454 = vmatprep.subr.mxu1 %v351_v7  ;;  %v250_v12 = vld [vmem:[%s863_s22 + $0x1a0] sm:$0xff]  ;;  %368 = vmatpush1.msra.mxu0 %v254_v8  ;;  %v253_v44 = vld [vmem:[%s863_s22 + $0x1b8] sm:$0xff] }
  0x14   : > { %v347_v11 = vld [vmem:[%s863_s22 + $0x4a8] sm:$0xff]  ;;  %v346_v13 = vld [vmem:[%s863_s22 + $0x4a0] sm:$0xff]  ;;  %455 = vmatpush1.msra.mxu1 %v350_v9  ;;  %369 = vmatprep.subr.mxu0 %v251_v10  ;;  %v252_v46 = vld [vmem:[%s863_s22 + $0x1b0] sm:$0xff] }
  0x15   : > { %v247_v14 = vld [vmem:[%s863_s22 + $0x188] sm:$0xff]  ;;  %456 = vmatprep.subr.mxu1 %v347_v11  ;;  %v246_v16 = vld [vmem:[%s863_s22 + $0x180] sm:$0xff]  ;;  %370 = vmatpush1.msra.mxu0 %v250_v12  ;;  %v249_v48 = vld [vmem:[%s863_s22 + $0x198] sm:$0xff] }
  0x16   : > { %v343_v15 = vld [vmem:[%s863_s22 + $0x488] sm:$0xff]  ;;  %v342_v17 = vld [vmem:[%s863_s22 + $0x480] sm:$0xff]  ;;  %457 = vmatpush1.msra.mxu1 %v346_v13  ;;  %371 = vmatprep.subr.mxu0 %v247_v14  ;;  %v248_v50 = vld [vmem:[%s863_s22 + $0x190] sm:$0xff] }
  0x17   : > { %v243_v18 = vld [vmem:[%s863_s22 + $0x168] sm:$0xff]  ;;  %458 = vmatprep.subr.mxu1 %v343_v15  ;;  %v242_v20 = vld [vmem:[%s863_s22 + $0x160] sm:$0xff]  ;;  %372 = vmatpush1.msra.mxu0 %v246_v16  ;;  %v245_v52 = vld [vmem:[%s863_s22 + $0x178] sm:$0xff] }
  0x18   : > { %v339_v19 = vld [vmem:[%s863_s22 + $0x468] sm:$0xff]  ;;  %v338_v21 = vld [vmem:[%s863_s22 + $0x460] sm:$0xff]  ;;  %459 = vmatpush1.msra.mxu1 %v342_v17  ;;  %373 = vmatprep.subr.mxu0 %v243_v18  ;;  %v244_v54 = vld [vmem:[%s863_s22 + $0x170] sm:$0xff] }
  0x19   : > { %v239_v22 = vld [vmem:[%s863_s22 + $0x148] sm:$0xff]  ;;  %460 = vmatprep.subr.mxu1 %v339_v19  ;;  %v238_v24 = vld [vmem:[%s863_s22 + $0x140] sm:$0xff]  ;;  %374 = vmatpush1.msra.mxu0 %v242_v20  ;;  %v241_v56 = vld [vmem:[%s863_s22 + $0x158] sm:$0xff] }
  0x1a   : > { %v335_v23 = vld [vmem:[%s863_s22 + $0x448] sm:$0xff]  ;;  %v334_v25 = vld [vmem:[%s863_s22 + $0x440] sm:$0xff]  ;;  %461 = vmatpush1.msra.mxu1 %v338_v21  ;;  %375 = vmatprep.subr.mxu0 %v239_v22  ;;  %v240_v58 = vld [vmem:[%s863_s22 + $0x150] sm:$0xff] }
  0x1b   : > { %v235_v26 = vld [vmem:[%s863_s22 + $0x128] sm:$0xff]  ;;  %462 = vmatprep.subr.mxu1 %v335_v23  ;;  %v234_v28 = vld [vmem:[%s863_s22 + $0x120] sm:$0xff]  ;;  %376 = vmatpush1.msra.mxu0 %v238_v24  ;;  %v237_v60 = vld [vmem:[%s863_s22 + $0x138] sm:$0xff] }
  0x1c   : > { %v331_v27 = vld [vmem:[%s863_s22 + $0x428] sm:$0xff]  ;;  %v330_v29 = vld [vmem:[%s863_s22 + $0x420] sm:$0xff]  ;;  %463 = vmatpush1.msra.mxu1 %v334_v25  ;;  %377 = vmatprep.subr.mxu0 %v235_v26  ;;  %v236_v62 = vld [vmem:[%s863_s22 + $0x130] sm:$0xff] }
  0x1d   : > { %v231_v30 = vld [vmem:[%s863_s22 + $0x108] sm:$0xff]  ;;  %464 = vmatprep.subr.mxu1 %v331_v27  ;;  %v230_v32 = vld [vmem:[%s863_s22 + $0x100] sm:$0xff]  ;;  %378 = vmatpush1.msra.mxu0 %v234_v28  ;;  %v233_v2 = vld [vmem:[%s863_s22 + $0x118] sm:$0xff] }
  0x1e   : > { %v327_v31 = vld [vmem:[%s863_s22 + $0x408] sm:$0xff]  ;;  %v326_v33 = vld [vmem:[%s863_s22 + $0x400] sm:$0xff]  ;;  %465 = vmatpush1.msra.mxu1 %v330_v29  ;;  %379 = vmatprep.subr.mxu0 %v231_v30  ;;  %v232_v4 = vld [vmem:[%s863_s22 + $0x110] sm:$0xff] }
  0x1f   : > { %v227_v34 = vld [vmem:[%s863_s22 + $0xe8] sm:$0xff]  ;;  %466 = vmatprep.subr.mxu1 %v327_v31  ;;  %v226_v37 = vld [vmem:[%s863_s22 + $0xe0] sm:$0xff]  ;;  %380 = vmatpush1.msra.mxu0 %v230_v32  ;;  %v229_v6 = vld [vmem:[%s863_s22 + $0xf8] sm:$0xff] }
  0x20   : > { %467 = vmatpush1.msra.mxu1 %v326_v33  ;;  %v223_v39 = vld [vmem:[%s863_s22 + $0xc8] sm:$0xff]  ;;  %381 = vmatprep.subr.mxu0 %v227_v34  ;;  %v222_v41 = vld [vmem:[%s863_s22 + $0xc0] sm:$0xff]  ;;  %v228_v8 = vld [vmem:[%s863_s22 + $0xf0] sm:$0xff] }
  0x21   : > { %783 = vmatmul.mubr.msk.f32.vlgmr.msra.gmra.mxu1 %vm361_vm0, %v901_v35  ;;  %507 = vmatprep.subr.mxu1 %v261_v36  ;;  %v219_v43 = vld [vmem:[%s863_s22 + $0xa8] sm:$0xff]  ;;  %v218_v45 = vld [vmem:[%s863_s22 + $0xa0] sm:$0xff]  ;;  %v225_v10 = vld [vmem:[%s863_s22 + $0xd8] sm:$0xff] }
  0x22   : > { %382 = vmatpush1.msra.mxu0 %v226_v37  ;;  %508 = vmatpush1.msra.mxu1 %v260_v38  ;;  %v215_v47 = vld [vmem:[%s863_s22 + $0x88] sm:$0xff]  ;;  %v214_v49 = vld [vmem:[%s863_s22 + $0x80] sm:$0xff]  ;;  %v224_v12 = vld [vmem:[%s863_s22 + $0xd0] sm:$0xff] }
  0x23   : > { %383 = vmatprep.subr.mxu0 %v223_v39  ;;  %509 = vmatprep.subr.mxu1 %v257_v40  ;;  %v211_v51 = vld [vmem:[%s863_s22 + $0x68] sm:$0xff]  ;;  %v210_v53 = vld [vmem:[%s863_s22 + $0x60] sm:$0xff]  ;;  %v221_v14 = vld [vmem:[%s863_s22 + $0xb8] sm:$0xff] }
  0x24   : > { %384 = vmatpush1.msra.mxu0 %v222_v41  ;;  %510 = vmatpush1.msra.mxu1 %v256_v42  ;;  %v207_v55 = vld [vmem:[%s863_s22 + $0x48] sm:$0xff]  ;;  %v206_v57 = vld [vmem:[%s863_s22 + $0x40] sm:$0xff]  ;;  %v220_v16 = vld [vmem:[%s863_s22 + $0xb0] sm:$0xff] }
  0x25   : > { %385 = vmatprep.subr.mxu0 %v219_v43  ;;  %511 = vmatprep.subr.mxu1 %v253_v44  ;;  %v203_v59 = vld [vmem:[%s863_s22 + $0x28] sm:$0xff]  ;;  %v202_v61 = vld [vmem:[%s863_s22 + $0x20] sm:$0xff]  ;;  %v217_v18 = vld [vmem:[%s863_s22 + $0x98] sm:$0xff] }
  0x26   : > { %386 = vmatpush1.msra.mxu0 %v218_v45  ;;  %512 = vmatpush1.msra.mxu1 %v252_v46  ;;  %v199_v63 = vld [vmem:[%s863_s22 + $0x8] sm:$0xff]  ;;  %v198_v3 = vld [vmem:[%s863_s22] sm:$0xff]  ;;  %v216_v20 = vld [vmem:[%s863_s22 + $0x90] sm:$0xff] }
  0x27   : > { %387 = vmatprep.subr.mxu0 %v215_v47  ;;  %513 = vmatprep.subr.mxu1 %v249_v48  ;;  %v323_v5 = vld [vmem:[%s863_s22 + $0x3e8] sm:$0xff]  ;;  %v322_v7 = vld [vmem:[%s863_s22 + $0x3e0] sm:$0xff]  ;;  %v213_v22 = vld [vmem:[%s863_s22 + $0x78] sm:$0xff] }
  0x28   : > { %388 = vmatpush1.msra.mxu0 %v214_v49  ;;  %514 = vmatpush1.msra.mxu1 %v248_v50  ;;  %v319_v9 = vld [vmem:[%s863_s22 + $0x3c8] sm:$0xff]  ;;  %v318_v11 = vld [vmem:[%s863_s22 + $0x3c0] sm:$0xff]  ;;  %v212_v24 = vld [vmem:[%s863_s22 + $0x70] sm:$0xff] }
  0x29   : > { %389 = vmatprep.subr.mxu0 %v211_v51  ;;  %515 = vmatprep.subr.mxu1 %v245_v52  ;;  %v315_v13 = vld [vmem:[%s863_s22 + $0x3a8] sm:$0xff]  ;;  %v314_v15 = vld [vmem:[%s863_s22 + $0x3a0] sm:$0xff]  ;;  %v209_v26 = vld [vmem:[%s863_s22 + $0x58] sm:$0xff] }
  0x2a   : > { %390 = vmatpush1.msra.mxu0 %v210_v53  ;;  %516 = vmatpush1.msra.mxu1 %v244_v54  ;;  %v311_v17 = vld [vmem:[%s863_s22 + $0x388] sm:$0xff]  ;;  %v310_v19 = vld [vmem:[%s863_s22 + $0x380] sm:$0xff]  ;;  %v208_v28 = vld [vmem:[%s863_s22 + $0x50] sm:$0xff] }
  0x2b   : > { %391 = vmatprep.subr.mxu0 %v207_v55  ;;  %517 = vmatprep.subr.mxu1 %v241_v56  ;;  %v307_v21 = vld [vmem:[%s863_s22 + $0x368] sm:$0xff]  ;;  %v306_v23 = vld [vmem:[%s863_s22 + $0x360] sm:$0xff]  ;;  %v205_v30 = vld [vmem:[%s863_s22 + $0x38] sm:$0xff] }
  0x2c   : > { %392 = vmatpush1.msra.mxu0 %v206_v57  ;;  %518 = vmatpush1.msra.mxu1 %v240_v58  ;;  %v303_v25 = vld [vmem:[%s863_s22 + $0x348] sm:$0xff]  ;;  %v302_v27 = vld [vmem:[%s863_s22 + $0x340] sm:$0xff]  ;;  %v204_v32 = vld [vmem:[%s863_s22 + $0x30] sm:$0xff] }
  0x2d   : > { %393 = vmatprep.subr.mxu0 %v203_v59  ;;  %519 = vmatprep.subr.mxu1 %v237_v60  ;;  %v299_v29 = vld [vmem:[%s863_s22 + $0x328] sm:$0xff]  ;;  %v298_v31 = vld [vmem:[%s863_s22 + $0x320] sm:$0xff]  ;;  %v201_v34 = vld [vmem:[%s863_s22 + $0x18] sm:$0xff] }
  0x2e   : > { %394 = vmatpush1.msra.mxu0 %v202_v61  ;;  %520 = vmatpush1.msra.mxu1 %v236_v62  ;;  %v295_v33 = vld [vmem:[%s863_s22 + $0x308] sm:$0xff]  ;;  %v294_v36 = vld [vmem:[%s863_s22 + $0x300] sm:$0xff]  ;;  %v200_v37 = vld [vmem:[%s863_s22 + $0x10] sm:$0xff] }
  0x2f   : > { %395 = vmatprep.subr.mxu0 %v199_v63  ;;  %521 = vmatprep.subr.mxu1 %v233_v2  ;;  %v291_v38 = vld [vmem:[%s863_s22 + $0x2e8] sm:$0xff]  ;;  %v325_v39 = vld [vmem:[%s863_s22 + $0x3f8] sm:$0xff]  ;;  %v290_v40 = vld [vmem:[%s863_s22 + $0x2e0] sm:$0xff] }
  0x30   : > { %396 = vmatpush1.msra.mxu0 %v198_v3  ;;  %522 = vmatpush1.msra.mxu1 %v232_v4  ;;  %v324_v41 = vld [vmem:[%s863_s22 + $0x3f0] sm:$0xff]  ;;  %v287_v42 = vld [vmem:[%s863_s22 + $0x2c8] sm:$0xff]  ;;  %v321_v43 = vld [vmem:[%s863_s22 + $0x3d8] sm:$0xff] }
  0x31   : > { %397 = vmatprep.subr.mxu0 %v323_v5  ;;  %523 = vmatprep.subr.mxu1 %v229_v6  ;;  %v286_v44 = vld [vmem:[%s863_s22 + $0x2c0] sm:$0xff]  ;;  %v320_v45 = vld [vmem:[%s863_s22 + $0x3d0] sm:$0xff]  ;;  %v283_v46 = vld [vmem:[%s863_s22 + $0x2a8] sm:$0xff] }
  0x32   : > { %398 = vmatpush2.msra.mxu0 %v322_v7  ;;  %524 = vmatpush1.msra.mxu1 %v228_v8  ;;  %v317_v47 = vld [vmem:[%s863_s22 + $0x3b8] sm:$0xff]  ;;  %v282_v48 = vld [vmem:[%s863_s22 + $0x2a0] sm:$0xff]  ;;  %v316_v49 = vld [vmem:[%s863_s22 + $0x3b0] sm:$0xff] }
  0x33   : > { %399 = vmatprep.subr.mxu0 %v319_v9  ;;  %525 = vmatprep.subr.mxu1 %v225_v10  ;;  %v279_v50 = vld [vmem:[%s863_s22 + $0x288] sm:$0xff]  ;;  %v313_v51 = vld [vmem:[%s863_s22 + $0x398] sm:$0xff]  ;;  %v278_v52 = vld [vmem:[%s863_s22 + $0x280] sm:$0xff] }
  0x34   : > { %400 = vmatpush2.msra.mxu0 %v318_v11  ;;  %526 = vmatpush1.msra.mxu1 %v224_v12  ;;  %v312_v53 = vld [vmem:[%s863_s22 + $0x390] sm:$0xff]  ;;  %v275_v54 = vld [vmem:[%s863_s22 + $0x268] sm:$0xff]  ;;  %v309_v55 = vld [vmem:[%s863_s22 + $0x378] sm:$0xff] }
  0x35   : > { %401 = vmatprep.subr.mxu0 %v315_v13  ;;  %527 = vmatprep.subr.mxu1 %v221_v14  ;;  %v274_v56 = vld [vmem:[%s863_s22 + $0x260] sm:$0xff]  ;;  %v308_v57 = vld [vmem:[%s863_s22 + $0x370] sm:$0xff]  ;;  %v271_v58 = vld [vmem:[%s863_s22 + $0x248] sm:$0xff] }
  0x36   : > { %402 = vmatpush2.msra.mxu0 %v314_v15  ;;  %528 = vmatpush1.msra.mxu1 %v220_v16  ;;  %v305_v59 = vld [vmem:[%s863_s22 + $0x358] sm:$0xff]  ;;  %v270_v60 = vld [vmem:[%s863_s22 + $0x240] sm:$0xff]  ;;  %v304_v61 = vld [vmem:[%s863_s22 + $0x350] sm:$0xff] }
  0x37   : > { %403 = vmatprep.subr.mxu0 %v311_v17  ;;  %529 = vmatprep.subr.mxu1 %v217_v18  ;;  %v267_v62 = vld [vmem:[%s863_s22 + $0x228] sm:$0xff]  ;;  %v301_v63 = vld [vmem:[%s863_s22 + $0x338] sm:$0xff]  ;;  %v266_v2 = vld [vmem:[%s863_s22 + $0x220] sm:$0xff] }
  0x38   : > { %404 = vmatpush2.msra.mxu0 %v310_v19  ;;  %530 = vmatpush1.msra.mxu1 %v216_v20  ;;  %v300_v3 = vld [vmem:[%s863_s22 + $0x330] sm:$0xff]  ;;  %v263_v4 = vld [vmem:[%s863_s22 + $0x208] sm:$0xff]  ;;  %v297_v5 = vld [vmem:[%s863_s22 + $0x318] sm:$0xff] }
  0x39   : > { %405 = vmatprep.subr.mxu0 %v307_v21  ;;  %531 = vmatprep.subr.mxu1 %v213_v22  ;;  %v262_v6 = vld [vmem:[%s863_s22 + $0x200] sm:$0xff]  ;;  %v296_v7 = vld [vmem:[%s863_s22 + $0x310] sm:$0xff]  ;;  %v293_v9 = vld [vmem:[%s863_s22 + $0x2f8] sm:$0xff] }
  0x3a   : > { %406 = vmatpush2.msra.mxu0 %v306_v23  ;;  %532 = vmatpush1.msra.mxu1 %v212_v24  ;;  %v1003_v8 = vld [vmem:[%s1075_s1] sm:$0xff]  ;;  %v357_v10 = vld [vmem:[%s863_s22 + $0x4f8] sm:$0xff]  ;;  %v292_v11 = vld [vmem:[%s863_s22 + $0x2f0] sm:$0xff] }
  0x3b   : > { %407 = vmatprep.subr.mxu0 %v303_v25  ;;  %533 = vmatprep.subr.mxu1 %v209_v26  ;;  %v356_v12 = vld [vmem:[%s863_s22 + $0x4f0] sm:$0xff]  ;;  %v289_v13 = vld [vmem:[%s863_s22 + $0x2d8] sm:$0xff] }
  0x3c   : > { %408 = vmatpush2.msra.mxu0 %v302_v27  ;;  %534 = vmatpush1.msra.mxu1 %v208_v28  ;;  %v353_v14 = vld [vmem:[%s863_s22 + $0x4d8] sm:$0xff]  ;;  %v288_v15 = vld [vmem:[%s863_s22 + $0x2d0] sm:$0xff] }
  0x3d   : > { %409 = vmatprep.subr.mxu0 %v299_v29  ;;  %535 = vmatprep.subr.mxu1 %v205_v30  ;;  %v352_v16 = vld [vmem:[%s863_s22 + $0x4d0] sm:$0xff]  ;;  %v285_v17 = vld [vmem:[%s863_s22 + $0x2b8] sm:$0xff] }
  0x3e   : > { %410 = vmatpush2.msra.mxu0 %v298_v31  ;;  %536 = vmatpush1.msra.mxu1 %v204_v32  ;;  %v349_v18 = vld [vmem:[%s863_s22 + $0x4b8] sm:$0xff]  ;;  %v284_v19 = vld [vmem:[%s863_s22 + $0x2b0] sm:$0xff] }
  0x3f   : > { %411 = vmatprep.subr.mxu0 %v295_v33  ;;  %537 = vmatprep.subr.mxu1 %v201_v34  ;;  %v348_v20 = vld [vmem:[%s863_s22 + $0x4b0] sm:$0xff]  ;;  %v281_v21 = vld [vmem:[%s863_s22 + $0x298] sm:$0xff] }
  0x40   : > { %412 = vmatpush2.msra.mxu0 %v294_v36  ;;  %538 = vmatpush1.msra.mxu1 %v200_v37  ;;  %v345_v22 = vld [vmem:[%s863_s22 + $0x498] sm:$0xff]  ;;  %v280_v23 = vld [vmem:[%s863_s22 + $0x290] sm:$0xff] }
  0x41   : > { %413 = vmatprep.subr.mxu0 %v291_v38  ;;  %539 = vmatprep.subr.mxu1 %v325_v39  ;;  %v344_v24 = vld [vmem:[%s863_s22 + $0x490] sm:$0xff]  ;;  %v277_v25 = vld [vmem:[%s863_s22 + $0x278] sm:$0xff] }
  0x42   : > { %414 = vmatpush2.msra.mxu0 %v290_v40  ;;  %540 = vmatpush2.msra.mxu1 %v324_v41  ;;  %v341_v26 = vld [vmem:[%s863_s22 + $0x478] sm:$0xff]  ;;  %v276_v27 = vld [vmem:[%s863_s22 + $0x270] sm:$0xff] }
  0x43   : > { %415 = vmatprep.subr.mxu0 %v287_v42  ;;  %541 = vmatprep.subr.mxu1 %v321_v43  ;;  %v340_v28 = vld [vmem:[%s863_s22 + $0x470] sm:$0xff]  ;;  %v273_v29 = vld [vmem:[%s863_s22 + $0x258] sm:$0xff] }
  0x44   : > { %416 = vmatpush2.msra.mxu0 %v286_v44  ;;  %542 = vmatpush2.msra.mxu1 %v320_v45  ;;  %v337_v30 = vld [vmem:[%s863_s22 + $0x458] sm:$0xff]  ;;  %v272_v31 = vld [vmem:[%s863_s22 + $0x250] sm:$0xff] }
  0x45   : > { %417 = vmatprep.subr.mxu0 %v283_v46  ;;  %543 = vmatprep.subr.mxu1 %v317_v47  ;;  %v336_v32 = vld [vmem:[%s863_s22 + $0x450] sm:$0xff]  ;;  %v269_v33 = vld [vmem:[%s863_s22 + $0x238] sm:$0xff] }
  0x46   : > { %418 = vmatpush2.msra.mxu0 %v282_v48  ;;  %544 = vmatpush2.msra.mxu1 %v316_v49  ;;  %v333_v34 = vld [vmem:[%s863_s22 + $0x438] sm:$0xff]  ;;  %v268_v36 = vld [vmem:[%s863_s22 + $0x230] sm:$0xff] }
  0x47   : > { %419 = vmatprep.subr.mxu0 %v279_v50  ;;  %545 = vmatprep.subr.mxu1 %v313_v51  ;;  %v332_v37 = vld [vmem:[%s863_s22 + $0x430] sm:$0xff]  ;;  %v265_v38 = vld [vmem:[%s863_s22 + $0x218] sm:$0xff] }
  0x48   : > { %420 = vmatpush2.msra.mxu0 %v278_v52  ;;  %546 = vmatpush2.msra.mxu1 %v312_v53  ;;  %v329_v39 = vld [vmem:[%s863_s22 + $0x418] sm:$0xff]  ;;  %v264_v40 = vld [vmem:[%s863_s22 + $0x210] sm:$0xff] }
  0x49   : > { %421 = vmatprep.subr.mxu0 %v275_v54  ;;  %547 = vmatprep.subr.mxu1 %v309_v55  ;;  %v328_v41 = vld [vmem:[%s863_s22 + $0x410] sm:$0xff] }
  0x4a   : > { %422 = vmatpush2.msra.mxu0 %v274_v56  ;;  %548 = vmatpush2.msra.mxu1 %v308_v57 }
  0x4b   : > { %423 = vmatprep.subr.mxu0 %v271_v58  ;;  %549 = vmatprep.subr.mxu1 %v305_v59 }
  0x4c   : > { %424 = vmatpush2.msra.mxu0 %v270_v60  ;;  %550 = vmatpush2.msra.mxu1 %v304_v61 }
  0x4d   : > { %425 = vmatprep.subr.mxu0 %v267_v62  ;;  %551 = vmatprep.subr.mxu1 %v301_v63 }
  0x4e   : > { %426 = vmatpush2.msra.mxu0 %v266_v2  ;;  %552 = vmatpush2.msra.mxu1 %v300_v3 }
  0x4f   : > { %427 = vmatprep.subr.mxu0 %v263_v4  ;;  %553 = vmatprep.subr.mxu1 %v297_v5 }
  0x50   : > { %428 = vmatpush2.msra.mxu0 %v262_v6  ;;  %554 = vmatpush2.msra.mxu1 %v296_v7 }
  0x51   : > { %430 = vmatmul.mubr.f32.vlgmr.msra.gmra.mxu0 %v1003_v8  ;;  %555 = vmatprep.subr.mxu1 %v293_v9 }
  0x52   : > { %594 = vmatprep.subr.mxu0 %v357_v10  ;;  %556 = vmatpush2.msra.mxu1 %v292_v11 }
  0x53   : > { %595 = vmatpush1.msra.mxu0 %v356_v12  ;;  %557 = vmatprep.subr.mxu1 %v289_v13 }
  0x54   : > { %596 = vmatprep.subr.mxu0 %v353_v14  ;;  %558 = vmatpush2.msra.mxu1 %v288_v15 }
  0x55   : > { %597 = vmatpush1.msra.mxu0 %v352_v16  ;;  %559 = vmatprep.subr.mxu1 %v285_v17 }
  0x56   : > { %598 = vmatprep.subr.mxu0 %v349_v18  ;;  %560 = vmatpush2.msra.mxu1 %v284_v19 }
  0x57   : > { %599 = vmatpush1.msra.mxu0 %v348_v20  ;;  %561 = vmatprep.subr.mxu1 %v281_v21  ;;  %v696_v20 = vld [vmem:[%s1076_s2] sm:$0xff] }
  0x58   : > { %600 = vmatprep.subr.mxu0 %v345_v22  ;;  %562 = vmatpush2.msra.mxu1 %v280_v23  ;;  %v697_v22 = vld [vmem:[%s1076_s2 + $0x8] sm:$0xff]  ;;  %v698_v23 = vld [vmem:[%s1076_s2 + $0x10] sm:$0xff] }
  0x59   : > { %601 = vmatpush1.msra.mxu0 %v344_v24  ;;  %563 = vmatprep.subr.mxu1 %v277_v25  ;;  %v699_v24 = vld [vmem:[%s1076_s2 + $0x18] sm:$0xff] }
  0x5a   : > { %602 = vmatprep.subr.mxu0 %v341_v26  ;;  %564 = vmatpush2.msra.mxu1 %v276_v27 }
  0x5b   : > { %603 = vmatpush1.msra.mxu0 %v340_v28  ;;  %565 = vmatprep.subr.mxu1 %v273_v29  ;;  %v704_v29 = vld [vmem:[%s1077_s3] sm:$0xff] }
  0x5c   : > { %604 = vmatprep.subr.mxu0 %v337_v30  ;;  %566 = vmatpush2.msra.mxu1 %v272_v31  ;;  %v705_v30 = vld [vmem:[%s1077_s3 + $0x8] sm:$0xff]  ;;  %v706_v31 = vld [vmem:[%s1077_s3 + $0x10] sm:$0xff] }
  0x5d   : > { %605 = vmatpush1.msra.mxu0 %v336_v32  ;;  %567 = vmatprep.subr.mxu1 %v269_v33  ;;  %v707_v32 = vld [vmem:[%s1077_s3 + $0x18] sm:$0xff] }
  0x5e   : > { %606 = vmatprep.subr.mxu0 %v333_v34  ;;  %568 = vmatpush2.msra.mxu1 %v268_v36 }
  0x5f   : > { %607 = vmatpush1.msra.mxu0 %v332_v37  ;;  %569 = vmatprep.subr.mxu1 %v265_v38 }
  0x60   : > { %608 = vmatprep.subr.mxu0 %v329_v39  ;;  %570 = vmatpush2.msra.mxu1 %v264_v40 }
  0x61   : > { %571 = vmatprep.mubr.f32.mxu1 %v853_v0  ;;  %609 = vmatpush1.msra.mxu0 %v328_v41 }
  0x62   : > { %642 = vmatprep.mubr.f32.mxu0 %v815_v1  ;;  %572 = vmatmul.mubr.f32.vlgmr.msra.gmra.mxu1 %v1003_v8 }
  0x63   : > { %784 = vmatmul.mubr.msk.f32.vlgmr.msra.gmra.mxu0 %vm361_vm0, %v901_v35 }
  0xe1   : > { %v502_v43 = vpop.f32.mrf.mxu1 }
  0xe3   : > { %v504_v45 = vpop.f32.mrf.mxu1 }
 0x111   : > { %v431_v42 = vpop.f32.mrf.mxu0 }
 0x112   : > { %v503_v47 = vadd.f32 %v502_v43, %v431_v42 }
 0x113   : > { %v433_v44 = vpop.f32.mrf.mxu0 }
 0x114   : > { %v505_v46 = vadd.f32 %v504_v45, %v433_v44  ;;  %v662_v51 = vmul.f32 %v503_v47, %v503_v47 }
 0x116   : > { %v663_v48 = vmul.f32 %v505_v46, %v505_v46  ;;  %v649_v0 = vadd.f32 %v505_v46, %v503_v47 }
 0x118   : > { %v666_v57 = vadd.f32 %v663_v48, %v662_v51 }
 0x122   : > { %v573_v49 = vpop.f32.mrf.mxu1 }
 0x123   : > { %v644_v50 = vpop.f32.mrf.mxu0 }
 0x124   : > { %v645_v52 = vadd.f32 %v644_v50, %v573_v49  ;;  %v575_v53 = vpop.f32.mrf.mxu1 }
 0x125   : > { %v646_v54 = vpop.f32.mrf.mxu0 }
 0x126   : > { %v664_v1 = vmul.f32 %v645_v52, %v645_v52  ;;  %v647_v55 = vadd.f32 %v646_v54, %v575_v53  ;;  %v650_v56 = vadd.f32 %v649_v0, %v645_v52 }
 0x128   : > { %v651_v58 = vadd.f32 %v650_v56, %v647_v55  ;;  %v665_v35 = vmul.f32 %v647_v55, %v647_v55  ;;  %v667_v59 = vadd.f32 %v666_v57, %v664_v1 }
 0x12a   : > { %652 = vadd.xlane.f32.xlu0 %v651_v58  ;;  %v668_v60 = vadd.f32 %v667_v59, %v665_v35 }
 0x12e   : > { %669 = vadd.xlane.f32.xlu0 %v668_v60 }
 0x1b3   : > { %v653_v61 = vpop.xlane.xlu0 %652 }
 0x1b4   : > { %v654_v62 = vrot.slane %v653_v61, 4 }
 0x1b6   : > { %v655_v63 = vadd.f32 %v654_v62, %v653_v61 }
 0x1b7   : > { %v670_v2 = vpop.xlane.xlu0 %669 }
 0x1b8   : > { %v656_v3 = vrot.slane %v655_v63, 2  ;;  %v671_v4 = vrot.slane %v670_v2, 4 }
 0x1ba   : > { %v672_v5 = vadd.f32 %v671_v4, %v670_v2  ;;  %v657_v6 = vadd.f32 %v656_v3, %v655_v63 }
 0x1bc   : > { %v673_v7 = vrot.slane %v672_v5, 2  ;;  %v658_v8 = vrot.slane %v657_v6, 1 }
 0x1be   : > { %v674_v9 = vadd.f32 %v673_v7, %v672_v5  ;;  %v659_v10 = vadd.f32 %v658_v8, %v657_v6 }
 0x1c0   : > { %789 = vpush %v659_v10  ;;  %v675_v11 = vrot.slane %v674_v9, 1 }
 0x1c2   : > { %v676_v12 = vadd.f32 %v675_v11, %v674_v9 }
 0x1c4   : > { %791 = vpush %v676_v12 }
 0x1f1   : > { %s790_s27 = spop %789 }
 0x1f2   : > { %s661_s28 = smul.f32 0.0002480159, %s790_s27 }
 0x1f4   : > { %s679_s29 = smul.f32 %s661_s28, %s661_s28  ;;  %v682_v15 = vstv %s661_s28 }
 0x1f5   : > { %s792_s30 = spop %791  ;;  %v683_v16 = vsub.f32 %v503_v47, %v682_v15  ;;  %v684_v17 = vsub.f32 %v505_v46, %v682_v15  ;;  %v685_v18 = vsub.f32 %v645_v52, %v682_v15  ;;  %v686_v19 = vsub.f32 %v647_v55, %v682_v15 }
 0x1f6   : > { %s678_s5 = smul.f32 0.0002480159, %s792_s30 }
 0x1f8   : > { %s680_s6 = ssub.f32 %s678_s5, %s679_s29  ;;  %s787_s29 = sshll.u32 %s1080_s16, 5 }
 0x1fa   : > { %s681_s8 = smax.f32 %s816_s7, %s680_s6  ;;  %s197_s6 = scalar_lea.vmem %s1078_s4, %s787_s29 }
 0x1fb   : > { %s687_s9 = sadd.f32 1e-05, %s681_s8 }
 0x1fd   : > { %v688_v13 = vstv %s687_s9 }
 0x1fe   : > { %805 = vrsqrt.f32 %v688_v13 }
 0x20b   : > { %v806_v14 = vpop.eup %805 }
 0x20c   : > { %793 = vpush %v806_v14 }
 0x23d   : > { %s794_s10 = spop %793 }
 0x23e   : > { %v691_v21 = vstv %s794_s10 }
 0x23f   : > { %v692_v25 = vmul.f32 %v691_v21, %v683_v16  ;;  %v693_v26 = vmul.f32 %v691_v21, %v684_v17  ;;  %v694_v27 = vmul.f32 %v691_v21, %v685_v18  ;;  %v695_v28 = vmul.f32 %v691_v21, %v686_v19 }
 0x241   : > { %v700_v33 = vmul.f32 %v696_v20, %v692_v25  ;;  %v701_v34 = vmul.f32 %v697_v22, %v693_v26  ;;  %v702_v36 = vmul.f32 %v698_v23, %v694_v27  ;;  %v703_v37 = vmul.f32 %v699_v24, %v695_v28 }
 0x243   : > { %v708_v38 = vadd.f32 %v704_v29, %v700_v33  ;;  %v709_v39 = vadd.f32 %v705_v30, %v701_v34  ;;  %v710_v40 = vadd.f32 %v706_v31, %v702_v36  ;;  %v711_v41 = vadd.f32 %v707_v32, %v703_v37 }
 0x245   : > { %v712_v42 = vmax.f32 %v708_v38, 0.0  ;;  %v713_v43 = vmax.f32 %v709_v39, 0.0  ;;  %v714_v44 = vmax.f32 %v710_v40, 0.0  ;;  %v715_v45 = vmax.f32 %v711_v41, 0.0 }
 0x247   : > { %716 = vst [vmem:[%s197_s6] sm:$0xff] %v712_v42  ;;  %717 = vst [vmem:[%s197_s6 + $0x8] sm:$0xff] %v713_v43 }
 0x248   : > { %718 = vst [vmem:[%s197_s6 + $0x10] sm:$0xff] %v714_v44  ;;  %719 = vst [vmem:[%s197_s6 + $0x18] sm:$0xff] %v715_v45 }
 0x249 PF: > { %s14_s15 = sadd.s32 1, %s813_s15  }
 0x24a   : > { %p11_p4 = scmp.ge.s32.totalorder %s14_s15, 4  }
 0x24c   :  { %13 = sbr.rel (!%p11_p4) target bundleno = 1 (0x1), region = 66 }

// kernel: netg_forward.9
= control target key start
LH: loop header
LB: loop body
LE: loop exit
PB: predicated region body
PF: predicated region fallthrough
CT: control target
= control target key end

     0   :  { %s1874_s14 = smov 0   ;;  %s3744_s0 = inlined_call_operand.vmem [shape: f32[2,160,2176], index: 0, kind: input, shape index: {}]   ;;  %s3745_s1 = inlined_call_operand.vmem [shape: f32[160,1], index: 1, kind: input, shape index: {}]   ;;  %s3746_s2 = inlined_call_operand.<no memory space> [shape: f32[1,1], index: 2, kind: input, shape index: {}]   ;;  %s3747_s3 = inlined_call_operand.vmem [shape: f32[2,1,2176], index: 3, kind: output, shape index: {}]  }
   0x1   :  { %v8_v0 = vstv %s3746_s2 }
   0x2   :  { %9 = vst [vmem:[#allocation2] sm:$0x1] %v8_v0 }
   0x3 LB: > { %s1751_s15 = sadd.s32 4294967295, %s1847_s14   ;;  %p1755_p0 = scmp.ge.s32.totalorder %s1847_s14, 1  ;;  %s1847_s14 = sphi %s1874_s14, %s15_s14  }
   0x4   : > { %p139_p1 = scmp.lt.s32.totalorder %s1847_s14, 3 }
   0x6   : > { %p140_p2 = pnand %p1755_p0, %p139_p1 }
   0x8   : > { %143 = sbr.rel (%p140_p2) target bundleno = 480 (0x1e0), region = 32 }
   0xd   : > { %v513_v1 = vld [vmem:[%s3745_s1 + $0x10] sm:$0xff]  ;;  %v511_v2 = vld [vmem:[%s3745_s1] sm:$0xff]  ;;  %v1849_v3 = vmov 0   ;;  %v514_v4 = vld [vmem:[%s3745_s1 + $0x18] sm:$0xff]  ;;  %p162_p3 = scmp.lt.s32.totalorder %s1751_s15, 1  ;;  %v3748_v23 = vlaneseq }
   0xe   : > { %1772 = vset.pattern.permute.xlu1 %v1849_v3  ;;  %1771 = vset.pattern.permute.xlu0 %v1849_v3  ;;  %v512_v5 = vld [vmem:[%s3745_s1 + $0x8] sm:$0xff]  ;;  %v515_v7 = vld [vmem:[%s3745_s1 + $0x20] sm:$0xff]  ;;  %v518_v8 = vld [vmem:[%s3745_s1 + $0x38] sm:$0xff] }
   0xf   : > { %543 = vperm.xlu1 %1772, %v513_v1   ;;  %533 = vperm.xlu0 %1771, %v511_v2   ;;  %v516_v6 = vld [vmem:[%s3745_s1 + $0x28] sm:$0xff]  ;;  %v517_v9 = vld [vmem:[%s3745_s1 + $0x30] sm:$0xff]  ;;  %v519_v11 = vld [vmem:[%s3745_s1 + $0x40] sm:$0xff]  ;;  %s4273_s15 = smov (!%p162_p3, %s1751_s15), 1  ;;  %v1956_v26 = vshrl.u32 %v3748_v23, 7 }
  0x10   : > { %v520_v10 = vld [vmem:[%s3745_s1 + $0x48] sm:$0xff]  ;;  %v522_v12 = vld [vmem:[%s3745_s1 + $0x58] sm:$0xff]  ;;  %v521_v13 = vld [vmem:[%s3745_s1 + $0x50] sm:$0xff]  ;;  %s1759_s29 = smul.u32 2720, %s4273_s15 }
  0x11   : > { %v524_v14 = vld [vmem:[%s3745_s1 + $0x68] sm:$0xff]  ;;  %v523_v15 = vld [vmem:[%s3745_s1 + $0x60] sm:$0xff]  ;;  %v526_v16 = vld [vmem:[%s3745_s1 + $0x78] sm:$0xff]  ;;  %3760 = vst [vmem:[#allocation3_spill] sm:$0xff] %v1956_v26  ;;  %s1760_s6 = smul.u32 17, %s4273_s15 }
  0x12   : > { %v525_v17 = vld [vmem:[%s3745_s1 + $0x70] sm:$0xff]  ;;  %v528_v18 = vld [vmem:[%s3745_s1 + $0x88] sm:$0xff]  ;;  %v527_v19 = vld [vmem:[%s3745_s1 + $0x80] sm:$0xff]  ;;  %s1952_s5 = scalar_lea.vmem %s3744_s0, %s1759_s29 }
  0x13   : > { %548 = vperm.xlu1 %1772, %v514_v4   ;;  %538 = vperm.xlu0 %1771, %v512_v5   ;;  %v530_v20 = vld [vmem:[%s3745_s1 + $0x98] sm:$0xff]  ;;  %v529_v21 = vld [vmem:[%s3745_s1 + $0x90] sm:$0xff]  ;;  %v1396_v22 = vld [vmem:[#allocation2] sm:$0x1]  ;;  %s170_s8 = scalar_lea.vmem %s3747_s3, %s1760_s6 }
  0x14   : > { %v171_v24 = vld [vmem:[%s1952_s5] sm:$0xff]  ;;  %v172_v27 = vld [vmem:[%s1952_s5 + $0x8] sm:$0xff]  ;;  %v173_v28 = vld [vmem:[%s1952_s5 + $0x10] sm:$0xff] }
  0x15   : > { %v174_v29 = vld [vmem:[%s1952_s5 + $0x18] sm:$0xff]  ;;  %v175_v30 = vld [vmem:[%s1952_s5 + $0x20] sm:$0xff]  ;;  %v176_v31 = vld [vmem:[%s1952_s5 + $0x28] sm:$0xff] }
  0x16   : > { %v177_v32 = vld [vmem:[%s1952_s5 + $0x30] sm:$0xff]  ;;  %v178_v33 = vld [vmem:[%s1952_s5 + $0x38] sm:$0xff]  ;;  %v179_v34 = vld [vmem:[%s1952_s5 + $0x40] sm:$0xff] }
  0x17   : > { %558 = vperm.xlu1 %1772, %v516_v6   ;;  %553 = vperm.xlu0 %1771, %v515_v7   ;;  %v180_v35 = vld [vmem:[%s1952_s5 + $0x48] sm:$0xff]  ;;  %v181_v36 = vld [vmem:[%s1952_s5 + $0x50] sm:$0xff]  ;;  %v182_v37 = vld [vmem:[%s1952_s5 + $0x58] sm:$0xff] }
  0x18   : > { %v183_v38 = vld [vmem:[%s1952_s5 + $0x60] sm:$0xff]  ;;  %v184_v39 = vld [vmem:[%s1952_s5 + $0x68] sm:$0xff]  ;;  %v185_v40 = vld [vmem:[%s1952_s5 + $0x70] sm:$0xff] }
  0x19   : > { %v186_v41 = vld [vmem:[%s1952_s5 + $0x78] sm:$0xff]  ;;  %v187_v42 = vld [vmem:[%s1952_s5 + $0x80] sm:$0xff]  ;;  %v188_v44 = vld [vmem:[%s1952_s5 + $0x88] sm:$0xff] }
  0x1a   : > { %v189_v45 = vld [vmem:[%s1952_s5 + $0x90] sm:$0xff]  ;;  %v190_v46 = vld [vmem:[%s1952_s5 + $0x98] sm:$0xff]  ;;  %v191_v47 = vld [vmem:[%s1952_s5 + $0xa0] sm:$0xff] }
  0x1b   : > { %568 = vperm.xlu1 %1772, %v518_v8   ;;  %563 = vperm.xlu0 %1771, %v517_v9   ;;  %v192_v49 = vld [vmem:[%s1952_s5 + $0xa8] sm:$0xff]  ;;  %v193_v50 = vld [vmem:[%s1952_s5 + $0xb0] sm:$0xff]  ;;  %v194_v51 = vld [vmem:[%s1952_s5 + $0xb8] sm:$0xff] }
  0x1c   : > { %v195_v52 = vld [vmem:[%s1952_s5 + $0xc0] sm:$0xff]  ;;  %v196_v58 = vld [vmem:[%s1952_s5 + $0xc8] sm:$0xff]  ;;  %v197_v59 = vld [vmem:[%s1952_s5 + $0xd0] sm:$0xff] }
  0x1d   : > { %v198_v60 = vld [vmem:[%s1952_s5 + $0xd8] sm:$0xff]  ;;  %v199_v61 = vld [vmem:[%s1952_s5 + $0xe0] sm:$0xff]  ;;  %v200_v2 = vld [vmem:[%s1952_s5 + $0xe8] sm:$0xff] }
  0x1e   : > { %v201_v3 = vld [vmem:[%s1952_s5 + $0xf0] sm:$0xff]  ;;  %v202_v4 = vld [vmem:[%s1952_s5 + $0xf8] sm:$0xff]  ;;  %v203_v5 = vld [vmem:[%s1952_s5 + $0x100] sm:$0xff] }
  0x1f   : > { %578 = vperm.xlu1 %1772, %v520_v10   ;;  %573 = vperm.xlu0 %1771, %v519_v11   ;;  %v204_v11 = vld [vmem:[%s1952_s5 + $0x108] sm:$0xff]  ;;  %v225_v23 = vld [vmem:[%s1952_s5 + $0x1b0] sm:$0xff]  ;;  %v227_v43 = vld [vmem:[%s1952_s5 + $0x1c0] sm:$0xff] }
  0x23   : > { %588 = vperm.xlu1 %1772, %v522_v12   ;;  %583 = vperm.xlu0 %1771, %v521_v13   ;;  %v205_v12 = vld [vmem:[%s1952_s5 + $0x110] sm:$0xff]  ;;  %v206_v13 = vld [vmem:[%s1952_s5 + $0x118] sm:$0xff] }
  0x27   : > { %598 = vperm.xlu1 %1772, %v524_v14   ;;  %593 = vperm.xlu0 %1771, %v523_v15   ;;  %v207_v14 = vld [vmem:[%s1952_s5 + $0x120] sm:$0xff] }
  0x2b   : > { %608 = vperm.xlu1 %1772, %v526_v16   ;;  %603 = vperm.xlu0 %1771, %v525_v17  }
  0x2f   : > { %618 = vperm.xlu1 %1772, %v528_v18   ;;  %613 = vperm.xlu0 %1771, %v527_v19   ;;  %v208_v19 = vld [vmem:[%s1952_s5 + $0x128] sm:$0xff] }
  0x33   : > { %628 = vperm.xlu1 %1772, %v530_v20   ;;  %623 = vperm.xlu0 %1771, %v529_v21   ;;  %v209_v20 = vld [vmem:[%s1952_s5 + $0x130] sm:$0xff]  ;;  %v210_v21 = vld [vmem:[%s1952_s5 + $0x138] sm:$0xff] }
  0x37   : > { %1399 = vperm.xlu0 %1771, %v1396_v22   ;;  %v211_v22 = vld [vmem:[%s1952_s5 + $0x140] sm:$0xff] }
  0x8a   : > { %v534_v25 = vpop.permute.xlu0 %533  ;;  %v2017_v10 = vpop.permute.xlu1 %543 }
  0x8b   : > { %v1979_v48 = vmul.f32 %v534_v25, %v171_v24  ;;  %v1985_v53 = vmul.f32 %v534_v25, %v172_v27  ;;  %v1987_v54 = vmul.f32 %v534_v25, %v173_v28  ;;  %v1989_v55 = vmul.f32 %v534_v25, %v174_v29 }
  0x8c   : > { %v1991_v56 = vmul.f32 %v534_v25, %v175_v30  ;;  %v1997_v62 = vmul.f32 %v534_v25, %v176_v31  ;;  %v1999_v63 = vmul.f32 %v534_v25, %v177_v32  ;;  %v2001_v0 = vmul.f32 %v534_v25, %v178_v33  ;;  %v212_v30 = vld [vmem:[%s1952_s5 + $0x148] sm:$0xff]  ;;  %v214_v31 = vld [vmem:[%s1952_s5 + $0x158] sm:$0xff]  ;;  %v215_v32 = vld [vmem:[%s1952_s5 + $0x160] sm:$0xff] }
  0x8d   : > { %v2003_v1 = vmul.f32 %v534_v25, %v179_v34  ;;  %v2009_v6 = vmul.f32 %v534_v25, %v180_v35  ;;  %v2011_v7 = vmul.f32 %v534_v25, %v181_v36  ;;  %v2013_v8 = vmul.f32 %v534_v25, %v182_v37  ;;  %v216_v37 = vld [vmem:[%s1952_s5 + $0x168] sm:$0xff] }
  0x8e   : > { %v539_v57 = vpop.permute.xlu0 %538  ;;  %v2015_v9 = vmul.f32 %v534_v25, %v183_v38  ;;  %v2023_v15 = vmul.f32 %v534_v25, %v184_v39  ;;  %v2025_v16 = vmul.f32 %v534_v25, %v185_v40  ;;  %v2027_v17 = vmul.f32 %v534_v25, %v186_v41  ;;  %v217_v38 = vld [vmem:[%s1952_s5 + $0x170] sm:$0xff]  ;;  %v218_v39 = vld [vmem:[%s1952_s5 + $0x178] sm:$0xff]  ;;  %v219_v40 = vld [vmem:[%s1952_s5 + $0x180] sm:$0xff] }
  0x8f   : > { %3761 = vst [vmem:[#allocation4_spill] sm:$0xff] %v2003_v1  ;;  %3762 = vst [vmem:[#allocation5_spill] sm:$0xff] %v2009_v6  ;;  %v2029_v18 = vmul.f32 %v534_v25, %v187_v42  ;;  %v2035_v24 = vmul.f32 %v539_v57, %v188_v44  ;;  %v2037_v27 = vmul.f32 %v539_v57, %v189_v45  ;;  %v213_v25 = vld [vmem:[%s1952_s5 + $0x150] sm:$0xff]  ;;  %v255_v1 = vld [vmem:[%s1952_s5 + $0x2a0] sm:$0xff] }
  0x90   : > { %3763 = vst [vmem:[#allocation6_spill] sm:$0xff] %v2011_v7  ;;  %3764 = vst [vmem:[#allocation7_spill] sm:$0xff] %v2013_v8  ;;  %v2039_v28 = vmul.f32 %v539_v57, %v190_v46  ;;  %v2041_v29 = vmul.f32 %v539_v57, %v191_v47  ;;  %v2047_v33 = vmul.f32 %v539_v57, %v192_v49  ;;  %v220_v46 = vld [vmem:[%s1952_s5 + $0x188] sm:$0xff]  ;;  %v221_v47 = vld [vmem:[%s1952_s5 + $0x190] sm:$0xff] }
  0x91   : > { %3765 = vst [vmem:[#allocation8_spill] sm:$0xff] %v2015_v9  ;;  %3766 = vst [vmem:[#allocation9_spill] sm:$0xff] %v2023_v15  ;;  %v2049_v34 = vmul.f32 %v539_v57, %v193_v50  ;;  %v2051_v35 = vmul.f32 %v539_v57, %v194_v51  ;;  %v2053_v36 = vmul.f32 %v539_v57, %v195_v52  ;;  %v222_v49 = vld [vmem:[%s1952_s5 + $0x198] sm:$0xff]  ;;  %v223_v50 = vld [vmem:[%s1952_s5 + $0x1a0] sm:$0xff] }
  0x92   : > { %3767 = vst [vmem:[#allocation10_spill] sm:$0xff] %v2025_v16  ;;  %3768 = vst [vmem:[#allocation11_spill] sm:$0xff] %v2027_v17  ;;  %v2059_v41 = vmul.f32 %v539_v57, %v196_v58  ;;  %v2061_v42 = vmul.f32 %v539_v57, %v197_v59  ;;  %v2063_v44 = vmul.f32 %v539_v57, %v198_v60  ;;  %v224_v60 = vld [vmem:[%s1952_s5 + $0x1a8] sm:$0xff]  ;;  %v230_v17 = vld [vmem:[%s1952_s5 + $0x1d8] sm:$0xff] }
  0x93   : > { %3769 = vst [vmem:[#allocation12_spill] sm:$0xff] %v2029_v18  ;;  %v2065_v45 = vmul.f32 %v539_v57, %v199_v61  ;;  %v2071_v51 = vmul.f32 %v539_v57, %v200_v2  ;;  %v2073_v52 = vmul.f32 %v539_v57, %v201_v3  ;;  %v2075_v58 = vmul.f32 %v539_v57, %v202_v4  ;;  %v226_v61 = vld [vmem:[%s1952_s5 + $0x1b8] sm:$0xff]  ;;  %v228_v18 = vld [vmem:[%s1952_s5 + $0x1c8] sm:$0xff]  ;;  %v251_v7 = vld [vmem:[%s1952_s5 + $0x280] sm:$0xff] }
  0x94   : > { %3770 = vst [vmem:[#allocation13_spill] sm:$0xff] %v2059_v41  ;;  %3771 = vst [vmem:[#allocation14_spill] sm:$0xff] %v2061_v42  ;;  %v2077_v59 = vmul.f32 %v539_v57, %v203_v5  ;;  %v2083_v26 = vmul.f32 %v539_v57, %v204_v11  ;;  %v2086_v2 = vmul.f32 %v2017_v10, %v205_v12  ;;  %v2094_v5 = vpop.permute.xlu1 %548  ;;  %v231_v57 = vld [vmem:[%s1952_s5 + $0x1e0] sm:$0xff]  ;;  %v234_v16 = vld [vmem:[%s1952_s5 + $0x1f8] sm:$0xff] }
  0x95   : > { %3772 = vst [vmem:[#allocation15_spill] sm:$0xff] %v2063_v44  ;;  %3773 = vst [vmem:[#allocation16_spill] sm:$0xff] %v2065_v45  ;;  %v2089_v3 = vmul.f32 %v2017_v10, %v206_v13  ;;  %v2092_v4 = vmul.f32 %v2017_v10, %v207_v14  ;;  %v2101_v11 = vmul.f32 %v2017_v10, %v208_v19  ;;  %v236_v15 = vld [vmem:[%s1952_s5 + $0x208] sm:$0xff]  ;;  %v238_v9 = vld [vmem:[%s1952_s5 + $0x218] sm:$0xff] }
  0x96   : > { %3774 = vst [vmem:[#allocation17_spill] sm:$0xff] %v2071_v51  ;;  %3775 = vst [vmem:[#allocation18_spill] sm:$0xff] %v2073_v52  ;;  %v2104_v12 = vmul.f32 %v2017_v10, %v209_v20  ;;  %v2107_v13 = vmul.f32 %v2017_v10, %v210_v21  ;;  %v2110_v14 = vmul.f32 %v2017_v10, %v211_v22  ;;  %v235_v52 = vld [vmem:[%s1952_s5 + $0x200] sm:$0xff]  ;;  %v237_v51 = vld [vmem:[%s1952_s5 + $0x210] sm:$0xff] }
  0x97   : > { %3776 = vst [vmem:[#allocation19_spill] sm:$0xff] %v2075_v58  ;;  %3777 = vst [vmem:[#allocation20_spill] sm:$0xff] %v2077_v59  ;;  %v229_v59 = vld [vmem:[%s1952_s5 + $0x1d0] sm:$0xff]  ;;  %v2117_v19 = vmul.f32 %v2017_v10, %v212_v30  ;;  %v2120_v20 = vmul.f32 %v2017_v10, %v213_v25  ;;  %v2123_v21 = vmul.f32 %v2017_v10, %v214_v31  ;;  %v239_v45 = vld [vmem:[%s1952_s5 + $0x220] sm:$0xff] }
  0x98   : > { %3778 = vst [vmem:[#allocation21_spill] sm:$0xff] %v2083_v26  ;;  %v232_v26 = vld [vmem:[%s1952_s5 + $0x1e8] sm:$0xff]  ;;  %v233_v58 = vld [vmem:[%s1952_s5 + $0x1f0] sm:$0xff]  ;;  %v2126_v22 = vmul.f32 %v2017_v10, %v215_v32  ;;  %v2133_v8 = vmul.f32 %v2017_v10, %v216_v37  ;;  %v2136_v30 = vmul.f32 %v2017_v10, %v217_v38  ;;  %v2139_v25 = vmul.f32 %v2017_v10, %v218_v39  ;;  %v250_v44 = vld [vmem:[%s1952_s5 + $0x278] sm:$0xff] }
  0x99   : > { %3779 = vst [vmem:[#allocation22_spill] sm:$0xff] %v2120_v20  ;;  %3780 = vst [vmem:[#allocation23_spill] sm:$0xff] %v2123_v21  ;;  %v2142_v31 = vmul.f32 %v2017_v10, %v219_v40  ;;  %v240_v32 = vld [vmem:[%s1952_s5 + $0x228] sm:$0xff]  ;;  %v242_v21 = vld [vmem:[%s1952_s5 + $0x238] sm:$0xff]  ;;  %v2149_v37 = vmul.f32 %v2017_v10, %v220_v46  ;;  %v2152_v38 = vmul.f32 %v2017_v10, %v221_v47 }
  0x9a   : > { %3781 = vst [vmem:[#allocation24_spill] sm:$0xff] %v2126_v22  ;;  %3782 = vst [vmem:[#allocation25_spill] sm:$0xff] %v2133_v8  ;;  %v241_v22 = vld [vmem:[%s1952_s5 + $0x230] sm:$0xff]  ;;  %v243_v20 = vld [vmem:[%s1952_s5 + $0x240] sm:$0xff]  ;;  %v2155_v39 = vmul.f32 %v2094_v5, %v222_v49  ;;  %v2158_v40 = vmul.f32 %v2094_v5, %v223_v50  ;;  %v2170_v10 = vmul.f32 %v2094_v5, %v225_v23 }
  0x9b   : > { %3783 = vst [vmem:[#allocation26_spill] sm:$0xff] %v2136_v30  ;;  %3784 = vst [vmem:[#allocation27_spill] sm:$0xff] %v2139_v25  ;;  %v244_v25 = vld [vmem:[%s1952_s5 + $0x248] sm:$0xff]  ;;  %v245_v30 = vld [vmem:[%s1952_s5 + $0x250] sm:$0xff]  ;;  %v2173_v47 = vmul.f32 %v2094_v5, %v226_v61  ;;  %v2176_v49 = vmul.f32 %v2094_v5, %v227_v43  ;;  %v2186_v23 = vmul.f32 %v2094_v5, %v229_v59 }
  0x9c   : > { %3785 = vst [vmem:[#allocation28_spill] sm:$0xff] %v2142_v31  ;;  %3786 = vst [vmem:[#allocation29_spill] sm:$0xff] %v2149_v37  ;;  %v2160_v31 = vpop.permute.xlu0 %553  ;;  %v246_v8 = vld [vmem:[%s1952_s5 + $0x258] sm:$0xff]  ;;  %v247_v46 = vld [vmem:[%s1952_s5 + $0x260] sm:$0xff]  ;;  %v2167_v37 = vmul.f32 %v2094_v5, %v224_v60  ;;  %v2183_v60 = vmul.f32 %v2094_v5, %v228_v18  ;;  %v2189_v61 = vmul.f32 %v2094_v5, %v230_v17 }
  0x9d   : > { %3787 = vst [vmem:[#allocation30_spill] sm:$0xff] %v2152_v38  ;;  %3788 = vst [vmem:[#allocation31_spill] sm:$0xff] %v2173_v47  ;;  %v248_v50 = vld [vmem:[%s1952_s5 + $0x268] sm:$0xff]  ;;  %v249_v38 = vld [vmem:[%s1952_s5 + $0x270] sm:$0xff]  ;;  %v2192_v43 = vmul.f32 %v2094_v5, %v231_v57  ;;  %v2199_v18 = vmul.f32 %v2094_v5, %v232_v26  ;;  %v2202_v59 = vmul.f32 %v2094_v5, %v233_v58 }
  0x9e   : > { %3789 = vst [vmem:[#allocation32_spill] sm:$0xff] %v2176_v49  ;;  %3790 = vst [vmem:[#allocation33_spill] sm:$0xff] %v2183_v60  ;;  %v252_v42 = vld [vmem:[%s1952_s5 + $0x288] sm:$0xff]  ;;  %v253_v6 = vld [vmem:[%s1952_s5 + $0x290] sm:$0xff]  ;;  %v2205_v17 = vmul.f32 %v2094_v5, %v234_v16  ;;  %v2208_v57 = vmul.f32 %v2094_v5, %v235_v52  ;;  %v2215_v49 = vmul.f32 %v2094_v5, %v236_v15 }
  0x9f   : > { %3791 = vst [vmem:[#allocation34_spill] sm:$0xff] %v2186_v23  ;;  %3792 = vst [vmem:[#allocation35_spill] sm:$0xff] %v2189_v61  ;;  %v254_v41 = vld [vmem:[%s1952_s5 + $0x298] sm:$0xff]  ;;  %v257_v61 = vld [vmem:[%s1952_s5 + $0x2b0] sm:$0xff]  ;;  %v2218_v26 = vmul.f32 %v2094_v5, %v237_v51  ;;  %v2221_v16 = vmul.f32 %v2094_v5, %v238_v9  ;;  %v2224_v52 = vmul.f32 %v2160_v31, %v239_v45  ;;  %v559_v5 = vpop.permute.xlu1 %558 }
  0xa0   : > { %3793 = vst [vmem:[#allocation36_spill] sm:$0xff] %v2192_v43  ;;  %3794 = vst [vmem:[#allocation37_spill] sm:$0xff] %v2199_v18  ;;  %v256_v43 = vld [vmem:[%s1952_s5 + $0x2a8] sm:$0xff]  ;;  %v258_v23 = vld [vmem:[%s1952_s5 + $0x2b8] sm:$0xff]  ;;  %v2231_v15 = vmul.f32 %v2160_v31, %v240_v32  ;;  %v2234_v51 = vmul.f32 %v2160_v31, %v241_v22  ;;  %v2237_v9 = vmul.f32 %v2160_v31, %v242_v21 }
  0xa1   : > { %3795 = vst [vmem:[#allocation38_spill] sm:$0xff] %v2202_v59  ;;  %3796 = vst [vmem:[#allocation39_spill] sm:$0xff] %v2205_v17  ;;  %v259_v60 = vld [vmem:[%s1952_s5 + $0x2c0] sm:$0xff]  ;;  %v260_v58 = vld [vmem:[%s1952_s5 + $0x2c8] sm:$0xff]  ;;  %v2240_v45 = vmul.f32 %v2160_v31, %v243_v20  ;;  %v2247_v32 = vmul.f32 %v2160_v31, %v244_v25  ;;  %v2250_v22 = vmul.f32 %v2160_v31, %v245_v30 }
  0xa2   : > { %3797 = vst [vmem:[#allocation40_spill] sm:$0xff] %v2208_v57  ;;  %3798 = vst [vmem:[#allocation41_spill] sm:$0xff] %v2215_v49  ;;  %v261_v57 = vld [vmem:[%s1952_s5 + $0x2d0] sm:$0xff]  ;;  %v262_v17 = vld [vmem:[%s1952_s5 + $0x2d8] sm:$0xff]  ;;  %v2253_v21 = vmul.f32 %v2160_v31, %v246_v8  ;;  %v2256_v20 = vmul.f32 %v2160_v31, %v247_v46  ;;  %v2263_v25 = vmul.f32 %v2160_v31, %v248_v50 }
  0xa3   : > { %3799 = vst [vmem:[#allocation42_spill] sm:$0xff] %v2218_v26  ;;  %3800 = vst [vmem:[#allocation43_spill] sm:$0xff] %v2221_v16  ;;  %v263_v59 = vld [vmem:[%s1952_s5 + $0x2e0] sm:$0xff]  ;;  %v264_v16 = vld [vmem:[%s1952_s5 + $0x2e8] sm:$0xff]  ;;  %v2266_v30 = vmul.f32 %v2160_v31, %v249_v38  ;;  %v2269_v8 = vmul.f32 %v2160_v31, %v250_v44  ;;  %v2272_v46 = vmul.f32 %v2160_v31, %v251_v7 }
  0xa4   : > { %3801 = vst [vmem:[#allocation44_spill] sm:$0xff] %v2224_v52  ;;  %3802 = vst [vmem:[#allocation45_spill] sm:$0xff] %v2231_v15  ;;  %v265_v26 = vld [vmem:[%s1952_s5 + $0x2f0] sm:$0xff]  ;;  %v266_v49 = vld [vmem:[%s1952_s5 + $0x2f8] sm:$0xff]  ;;  %v2279_v52 = vmul.f32 %v2160_v31, %v252_v42  ;;  %v2282_v38 = vmul.f32 %v2160_v31, %v253_v6  ;;  %v2285_v44 = vmul.f32 %v2160_v31, %v254_v41  ;;  %v2302_v41 = vpop.permute.xlu0 %563 }
  0xa5   : > { %3803 = vst [vmem:[#allocation46_spill] sm:$0xff] %v2234_v51  ;;  %3804 = vst [vmem:[#allocation47_spill] sm:$0xff] %v2237_v9  ;;  %v267_v18 = vld [vmem:[%s1952_s5 + $0x300] sm:$0xff]  ;;  %v269_v9 = vld [vmem:[%s1952_s5 + $0x310] sm:$0xff]  ;;  %v2288_v7 = vmul.f32 %v2160_v31, %v255_v1  ;;  %v2296_v42 = vmul.f32 %v559_v5, %v257_v61  ;;  %v2298_v6 = vmul.f32 %v559_v5, %v258_v23 }
  0xa6   : > { %3805 = vst [vmem:[#allocation48_spill] sm:$0xff] %v2240_v45  ;;  %3806 = vst [vmem:[#allocation49_spill] sm:$0xff] %v2247_v32  ;;  %v268_v45 = vld [vmem:[%s1952_s5 + $0x308] sm:$0xff]  ;;  %v270_v51 = vld [vmem:[%s1952_s5 + $0x318] sm:$0xff]  ;;  %v2312_v61 = vmul.f32 %v559_v5, %v262_v17  ;;  %v2314_v23 = vmul.f32 %v559_v5, %v263_v59  ;;  %v2322_v47 = vmul.f32 %v559_v5, %v265_v26 }
  0xa7   : > { %3807 = vst [vmem:[#allocation50_spill] sm:$0xff] %v2250_v22  ;;  %3808 = vst [vmem:[#allocation51_spill] sm:$0xff] %v2253_v21  ;;  %v271_v15 = vld [vmem:[%s1952_s5 + $0x320] sm:$0xff]  ;;  %v273_v21 = vld [vmem:[%s1952_s5 + $0x330] sm:$0xff] }
  0xa8   : > { %3809 = vst [vmem:[#allocation52_spill] sm:$0xff] %v2256_v20  ;;  %3810 = vst [vmem:[#allocation53_spill] sm:$0xff] %v2263_v25  ;;  %v272_v20 = vld [vmem:[%s1952_s5 + $0x328] sm:$0xff]  ;;  %v274_v22 = vld [vmem:[%s1952_s5 + $0x338] sm:$0xff]  ;;  %v2294_v25 = vmul.f32 %v559_v5, %v256_v43  ;;  %v2310_v43 = vmul.f32 %v559_v5, %v261_v57  ;;  %v2326_v57 = vmul.f32 %v559_v5, %v267_v18 }
  0xa9   : > { %3811 = vst [vmem:[#allocation54_spill] sm:$0xff] %v2266_v30  ;;  %3812 = vst [vmem:[#allocation55_spill] sm:$0xff] %v2269_v8  ;;  %v275_v32 = vld [vmem:[%s1952_s5 + $0x340] sm:$0xff]  ;;  %v276_v50 = vld [vmem:[%s1952_s5 + $0x348] sm:$0xff]  ;;  %v2338_v26 = vmul.f32 %v559_v5, %v271_v15  ;;  %v2355_v15 = vpop.permute.xlu1 %568 }
  0xaa   : > { %3813 = vst [vmem:[#allocation56_spill] sm:$0xff] %v2272_v46  ;;  %3814 = vst [vmem:[#allocation57_spill] sm:$0xff] %v2279_v52  ;;  %v277_v46 = vld [vmem:[%s1952_s5 + $0x350] sm:$0xff]  ;;  %v278_v8 = vld [vmem:[%s1952_s5 + $0x358] sm:$0xff]  ;;  %v2308_v52 = vmul.f32 %v559_v5, %v260_v58  ;;  %v2324_v58 = vmul.f32 %v559_v5, %v266_v49 }
  0xab   : > { %3815 = vst [vmem:[#allocation58_spill] sm:$0xff] %v2282_v38  ;;  %3816 = vst [vmem:[#allocation59_spill] sm:$0xff] %v2285_v44  ;;  %v279_v30 = vld [vmem:[%s1952_s5 + $0x360] sm:$0xff]  ;;  %v2300_v38 = vmul.f32 %v559_v5, %v259_v60  ;;  %v280_v1 = vld [vmem:[%s1952_s5 + $0x368] sm:$0xff] }
  0xac   : > { %3817 = vst [vmem:[#allocation60_spill] sm:$0xff] %v2288_v7  ;;  %3818 = vst [vmem:[#allocation61_spill] sm:$0xff] %v2294_v25  ;;  %v281_v31 = vld [vmem:[%s1952_s5 + $0x370] sm:$0xff]  ;;  %v282_v7 = vld [vmem:[%s1952_s5 + $0x378] sm:$0xff]  ;;  %v2320_v25 = vmul.f32 %v559_v5, %v264_v16  ;;  %v2336_v16 = vmul.f32 %v559_v5, %v270_v51  ;;  %v2353_v51 = vmul.f32 %v2302_v41, %v275_v32 }
  0xad   : > { %3819 = vst [vmem:[#allocation62_spill] sm:$0xff] %v2296_v42  ;;  %3820 = vst [vmem:[#allocation63_spill] sm:$0xff] %v2298_v6  ;;  %v283_v44 = vld [vmem:[%s1952_s5 + $0x380] sm:$0xff]  ;;  %v284_v60 = vld [vmem:[%s1952_s5 + $0x388] sm:$0xff]  ;;  %v2371_v32 = vmul.f32 %v2302_v41, %v279_v30 }
  0xae   : > { %3821 = vst [vmem:[#allocation64_spill] sm:$0xff] %v2300_v38  ;;  %3822 = vst [vmem:[#allocation65_spill] sm:$0xff] %v2308_v52  ;;  %v285_v38 = vld [vmem:[%s1952_s5 + $0x390] sm:$0xff]  ;;  %v286_v6 = vld [vmem:[%s1952_s5 + $0x398] sm:$0xff]  ;;  %v2334_v52 = vmul.f32 %v559_v5, %v269_v9  ;;  %v2350_v9 = vmul.f32 %v2302_v41, %v274_v22  ;;  %v2368_v22 = vmul.f32 %v2302_v41, %v278_v8 }
  0xaf   : > { %3823 = vst [vmem:[#allocation66_spill] sm:$0xff] %v2310_v43  ;;  %3824 = vst [vmem:[#allocation67_spill] sm:$0xff] %v2312_v61  ;;  %v287_v42 = vld [vmem:[%s1952_s5 + $0x3a0] sm:$0xff]  ;;  %v288_v17 = vld [vmem:[%s1952_s5 + $0x3a8] sm:$0xff]  ;;  %v2332_v43 = vmul.f32 %v559_v5, %v268_v45  ;;  %v2347_v45 = vmul.f32 %v2302_v41, %v273_v21  ;;  %v2365_v21 = vmul.f32 %v2302_v41, %v277_v46 }
  0xb0   : > { %3825 = vst [vmem:[#allocation68_spill] sm:$0xff] %v2314_v23  ;;  %3826 = vst [vmem:[#allocation69_spill] sm:$0xff] %v2320_v25  ;;  %v289_v61 = vld [vmem:[%s1952_s5 + $0x3b0] sm:$0xff]  ;;  %v290_v59 = vld [vmem:[%s1952_s5 + $0x3b8] sm:$0xff]  ;;  %v2381_v46 = vmul.f32 %v2302_v41, %v281_v31  ;;  %v2384_v8 = vmul.f32 %v2302_v41, %v282_v7  ;;  %v2387_v30 = vmul.f32 %v2302_v41, %v283_v44 }
  0xb1   : > { %3827 = vst [vmem:[#allocation70_spill] sm:$0xff] %v2322_v47  ;;  %3828 = vst [vmem:[#allocation71_spill] sm:$0xff] %v2324_v58  ;;  %v291_v23 = vld [vmem:[%s1952_s5 + $0x3c0] sm:$0xff]  ;;  %v292_v49 = vld [vmem:[%s1952_s5 + $0x3c8] sm:$0xff]  ;;  %v2344_v47 = vmul.f32 %v559_v5, %v272_v20  ;;  %v2362_v20 = vmul.f32 %v2302_v41, %v276_v50  ;;  %v2378_v50 = vmul.f32 %v2302_v41, %v280_v1 }
  0xb2   : > { %3829 = vst [vmem:[#allocation72_spill] sm:$0xff] %v2326_v57  ;;  %3830 = vst [vmem:[#allocation73_spill] sm:$0xff] %v2332_v43  ;;  %v293_v58 = vld [vmem:[%s1952_s5 + $0x3d0] sm:$0xff]  ;;  %v294_v18 = vld [vmem:[%s1952_s5 + $0x3d8] sm:$0xff]  ;;  %v2397_v1 = vmul.f32 %v2302_v41, %v285_v38  ;;  %v2400_v7 = vmul.f32 %v2302_v41, %v286_v6  ;;  %v2403_v44 = vmul.f32 %v2302_v41, %v287_v42 }
  0xb3   : > { %3831 = vst [vmem:[#allocation74_spill] sm:$0xff] %v2334_v52  ;;  %3832 = vst [vmem:[#allocation75_spill] sm:$0xff] %v2336_v16  ;;  %v295_v57 = vld [vmem:[%s1952_s5 + $0x3e0] sm:$0xff]  ;;  %v297_v16 = vld [vmem:[%s1952_s5 + $0x3f0] sm:$0xff]  ;;  %v2413_v38 = vmul.f32 %v2302_v41, %v289_v61  ;;  %v2416_v6 = vmul.f32 %v2355_v15, %v290_v59  ;;  %v2419_v42 = vmul.f32 %v2355_v15, %v291_v23 }
  0xb4   : > { %3833 = vst [vmem:[#allocation76_spill] sm:$0xff] %v2338_v26  ;;  %3834 = vst [vmem:[#allocation77_spill] sm:$0xff] %v2344_v47  ;;  %v296_v26 = vld [vmem:[%s1952_s5 + $0x3e8] sm:$0xff]  ;;  %v298_v52 = vld [vmem:[%s1952_s5 + $0x3f8] sm:$0xff]  ;;  %v2434_v61 = vmul.f32 %v2355_v15, %v294_v18  ;;  %v2437_v23 = vmul.f32 %v2355_v15, %v295_v57 }
  0xb5   : > { %3835 = vst [vmem:[#allocation78_spill] sm:$0xff] %v2347_v45  ;;  %3836 = vst [vmem:[#allocation79_spill] sm:$0xff] %v2350_v9  ;;  %v299_v5 = vld [vmem:[%s1952_s5 + $0x400] sm:$0xff]  ;;  %v300_v47 = vld [vmem:[%s1952_s5 + $0x408] sm:$0xff]  ;;  %v2394_v9 = vmul.f32 %v2302_v41, %v284_v60  ;;  %v2410_v60 = vmul.f32 %v2302_v41, %v288_v17  ;;  %v2431_v41 = vmul.f32 %v2355_v15, %v293_v58 }
  0xb6   : > { %3837 = vst [vmem:[#allocation80_spill] sm:$0xff] %v2353_v51  ;;  %3838 = vst [vmem:[#allocation81_spill] sm:$0xff] %v2362_v20  ;;  %v301_v43 = vld [vmem:[%s1952_s5 + $0x410] sm:$0xff]  ;;  %v302_v25 = vld [vmem:[%s1952_s5 + $0x418] sm:$0xff]  ;;  %v2447_v58 = vmul.f32 %v2355_v15, %v297_v16  ;;  %v2450_v18 = vmul.f32 %v2355_v15, %v298_v52  ;;  %v2453_v57 = vmul.f32 %v2355_v15, %v299_v5 }
  0xb7   : > { %3839 = vst [vmem:[#allocation82_spill] sm:$0xff] %v2365_v21  ;;  %3840 = vst [vmem:[#allocation83_spill] sm:$0xff] %v2368_v22  ;;  %v303_v51 = vld [vmem:[%s1952_s5 + $0x420] sm:$0xff]  ;;  %v305_v22 = vld [vmem:[%s1952_s5 + $0x430] sm:$0xff]  ;;  %v2463_v16 = vmul.f32 %v2355_v15, %v301_v43  ;;  %v2466_v52 = vmul.f32 %v2355_v15, %v302_v25 }
  0xb8   : > { %3841 = vst [vmem:[#allocation84_spill] sm:$0xff] %v2371_v32  ;;  %3842 = vst [vmem:[#allocation85_spill] sm:$0xff] %v2378_v50  ;;  %v304_v32 = vld [vmem:[%s1952_s5 + $0x428] sm:$0xff]  ;;  %v306_v21 = vld [vmem:[%s1952_s5 + $0x438] sm:$0xff]  ;;  %v2469_v5 = vmul.f32 %v2355_v15, %v303_v51 }
  0xb9   : > { %3843 = vst [vmem:[#allocation86_spill] sm:$0xff] %v2381_v46  ;;  %3844 = vst [vmem:[#allocation87_spill] sm:$0xff] %v2384_v8  ;;  %v307_v20 = vld [vmem:[%s1952_s5 + $0x440] sm:$0xff]  ;;  %v308_v31 = vld [vmem:[%s1952_s5 + $0x448] sm:$0xff]  ;;  %v2476_v50 = vmul.f32 %v2355_v15, %v304_v32  ;;  %v2482_v25 = vmul.f32 %v2355_v15, %v306_v21  ;;  %v579_v21 = vpop.permute.xlu1 %578 }
  0xba   : > { %3845 = vst [vmem:[#allocation88_spill] sm:$0xff] %v2387_v30  ;;  %3846 = vst [vmem:[#allocation89_spill] sm:$0xff] %v2394_v9  ;;  %v309_v30 = vld [vmem:[%s1952_s5 + $0x450] sm:$0xff]  ;;  %v310_v8 = vld [vmem:[%s1952_s5 + $0x458] sm:$0xff] }
  0xbb   : > { %3847 = vst [vmem:[#allocation90_spill] sm:$0xff] %v2397_v1  ;;  %3848 = vst [vmem:[#allocation91_spill] sm:$0xff] %v2400_v7  ;;  %v311_v46 = vld [vmem:[%s1952_s5 + $0x460] sm:$0xff]  ;;  %v312_v7 = vld [vmem:[%s1952_s5 + $0x468] sm:$0xff] }
  0xbc   : > { %3849 = vst [vmem:[#allocation92_spill] sm:$0xff] %v2403_v44  ;;  %3850 = vst [vmem:[#allocation93_spill] sm:$0xff] %v2410_v60  ;;  %v2421_v44 = vpop.permute.xlu0 %573  ;;  %v313_v1 = vld [vmem:[%s1952_s5 + $0x470] sm:$0xff]  ;;  %v314_v9 = vld [vmem:[%s1952_s5 + $0x478] sm:$0xff]  ;;  %v2428_v60 = vmul.f32 %v2355_v15, %v292_v49  ;;  %v2444_v49 = vmul.f32 %v2355_v15, %v296_v26  ;;  %v2460_v26 = vmul.f32 %v2355_v15, %v300_v47 }
  0xbd   : > { %3851 = vst [vmem:[#allocation94_spill] sm:$0xff] %v2413_v38  ;;  %3852 = vst [vmem:[#allocation95_spill] sm:$0xff] %v2416_v6  ;;  %v315_v17 = vld [vmem:[%s1952_s5 + $0x480] sm:$0xff]  ;;  %v316_v59 = vld [vmem:[%s1952_s5 + $0x488] sm:$0xff]  ;;  %v2479_v47 = vmul.f32 %v2355_v15, %v305_v22  ;;  %v2485_v43 = vmul.f32 %v2421_v44, %v307_v20  ;;  %v2492_v32 = vmul.f32 %v2421_v44, %v308_v31 }
  0xbe   : > { %3853 = vst [vmem:[#allocation96_spill] sm:$0xff] %v2419_v42  ;;  %3854 = vst [vmem:[#allocation97_spill] sm:$0xff] %v2428_v60  ;;  %v317_v38 = vld [vmem:[%s1952_s5 + $0x490] sm:$0xff]  ;;  %v318_v42 = vld [vmem:[%s1952_s5 + $0x498] sm:$0xff]  ;;  %v2495_v22 = vmul.f32 %v2421_v44, %v309_v30  ;;  %v2498_v15 = vmul.f32 %v2421_v44, %v310_v8  ;;  %v2501_v20 = vmul.f32 %v2421_v44, %v311_v46 }
  0xbf   : > { %3855 = vst [vmem:[#allocation98_spill] sm:$0xff] %v2431_v41  ;;  %3856 = vst [vmem:[#allocation99_spill] sm:$0xff] %v2434_v61  ;;  %v319_v6 = vld [vmem:[%s1952_s5 + $0x4a0] sm:$0xff]  ;;  %v321_v61 = vld [vmem:[%s1952_s5 + $0x4b0] sm:$0xff]  ;;  %v2508_v31 = vmul.f32 %v2421_v44, %v312_v7  ;;  %v2511_v30 = vmul.f32 %v2421_v44, %v313_v1  ;;  %v2514_v8 = vmul.f32 %v2421_v44, %v314_v9 }
  0xc0   : > { %3857 = vst [vmem:[#allocation100_spill] sm:$0xff] %v2437_v23  ;;  %3858 = vst [vmem:[#allocation101_spill] sm:$0xff] %v2444_v49  ;;  %v320_v23 = vld [vmem:[%s1952_s5 + $0x4a8] sm:$0xff]  ;;  %v322_v41 = vld [vmem:[%s1952_s5 + $0x4b8] sm:$0xff]  ;;  %v2517_v46 = vmul.f32 %v2421_v44, %v315_v17  ;;  %v2524_v7 = vmul.f32 %v2421_v44, %v316_v59  ;;  %v2527_v1 = vmul.f32 %v2421_v44, %v317_v38 }
  0xc1   : > { %3859 = vst [vmem:[#allocation102_spill] sm:$0xff] %v2447_v58  ;;  %3860 = vst [vmem:[#allocation103_spill] sm:$0xff] %v2450_v18  ;;  %v323_v60 = vld [vmem:[%s1952_s5 + $0x4c0] sm:$0xff]  ;;  %v325_v18 = vld [vmem:[%s1952_s5 + $0x4d0] sm:$0xff]  ;;  %v2530_v9 = vmul.f32 %v2421_v44, %v318_v42  ;;  %v2533_v17 = vmul.f32 %v2421_v44, %v319_v6  ;;  %v2543_v38 = vmul.f32 %v2421_v44, %v321_v61 }
  0xc2   : > { %3861 = vst [vmem:[#allocation104_spill] sm:$0xff] %v2453_v57  ;;  %3862 = vst [vmem:[#allocation105_spill] sm:$0xff] %v2460_v26  ;;  %v324_v57 = vld [vmem:[%s1952_s5 + $0x4c8] sm:$0xff]  ;;  %v326_v58 = vld [vmem:[%s1952_s5 + $0x4d8] sm:$0xff]  ;;  %v2546_v42 = vmul.f32 %v2421_v44, %v322_v41  ;;  %v2549_v6 = vmul.f32 %v2421_v44, %v323_v60  ;;  %v2563_v41 = vpop.permute.xlu0 %583 }
  0xc3   : > { %3863 = vst [vmem:[#allocation106_spill] sm:$0xff] %v2463_v16  ;;  %3864 = vst [vmem:[#allocation107_spill] sm:$0xff] %v2466_v52  ;;  %v327_v49 = vld [vmem:[%s1952_s5 + $0x4e0] sm:$0xff]  ;;  %v328_v51 = vld [vmem:[%s1952_s5 + $0x4e8] sm:$0xff]  ;;  %v2559_v61 = vmul.f32 %v579_v21, %v326_v58 }
  0xc4   : > { %3865 = vst [vmem:[#allocation108_spill] sm:$0xff] %v2469_v5  ;;  %3866 = vst [vmem:[#allocation109_spill] sm:$0xff] %v2476_v50  ;;  %v329_v5 = vld [vmem:[%s1952_s5 + $0x4f0] sm:$0xff]  ;;  %v330_v52 = vld [vmem:[%s1952_s5 + $0x4f8] sm:$0xff] }
  0xc5   : > { %3867 = vst [vmem:[#allocation110_spill] sm:$0xff] %v2479_v47  ;;  %3868 = vst [vmem:[#allocation111_spill] sm:$0xff] %v2482_v25  ;;  %v331_v16 = vld [vmem:[%s1952_s5 + $0x500] sm:$0xff]  ;;  %v332_v25 = vld [vmem:[%s1952_s5 + $0x508] sm:$0xff] }
  0xc6   : > { %3869 = vst [vmem:[#allocation112_spill] sm:$0xff] %v2485_v43  ;;  %3870 = vst [vmem:[#allocation113_spill] sm:$0xff] %v2492_v32  ;;  %v333_v47 = vld [vmem:[%s1952_s5 + $0x510] sm:$0xff]  ;;  %v334_v50 = vld [vmem:[%s1952_s5 + $0x518] sm:$0xff]  ;;  %v2540_v43 = vmul.f32 %v2421_v44, %v320_v23  ;;  %v2557_v23 = vmul.f32 %v579_v21, %v325_v18  ;;  %v2573_v18 = vmul.f32 %v579_v21, %v330_v52 }
  0xc7   : > { %3871 = vst [vmem:[#allocation114_spill] sm:$0xff] %v2495_v22  ;;  %3872 = vst [vmem:[#allocation115_spill] sm:$0xff] %v2498_v15  ;;  %v335_v26 = vld [vmem:[%s1952_s5 + $0x520] sm:$0xff]  ;;  %v337_v15 = vld [vmem:[%s1952_s5 + $0x530] sm:$0xff]  ;;  %v2575_v58 = vmul.f32 %v579_v21, %v331_v16  ;;  %v2583_v45 = vmul.f32 %v579_v21, %v333_v47 }
  0xc8   : > { %3873 = vst [vmem:[#allocation116_spill] sm:$0xff] %v2501_v20  ;;  %3874 = vst [vmem:[#allocation117_spill] sm:$0xff] %v2508_v31  ;;  %v336_v20 = vld [vmem:[%s1952_s5 + $0x528] sm:$0xff]  ;;  %v338_v22 = vld [vmem:[%s1952_s5 + $0x538] sm:$0xff] }
  0xc9   : > { %3875 = vst [vmem:[#allocation118_spill] sm:$0xff] %v2511_v30  ;;  %3876 = vst [vmem:[#allocation119_spill] sm:$0xff] %v2514_v8  ;;  %v339_v32 = vld [vmem:[%s1952_s5 + $0x540] sm:$0xff]  ;;  %v341_v8 = vld [vmem:[%s1952_s5 + $0x550] sm:$0xff] }
  0xca   : > { %3877 = vst [vmem:[#allocation120_spill] sm:$0xff] %v2517_v46  ;;  %3878 = vst [vmem:[#allocation121_spill] sm:$0xff] %v2524_v7  ;;  %v340_v46 = vld [vmem:[%s1952_s5 + $0x548] sm:$0xff]  ;;  %v342_v30 = vld [vmem:[%s1952_s5 + $0x558] sm:$0xff]  ;;  %v2555_v7 = vmul.f32 %v579_v21, %v324_v57  ;;  %v2571_v57 = vmul.f32 %v579_v21, %v329_v5  ;;  %v2587_v5 = vmul.f32 %v579_v21, %v335_v26 }
  0xcb   : > { %3879 = vst [vmem:[#allocation122_spill] sm:$0xff] %v2527_v1  ;;  %3880 = vst [vmem:[#allocation123_spill] sm:$0xff] %v2530_v9  ;;  %v343_v31 = vld [vmem:[%s1952_s5 + $0x560] sm:$0xff]  ;;  %v344_v59 = vld [vmem:[%s1952_s5 + $0x568] sm:$0xff]  ;;  %v2599_v47 = vmul.f32 %v579_v21, %v339_v32  ;;  %v2616_v32 = vpop.permute.xlu1 %588 }
  0xcc   : > { %3881 = vst [vmem:[#allocation124_spill] sm:$0xff] %v2533_v17  ;;  %3882 = vst [vmem:[#allocation125_spill] sm:$0xff] %v2540_v43  ;;  %v345_v17 = vld [vmem:[%s1952_s5 + $0x570] sm:$0xff]  ;;  %v346_v9 = vld [vmem:[%s1952_s5 + $0x578] sm:$0xff]  ;;  %v2569_v43 = vmul.f32 %v579_v21, %v328_v51  ;;  %v2585_v51 = vmul.f32 %v579_v21, %v334_v50 }
  0xcd   : > { %3883 = vst [vmem:[#allocation126_spill] sm:$0xff] %v2543_v38  ;;  %3884 = vst [vmem:[#allocation127_spill] sm:$0xff] %v2546_v42  ;;  %v347_v1 = vld [vmem:[%s1952_s5 + $0x580] sm:$0xff]  ;;  %v2561_v38 = vmul.f32 %v579_v21, %v327_v49  ;;  %v348_v44 = vld [vmem:[%s1952_s5 + $0x588] sm:$0xff] }
  0xce   : > { %3885 = vst [vmem:[#allocation128_spill] sm:$0xff] %v2549_v6  ;;  %3886 = vst [vmem:[#allocation129_spill] sm:$0xff] %v2555_v7  ;;  %v349_v60 = vld [vmem:[%s1952_s5 + $0x590] sm:$0xff]  ;;  %v350_v6 = vld [vmem:[%s1952_s5 + $0x598] sm:$0xff]  ;;  %v2581_v7 = vmul.f32 %v579_v21, %v332_v25  ;;  %v2597_v25 = vmul.f32 %v579_v21, %v338_v22  ;;  %v2614_v22 = vmul.f32 %v2563_v41, %v343_v31 }
  0xcf   : > { %3887 = vst [vmem:[#allocation130_spill] sm:$0xff] %v2557_v23  ;;  %3888 = vst [vmem:[#allocation131_spill] sm:$0xff] %v2559_v61  ;;  %v351_v42 = vld [vmem:[%s1952_s5 + $0x5a0] sm:$0xff]  ;;  %v352_v49 = vld [vmem:[%s1952_s5 + $0x5a8] sm:$0xff]  ;;  %v2632_v31 = vmul.f32 %v2563_v41, %v347_v1 }
  0xd0   : > { %3889 = vst [vmem:[#allocation132_spill] sm:$0xff] %v2561_v38  ;;  %3890 = vst [vmem:[#allocation133_spill] sm:$0xff] %v2569_v43  ;;  %v353_v38 = vld [vmem:[%s1952_s5 + $0x5b0] sm:$0xff]  ;;  %v354_v61 = vld [vmem:[%s1952_s5 + $0x5b8] sm:$0xff]  ;;  %v2595_v43 = vmul.f32 %v579_v21, %v337_v15  ;;  %v2611_v15 = vmul.f32 %v2563_v41, %v342_v30  ;;  %v2629_v30 = vmul.f32 %v2563_v41, %v346_v9 }
  0xd1   : > { %3891 = vst [vmem:[#allocation134_spill] sm:$0xff] %v2571_v57  ;;  %3892 = vst [vmem:[#allocation135_spill] sm:$0xff] %v2573_v18  ;;  %v355_v23 = vld [vmem:[%s1952_s5 + $0x5c0] sm:$0xff]  ;;  %v356_v52 = vld [vmem:[%s1952_s5 + $0x5c8] sm:$0xff]  ;;  %v2593_v57 = vmul.f32 %v579_v21, %v336_v20  ;;  %v2608_v20 = vmul.f32 %v2563_v41, %v341_v8  ;;  %v2626_v8 = vmul.f32 %v2563_v41, %v345_v17 }
  0xd2   : > { %3893 = vst [vmem:[#allocation136_spill] sm:$0xff] %v2575_v58  ;;  %3894 = vst [vmem:[#allocation137_spill] sm:$0xff] %v2581_v7  ;;  %v357_v18 = vld [vmem:[%s1952_s5 + $0x5d0] sm:$0xff]  ;;  %v358_v16 = vld [vmem:[%s1952_s5 + $0x5d8] sm:$0xff]  ;;  %v2642_v17 = vmul.f32 %v2563_v41, %v349_v60  ;;  %v2645_v9 = vmul.f32 %v2563_v41, %v350_v6  ;;  %v2648_v1 = vmul.f32 %v2563_v41, %v351_v42 }
  0xd3   : > { %3895 = vst [vmem:[#allocation138_spill] sm:$0xff] %v2583_v45  ;;  %3896 = vst [vmem:[#allocation139_spill] sm:$0xff] %v2585_v51  ;;  %v359_v58 = vld [vmem:[%s1952_s5 + $0x5e0] sm:$0xff]  ;;  %v360_v50 = vld [vmem:[%s1952_s5 + $0x5e8] sm:$0xff]  ;;  %v2605_v45 = vmul.f32 %v579_v21, %v340_v46  ;;  %v2623_v46 = vmul.f32 %v2563_v41, %v344_v59  ;;  %v2639_v59 = vmul.f32 %v2563_v41, %v348_v44 }
  0xd4   : > { %3897 = vst [vmem:[#allocation140_spill] sm:$0xff] %v2587_v5  ;;  %3898 = vst [vmem:[#allocation141_spill] sm:$0xff] %v2593_v57  ;;  %v361_v51 = vld [vmem:[%s1952_s5 + $0x5f0] sm:$0xff]  ;;  %v362_v26 = vld [vmem:[%s1952_s5 + $0x5f8] sm:$0xff]  ;;  %v2658_v44 = vmul.f32 %v2563_v41, %v353_v38  ;;  %v2661_v6 = vmul.f32 %v2563_v41, %v354_v61  ;;  %v2664_v42 = vmul.f32 %v2563_v41, %v355_v23 }
  0xd5   : > { %3899 = vst [vmem:[#allocation142_spill] sm:$0xff] %v2595_v43  ;;  %3900 = vst [vmem:[#allocation143_spill] sm:$0xff] %v2597_v25  ;;  %v363_v5 = vld [vmem:[%s1952_s5 + $0x600] sm:$0xff]  ;;  %v365_v25 = vld [vmem:[%s1952_s5 + $0x610] sm:$0xff]  ;;  %v2674_v38 = vmul.f32 %v2563_v41, %v357_v18  ;;  %v2677_v61 = vmul.f32 %v2616_v32, %v358_v16  ;;  %v2680_v23 = vmul.f32 %v2616_v32, %v359_v58 }
  0xd6   : > { %3901 = vst [vmem:[#allocation144_spill] sm:$0xff] %v2599_v47  ;;  %3902 = vst [vmem:[#allocation145_spill] sm:$0xff] %v2605_v45  ;;  %v364_v47 = vld [vmem:[%s1952_s5 + $0x608] sm:$0xff]  ;;  %v366_v43 = vld [vmem:[%s1952_s5 + $0x618] sm:$0xff]  ;;  %v2695_v18 = vmul.f32 %v2616_v32, %v362_v26  ;;  %v2698_v58 = vmul.f32 %v2616_v32, %v363_v5 }
  0xd7   : > { %3903 = vst [vmem:[#allocation146_spill] sm:$0xff] %v2611_v15  ;;  %3904 = vst [vmem:[#allocation147_spill] sm:$0xff] %v2614_v22  ;;  %v367_v21 = vld [vmem:[%s1952_s5 + $0x620] sm:$0xff]  ;;  %v368_v45 = vld [vmem:[%s1952_s5 + $0x628] sm:$0xff]  ;;  %v2655_v15 = vmul.f32 %v2563_v41, %v352_v49  ;;  %v2671_v49 = vmul.f32 %v2563_v41, %v356_v52  ;;  %v2692_v41 = vmul.f32 %v2616_v32, %v361_v51 }
  0xd8   : > { %3905 = vst [vmem:[#allocation148_spill] sm:$0xff] %v2623_v46  ;;  %3906 = vst [vmem:[#allocation149_spill] sm:$0xff] %v2626_v8  ;;  %v369_v57 = vld [vmem:[%s1952_s5 + $0x630] sm:$0xff]  ;;  %v370_v7 = vld [vmem:[%s1952_s5 + $0x638] sm:$0xff]  ;;  %v2708_v51 = vmul.f32 %v2616_v32, %v365_v25  ;;  %v2711_v26 = vmul.f32 %v2616_v32, %v366_v43  ;;  %v2714_v5 = vmul.f32 %v2616_v32, %v367_v21 }
  0xd9   : > { %3907 = vst [vmem:[#allocation150_spill] sm:$0xff] %v2629_v30  ;;  %3908 = vst [vmem:[#allocation151_spill] sm:$0xff] %v2632_v31  ;;  %v371_v22 = vld [vmem:[%s1952_s5 + $0x640] sm:$0xff]  ;;  %v372_v31 = vld [vmem:[%s1952_s5 + $0x648] sm:$0xff]  ;;  %v2724_v25 = vmul.f32 %v2616_v32, %v369_v57  ;;  %v2727_v43 = vmul.f32 %v2616_v32, %v370_v7 }
  0xda   : > { %3909 = vst [vmem:[#allocation152_spill] sm:$0xff] %v2639_v59  ;;  %3910 = vst [vmem:[#allocation153_spill] sm:$0xff] %v2642_v17  ;;  %v373_v30 = vld [vmem:[%s1952_s5 + $0x650] sm:$0xff]  ;;  %v374_v8 = vld [vmem:[%s1952_s5 + $0x658] sm:$0xff]  ;;  %v2730_v21 = vmul.f32 %v2616_v32, %v371_v22  ;;  %v2737_v59 = vmul.f32 %v2616_v32, %v372_v31 }
  0xdb   : > { %3911 = vst [vmem:[#allocation154_spill] sm:$0xff] %v2645_v9  ;;  %3912 = vst [vmem:[#allocation155_spill] sm:$0xff] %v2648_v1  ;;  %v375_v46 = vld [vmem:[%s1952_s5 + $0x660] sm:$0xff]  ;;  %v376_v60 = vld [vmem:[%s1952_s5 + $0x668] sm:$0xff]  ;;  %v2743_v7 = vmul.f32 %v2616_v32, %v374_v8  ;;  %v2764_v8 = vpop.permute.xlu1 %598 }
  0xdc   : > { %3913 = vst [vmem:[#allocation156_spill] sm:$0xff] %v2655_v15  ;;  %3914 = vst [vmem:[#allocation157_spill] sm:$0xff] %v2658_v44  ;;  %v377_v1 = vld [vmem:[%s1952_s5 + $0x670] sm:$0xff]  ;;  %v378_v9 = vld [vmem:[%s1952_s5 + $0x678] sm:$0xff] }
  0xdd   : > { %3915 = vst [vmem:[#allocation158_spill] sm:$0xff] %v2661_v6  ;;  %3916 = vst [vmem:[#allocation159_spill] sm:$0xff] %v2664_v42  ;;  %v379_v17 = vld [vmem:[%s1952_s5 + $0x680] sm:$0xff]  ;;  %v2682_v42 = vpop.permute.xlu0 %593  ;;  %v380_v6 = vld [vmem:[%s1952_s5 + $0x688] sm:$0xff] }
  0xde   : > { %3917 = vst [vmem:[#allocation160_spill] sm:$0xff] %v2671_v49  ;;  %3918 = vst [vmem:[#allocation161_spill] sm:$0xff] %v2674_v38  ;;  %v381_v44 = vld [vmem:[%s1952_s5 + $0x690] sm:$0xff]  ;;  %v382_v15 = vld [vmem:[%s1952_s5 + $0x698] sm:$0xff]  ;;  %v2689_v49 = vmul.f32 %v2616_v32, %v360_v50  ;;  %v2705_v50 = vmul.f32 %v2616_v32, %v364_v47  ;;  %v2721_v47 = vmul.f32 %v2616_v32, %v368_v45 }
  0xdf   : > { %3919 = vst [vmem:[#allocation162_spill] sm:$0xff] %v2677_v61  ;;  %3920 = vst [vmem:[#allocation163_spill] sm:$0xff] %v2680_v23  ;;  %v383_v52 = vld [vmem:[%s1952_s5 + $0x6a0] sm:$0xff]  ;;  %v384_v16 = vld [vmem:[%s1952_s5 + $0x6a8] sm:$0xff]  ;;  %v2740_v45 = vmul.f32 %v2616_v32, %v373_v30  ;;  %v2746_v57 = vmul.f32 %v2682_v42, %v375_v46  ;;  %v2753_v31 = vmul.f32 %v2682_v42, %v376_v60 }
  0xe0   : > { %3921 = vst [vmem:[#allocation164_spill] sm:$0xff] %v2689_v49  ;;  %3922 = vst [vmem:[#allocation165_spill] sm:$0xff] %v2692_v41  ;;  %v385_v38 = vld [vmem:[%s1952_s5 + $0x6b0] sm:$0xff]  ;;  %v386_v23 = vld [vmem:[%s1952_s5 + $0x6b8] sm:$0xff]  ;;  %v2756_v30 = vmul.f32 %v2682_v42, %v377_v1  ;;  %v2759_v32 = vmul.f32 %v2682_v42, %v378_v9  ;;  %v2762_v46 = vmul.f32 %v2682_v42, %v379_v17 }
  0xe1   : > { %3923 = vst [vmem:[#allocation166_spill] sm:$0xff] %v2695_v18  ;;  %3924 = vst [vmem:[#allocation167_spill] sm:$0xff] %v2698_v58  ;;  %v387_v61 = vld [vmem:[%s1952_s5 + $0x6c0] sm:$0xff]  ;;  %v388_v58 = vld [vmem:[%s1952_s5 + $0x6c8] sm:$0xff]  ;;  %v2774_v1 = vmul.f32 %v2682_v42, %v381_v44  ;;  %v2777_v9 = vmul.f32 %v2682_v42, %v382_v15  ;;  %v2780_v17 = vmul.f32 %v2682_v42, %v383_v52 }
  0xe2   : > { %3925 = vst [vmem:[#allocation168_spill] sm:$0xff] %v2705_v50  ;;  %3926 = vst [vmem:[#allocation169_spill] sm:$0xff] %v2708_v51  ;;  %v389_v18 = vld [vmem:[%s1952_s5 + $0x6d0] sm:$0xff]  ;;  %v390_v41 = vld [vmem:[%s1952_s5 + $0x6d8] sm:$0xff]  ;;  %v2790_v44 = vmul.f32 %v2682_v42, %v385_v38  ;;  %v2793_v15 = vmul.f32 %v2682_v42, %v386_v23  ;;  %v2796_v52 = vmul.f32 %v2682_v42, %v387_v61 }
  0xe3   : > { %3927 = vst [vmem:[#allocation170_spill] sm:$0xff] %v2711_v26  ;;  %3928 = vst [vmem:[#allocation171_spill] sm:$0xff] %v2714_v5  ;;  %v391_v49 = vld [vmem:[%s1952_s5 + $0x6e0] sm:$0xff]  ;;  %v392_v5 = vld [vmem:[%s1952_s5 + $0x6e8] sm:$0xff]  ;;  %v2806_v38 = vmul.f32 %v2682_v42, %v389_v18  ;;  %v2809_v23 = vmul.f32 %v2682_v42, %v390_v41 }
  0xe4   : > { %3929 = vst [vmem:[#allocation172_spill] sm:$0xff] %v2721_v47  ;;  %3930 = vst [vmem:[#allocation173_spill] sm:$0xff] %v2724_v25  ;;  %v393_v26 = vld [vmem:[%s1952_s5 + $0x6f0] sm:$0xff]  ;;  %v394_v51 = vld [vmem:[%s1952_s5 + $0x6f8] sm:$0xff]  ;;  %v2771_v47 = vmul.f32 %v2682_v42, %v380_v6  ;;  %v2787_v6 = vmul.f32 %v2682_v42, %v384_v16  ;;  %v2812_v61 = vmul.f32 %v2682_v42, %v391_v49  ;;  %v2830_v49 = vpop.permute.xlu0 %603 }
  0xe5   : > { %3931 = vst [vmem:[#allocation174_spill] sm:$0xff] %v2727_v43  ;;  %3932 = vst [vmem:[#allocation175_spill] sm:$0xff] %v2730_v21  ;;  %v395_v50 = vld [vmem:[%s1952_s5 + $0x700] sm:$0xff]  ;;  %v396_v22 = vld [vmem:[%s1952_s5 + $0x708] sm:$0xff]  ;;  %v2822_v18 = vmul.f32 %v2764_v8, %v393_v26  ;;  %v2825_v41 = vmul.f32 %v2764_v8, %v394_v51 }
  0xe6   : > { %3933 = vst [vmem:[#allocation176_spill] sm:$0xff] %v2737_v59  ;;  %3934 = vst [vmem:[#allocation177_spill] sm:$0xff] %v2740_v45  ;;  %v397_v21 = vld [vmem:[%s1952_s5 + $0x710] sm:$0xff]  ;;  %v398_v43 = vld [vmem:[%s1952_s5 + $0x718] sm:$0xff] }
  0xe7   : > { %3935 = vst [vmem:[#allocation178_spill] sm:$0xff] %v2743_v7  ;;  %3936 = vst [vmem:[#allocation179_spill] sm:$0xff] %v2746_v57  ;;  %v399_v25 = vld [vmem:[%s1952_s5 + $0x720] sm:$0xff]  ;;  %v400_v7 = vld [vmem:[%s1952_s5 + $0x728] sm:$0xff]  ;;  %v2803_v57 = vmul.f32 %v2682_v42, %v388_v58  ;;  %v2819_v58 = vmul.f32 %v2764_v8, %v392_v5  ;;  %v2828_v42 = vmul.f32 %v2764_v8, %v395_v50 }
  0xe8   : > { %3937 = vst [vmem:[#allocation180_spill] sm:$0xff] %v2753_v31  ;;  %3938 = vst [vmem:[#allocation181_spill] sm:$0xff] %v2756_v30  ;;  %v401_v45 = vld [vmem:[%s1952_s5 + $0x730] sm:$0xff]  ;;  %v402_v59 = vld [vmem:[%s1952_s5 + $0x738] sm:$0xff]  ;;  %v2840_v26 = vmul.f32 %v2764_v8, %v397_v21  ;;  %v2843_v51 = vmul.f32 %v2764_v8, %v398_v43  ;;  %v2846_v50 = vmul.f32 %v2764_v8, %v399_v25 }
  0xe9   : > { %3939 = vst [vmem:[#allocation182_spill] sm:$0xff] %v2759_v32  ;;  %3940 = vst [vmem:[#allocation183_spill] sm:$0xff] %v2762_v46  ;;  %v403_v60 = vld [vmem:[%s1952_s5 + $0x740] sm:$0xff]  ;;  %v404_v46 = vld [vmem:[%s1952_s5 + $0x748] sm:$0xff]  ;;  %v2856_v21 = vmul.f32 %v2764_v8, %v401_v45  ;;  %v2859_v43 = vmul.f32 %v2764_v8, %v402_v59 }
  0xea   : > { %3941 = vst [vmem:[#allocation184_spill] sm:$0xff] %v2764_v8  ;;  %3942 = vst [vmem:[#allocation185_spill] sm:$0xff] %v2771_v47  ;;  %v405_v32 = vld [vmem:[%s1952_s5 + $0x750] sm:$0xff]  ;;  %v406_v30 = vld [vmem:[%s1952_s5 + $0x758] sm:$0xff]  ;;  %v2862_v25 = vmul.f32 %v2764_v8, %v403_v60 }
  0xeb   : > { %3943 = vst [vmem:[#allocation186_spill] sm:$0xff] %v2774_v1  ;;  %3944 = vst [vmem:[#allocation187_spill] sm:$0xff] %v2777_v9  ;;  %v407_v31 = vld [vmem:[%s1952_s5 + $0x760] sm:$0xff]  ;;  %v410_v9 = vld [vmem:[%s1952_s5 + $0x778] sm:$0xff]  ;;  %v2872_v45 = vmul.f32 %v2764_v8, %v405_v32  ;;  %v2875_v59 = vmul.f32 %v2764_v8, %v406_v30 }
  0xec   : > { %3945 = vst [vmem:[#allocation188_spill] sm:$0xff] %v2780_v17  ;;  %3946 = vst [vmem:[#allocation189_spill] sm:$0xff] %v2787_v6  ;;  %v409_v17 = vld [vmem:[%s1952_s5 + $0x770] sm:$0xff]  ;;  %v411_v1 = vld [vmem:[%s1952_s5 + $0x780] sm:$0xff]  ;;  %v2888_v32 = vmul.f32 %v2830_v49, %v410_v9 }
  0xed   : > { %3947 = vst [vmem:[#allocation190_spill] sm:$0xff] %v2790_v44  ;;  %3948 = vst [vmem:[#allocation191_spill] sm:$0xff] %v2793_v15  ;;  %v412_v47 = vld [vmem:[%s1952_s5 + $0x788] sm:$0xff]  ;;  %v413_v16 = vld [vmem:[%s1952_s5 + $0x790] sm:$0xff]  ;;  %v2891_v30 = vmul.f32 %v2830_v49, %v411_v1 }
  0xee   : > { %3949 = vst [vmem:[#allocation192_spill] sm:$0xff] %v2796_v52  ;;  %3950 = vst [vmem:[#allocation193_spill] sm:$0xff] %v2803_v57  ;;  %v414_v52 = vld [vmem:[%s1952_s5 + $0x798] sm:$0xff]  ;;  %v415_v15 = vld [vmem:[%s1952_s5 + $0x7a0] sm:$0xff]  ;;  %v2837_v57 = vmul.f32 %v2764_v8, %v396_v22  ;;  %v2853_v22 = vmul.f32 %v2764_v8, %v400_v7  ;;  %v2878_v7 = vmul.f32 %v2764_v8, %v407_v31 }
  0xef   : > { %3951 = vst [vmem:[#allocation194_spill] sm:$0xff] %v2806_v38  ;;  %3952 = vst [vmem:[#allocation195_spill] sm:$0xff] %v2809_v23  ;;  %v416_v44 = vld [vmem:[%s1952_s5 + $0x7a8] sm:$0xff]  ;;  %v418_v23 = vld [vmem:[%s1952_s5 + $0x7b8] sm:$0xff]  ;;  %v2894_v31 = vmul.f32 %v2830_v49, %v412_v47  ;;  %v2906_v9 = vmul.f32 %v2830_v49, %v414_v52  ;;  %v2909_v1 = vmul.f32 %v2830_v49, %v415_v15 }
  0xf0   : > { %3953 = vst [vmem:[#allocation196_spill] sm:$0xff] %v2812_v61  ;;  %3954 = vst [vmem:[#allocation197_spill] sm:$0xff] %v2819_v58  ;;  %v417_v61 = vld [vmem:[%s1952_s5 + $0x7b0] sm:$0xff]  ;;  %v419_v38 = vld [vmem:[%s1952_s5 + $0x7c0] sm:$0xff]  ;;  %v2869_v58 = vmul.f32 %v2764_v8, %v404_v46  ;;  %v2885_v46 = vmul.f32 %v2830_v49, %v409_v17  ;;  %v2896_v8 = vpop.permute.xlu1 %608  ;;  %v2912_v47 = vmul.f32 %v2830_v49, %v416_v44 }
  0xf1   : > { %3955 = vst [vmem:[#allocation198_spill] sm:$0xff] %v2822_v18  ;;  %3956 = vst [vmem:[#allocation199_spill] sm:$0xff] %v2825_v41  ;;  %v420_v5 = vld [vmem:[%s1952_s5 + $0x7c8] sm:$0xff]  ;;  %v421_v6 = vld [vmem:[%s1952_s5 + $0x7d0] sm:$0xff]  ;;  %v2922_v52 = vmul.f32 %v2830_v49, %v418_v23  ;;  %v2925_v15 = vmul.f32 %v2830_v49, %v419_v38 }
  0xf2   : > { %3957 = vst [vmem:[#allocation200_spill] sm:$0xff] %v2828_v42  ;;  %3958 = vst [vmem:[#allocation201_spill] sm:$0xff] %v2830_v49  ;;  %v422_v42 = vld [vmem:[%s1952_s5 + $0x7d8] sm:$0xff]  ;;  %v423_v41 = vld [vmem:[%s1952_s5 + $0x7e0] sm:$0xff]  ;;  %v2928_v44 = vmul.f32 %v2830_v49, %v420_v5 }
  0xf3   : > { %3959 = vst [vmem:[#allocation202_spill] sm:$0xff] %v2837_v57  ;;  %3960 = vst [vmem:[#allocation203_spill] sm:$0xff] %v2840_v26  ;;  %v424_v18 = vld [vmem:[%s1952_s5 + $0x7e8] sm:$0xff]  ;;  %v429_v57 = vld [vmem:[%s1952_s5 + $0x810] sm:$0xff]  ;;  %v2941_v23 = vmul.f32 %v2830_v49, %v423_v41 }
  0xf4   : > { %3961 = vst [vmem:[#allocation204_spill] sm:$0xff] %v2843_v51  ;;  %3962 = vst [vmem:[#allocation205_spill] sm:$0xff] %v2846_v50  ;;  %v426_v50 = vld [vmem:[%s1952_s5 + $0x7f8] sm:$0xff]  ;;  %v427_v51 = vld [vmem:[%s1952_s5 + $0x800] sm:$0xff]  ;;  %v2944_v38 = vmul.f32 %v2830_v49, %v424_v18  ;;  %v2960_v41 = vmul.f32 %v2896_v8, %v429_v57  ;;  %v2962_v18 = vpop.permute.xlu0 %613 }
  0xf5   : > { %3963 = vst [vmem:[#allocation206_spill] sm:$0xff] %v2853_v22  ;;  %3964 = vst [vmem:[#allocation207_spill] sm:$0xff] %v2856_v21  ;;  %v428_v26 = vld [vmem:[%s1952_s5 + $0x808] sm:$0xff]  ;;  %v430_v60 = vld [vmem:[%s1952_s5 + $0x818] sm:$0xff] }
  0xf6   : > { %3965 = vst [vmem:[#allocation208_spill] sm:$0xff] %v2859_v43  ;;  %3966 = vst [vmem:[#allocation209_spill] sm:$0xff] %v2862_v25  ;;  %v431_v25 = vld [vmem:[%s1952_s5 + $0x820] sm:$0xff]  ;;  %v432_v43 = vld [vmem:[%s1952_s5 + $0x828] sm:$0xff] }
  0xf7   : > { %3967 = vst [vmem:[#allocation210_spill] sm:$0xff] %v2869_v58  ;;  %3968 = vst [vmem:[#allocation211_spill] sm:$0xff] %v2872_v45  ;;  %v433_v21 = vld [vmem:[%s1952_s5 + $0x830] sm:$0xff]  ;;  %v436_v45 = vld [vmem:[%s1952_s5 + $0x848] sm:$0xff]  ;;  %v2903_v58 = vmul.f32 %v2830_v49, %v413_v16  ;;  %v2919_v16 = vmul.f32 %v2830_v49, %v417_v61  ;;  %v2938_v61 = vmul.f32 %v2830_v49, %v422_v42 }
  0xf8   : > { %3969 = vst [vmem:[#allocation212_spill] sm:$0xff] %v2875_v59  ;;  %3970 = vst [vmem:[#allocation213_spill] sm:$0xff] %v2878_v7  ;;  %v434_v7 = vld [vmem:[%s1952_s5 + $0x838] sm:$0xff]  ;;  %v435_v59 = vld [vmem:[%s1952_s5 + $0x840] sm:$0xff]  ;;  %v2957_v42 = vmul.f32 %v2896_v8, %v428_v26  ;;  %v2974_v26 = vmul.f32 %v2896_v8, %v432_v43  ;;  %v2977_v57 = vmul.f32 %v2896_v8, %v433_v21 }
  0xf9   : > { %3971 = vst [vmem:[#allocation214_spill] sm:$0xff] %v2885_v46  ;;  %3972 = vst [vmem:[#allocation215_spill] sm:$0xff] %v2888_v32  ;;  %v437_v17 = vld [vmem:[%s1952_s5 + $0x850] sm:$0xff]  ;;  %v438_v22 = vld [vmem:[%s1952_s5 + $0x858] sm:$0xff]  ;;  %v2935_v46 = vmul.f32 %v2830_v49, %v421_v6  ;;  %v2954_v6 = vmul.f32 %v2896_v8, %v427_v51  ;;  %v2971_v51 = vmul.f32 %v2896_v8, %v431_v25 }
  0xfa   : > { %3973 = vst [vmem:[#allocation216_spill] sm:$0xff] %v2891_v30  ;;  %3974 = vst [vmem:[#allocation217_spill] sm:$0xff] %v2894_v31  ;;  %v439_v31 = vld [vmem:[%s1952_s5 + $0x860] sm:$0xff]  ;;  %v440_v30 = vld [vmem:[%s1952_s5 + $0x868] sm:$0xff]  ;;  %v2989_v25 = vmul.f32 %v2896_v8, %v436_v45  ;;  %v2992_v43 = vmul.f32 %v2896_v8, %v437_v17 }
  0xfb   : > { %3975 = vst [vmem:[#allocation218_spill] sm:$0xff] %v2896_v8  ;;  %3976 = vst [vmem:[#allocation219_spill] sm:$0xff] %v2903_v58  ;;  %v441_v32 = vld [vmem:[%s1952_s5 + $0x870] sm:$0xff]  ;;  %v446_v58 = vld [vmem:[%s1952_s5 + $0x898] sm:$0xff] }
  0xfc   : > { %3977 = vst [vmem:[#allocation220_spill] sm:$0xff] %v2906_v9  ;;  %3978 = vst [vmem:[#allocation221_spill] sm:$0xff] %v2909_v1  ;;  %v444_v1 = vld [vmem:[%s1952_s5 + $0x888] sm:$0xff]  ;;  %v445_v9 = vld [vmem:[%s1952_s5 + $0x890] sm:$0xff]  ;;  %v3007_v45 = vmul.f32 %v2896_v8, %v441_v32  ;;  %v3024_v32 = vpop.permute.xlu1 %618 }
  0xfd   : > { %3979 = vst [vmem:[#allocation222_spill] sm:$0xff] %v2912_v47  ;;  %3980 = vst [vmem:[#allocation223_spill] sm:$0xff] %v2919_v16  ;;  %v443_v47 = vld [vmem:[%s1952_s5 + $0x880] sm:$0xff]  ;;  %v2951_v16 = vmul.f32 %v2896_v8, %v426_v50  ;;  %v2968_v50 = vmul.f32 %v2896_v8, %v430_v60  ;;  %v2986_v60 = vmul.f32 %v2896_v8, %v435_v59  ;;  %v457_v21 = vld [vmem:[%s1952_s5 + $0x8f0] sm:$0xff] }
  0xfe   : > { %3981 = vst [vmem:[#allocation224_spill] sm:$0xff] %v2922_v52  ;;  %3982 = vst [vmem:[#allocation225_spill] sm:$0xff] %v2925_v15  ;;  %v447_v5 = vld [vmem:[%s1952_s5 + $0x8a0] sm:$0xff]  ;;  %v449_v15 = vld [vmem:[%s1952_s5 + $0x8b0] sm:$0xff]  ;;  %v3004_v59 = vmul.f32 %v2896_v8, %v440_v30  ;;  %v3022_v30 = vmul.f32 %v2962_v18, %v446_v58 }
  0xff   : > { %3983 = vst [vmem:[#allocation226_spill] sm:$0xff] %v2928_v44  ;;  %3984 = vst [vmem:[#allocation227_spill] sm:$0xff] %v2935_v46  ;;  %v448_v44 = vld [vmem:[%s1952_s5 + $0x8a8] sm:$0xff]  ;;  %v450_v52 = vld [vmem:[%s1952_s5 + $0x8b8] sm:$0xff] }
 0x100   : > { %3985 = vst [vmem:[#allocation228_spill] sm:$0xff] %v2938_v61  ;;  %3986 = vst [vmem:[#allocation229_spill] sm:$0xff] %v2941_v23  ;;  %v451_v49 = vld [vmem:[%s1952_s5 + $0x8c0] sm:$0xff]  ;;  %v453_v23 = vld [vmem:[%s1952_s5 + $0x8d0] sm:$0xff]  ;;  %v3039_v58 = vmul.f32 %v2962_v18, %v450_v52 }
 0x101   : > { %3987 = vst [vmem:[#allocation230_spill] sm:$0xff] %v2944_v38  ;;  %3988 = vst [vmem:[#allocation231_spill] sm:$0xff] %v2957_v42  ;;  %v452_v38 = vld [vmem:[%s1952_s5 + $0x8c8] sm:$0xff]  ;;  %v454_v61 = vld [vmem:[%s1952_s5 + $0x8d8] sm:$0xff]  ;;  %v2983_v42 = vmul.f32 %v2896_v8, %v434_v7  ;;  %v3001_v7 = vmul.f32 %v2896_v8, %v439_v31  ;;  %v3019_v31 = vmul.f32 %v2962_v18, %v445_v9 }
 0x102   : > { %3989 = vst [vmem:[#allocation232_spill] sm:$0xff] %v2960_v41  ;;  %3990 = vst [vmem:[#allocation233_spill] sm:$0xff] %v2962_v18  ;;  %v455_v46 = vld [vmem:[%s1952_s5 + $0x8e0] sm:$0xff]  ;;  %v456_v41 = vld [vmem:[%s1952_s5 + $0x8e8] sm:$0xff]  ;;  %v3036_v9 = vmul.f32 %v2962_v18, %v449_v15  ;;  %v3054_v15 = vmul.f32 %v2962_v18, %v454_v61 }
 0x103   : > { %3991 = vst [vmem:[#allocation234_spill] sm:$0xff] %v2971_v51  ;;  %3992 = vst [vmem:[#allocation235_spill] sm:$0xff] %v2974_v26  ;;  %v460_v26 = vld [vmem:[%s1952_s5 + $0x908] sm:$0xff]  ;;  %v2998_v51 = vmul.f32 %v2896_v8, %v438_v22  ;;  %v461_v17 = vld [vmem:[%s1952_s5 + $0x910] sm:$0xff]  ;;  %v3016_v22 = vmul.f32 %v2962_v18, %v444_v1  ;;  %v3033_v1 = vmul.f32 %v2962_v18, %v448_v44 }
 0x104   : > { %3993 = vst [vmem:[#allocation236_spill] sm:$0xff] %v2977_v57  ;;  %3994 = vst [vmem:[#allocation237_spill] sm:$0xff] %v2983_v42  ;;  %v458_v57 = vld [vmem:[%s1952_s5 + $0x8f8] sm:$0xff]  ;;  %v464_v8 = vld [vmem:[%s1952_s5 + $0x928] sm:$0xff]  ;;  %v3051_v44 = vmul.f32 %v2962_v18, %v453_v23  ;;  %v3075_v61 = vmul.f32 %v3024_v32, %v460_v26 }
 0x105   : > { %3995 = vst [vmem:[#allocation238_spill] sm:$0xff] %v2986_v60  ;;  %3996 = vst [vmem:[#allocation239_spill] sm:$0xff] %v2989_v25  ;;  %v463_v25 = vld [vmem:[%s1952_s5 + $0x920] sm:$0xff]  ;;  %v3013_v60 = vmul.f32 %v2962_v18, %v443_v47  ;;  %v3030_v47 = vmul.f32 %v2962_v18, %v447_v5  ;;  %v469_v42 = vld [vmem:[%s1952_s5 + $0x950] sm:$0xff]  ;;  %v3048_v5 = vmul.f32 %v2962_v18, %v452_v38 }
 0x106   : > { %3997 = vst [vmem:[#allocation240_spill] sm:$0xff] %v2992_v43  ;;  %3998 = vst [vmem:[#allocation241_spill] sm:$0xff] %v2998_v51  ;;  %v462_v43 = vld [vmem:[%s1952_s5 + $0x918] sm:$0xff]  ;;  %v468_v51 = vld [vmem:[%s1952_s5 + $0x948] sm:$0xff]  ;;  %v3069_v38 = vmul.f32 %v2962_v18, %v458_v57 }
 0x107   : > { %3999 = vst [vmem:[#allocation242_spill] sm:$0xff] %v3001_v7  ;;  %4000 = vst [vmem:[#allocation243_spill] sm:$0xff] %v3004_v59  ;;  %v466_v59 = vld [vmem:[%s1952_s5 + $0x938] sm:$0xff]  ;;  %v467_v7 = vld [vmem:[%s1952_s5 + $0x940] sm:$0xff] }
 0x108   : > { %4001 = vst [vmem:[#allocation244_spill] sm:$0xff] %v3007_v45  ;;  %4002 = vst [vmem:[#allocation245_spill] sm:$0xff] %v3022_v30  ;;  %v465_v45 = vld [vmem:[%s1952_s5 + $0x930] sm:$0xff]  ;;  %v3045_v30 = vmul.f32 %v2962_v18, %v451_v49  ;;  %v471_v52 = vld [vmem:[%s1952_s5 + $0x960] sm:$0xff]  ;;  %v3066_v49 = vmul.f32 %v2962_v18, %v457_v21  ;;  %v3087_v21 = vmul.f32 %v3024_v32, %v464_v8 }
 0x109   : > { %4003 = vst [vmem:[#allocation246_spill] sm:$0xff] %v3024_v32  ;;  %4004 = vst [vmem:[#allocation247_spill] sm:$0xff] %v3030_v47  ;;  %v3063_v47 = vmul.f32 %v2962_v18, %v456_v41  ;;  %v473_v23 = vld [vmem:[%s1952_s5 + $0x970] sm:$0xff]  ;;  %v3084_v41 = vmul.f32 %v3024_v32, %v463_v25  ;;  %v3090_v57 = vmul.f32 %v3024_v32, %v465_v45 }
 0x10a   : > { %4005 = vst [vmem:[#allocation248_spill] sm:$0xff] %v3033_v1  ;;  %4006 = vst [vmem:[#allocation249_spill] sm:$0xff] %v3036_v9  ;;  %v470_v9 = vld [vmem:[%s1952_s5 + $0x958] sm:$0xff]  ;;  %v3060_v1 = vmul.f32 %v2962_v18, %v455_v46  ;;  %v3081_v46 = vmul.f32 %v3024_v32, %v462_v43  ;;  %v3093_v18 = vmul.f32 %v3024_v32, %v466_v59 }
 0x10b   : > { %4007 = vst [vmem:[#allocation250_spill] sm:$0xff] %v3039_v58  ;;  %4008 = vst [vmem:[#allocation251_spill] sm:$0xff] %v3048_v5  ;;  %v472_v58 = vld [vmem:[%s1952_s5 + $0x968] sm:$0xff]  ;;  %v475_v5 = vld [vmem:[%s1952_s5 + $0x980] sm:$0xff]  ;;  %v3096_v26 = vmul.f32 %v3024_v32, %v467_v7  ;;  %v3102_v43 = vmul.f32 %v3024_v32, %v469_v42  ;;  %v3105_v25 = vmul.f32 %v3024_v32, %v470_v9 }
 0x10c   : > { %4009 = vst [vmem:[#allocation252_spill] sm:$0xff] %v3051_v44  ;;  %4010 = vst [vmem:[#allocation253_spill] sm:$0xff] %v3054_v15  ;;  %v474_v44 = vld [vmem:[%s1952_s5 + $0x978] sm:$0xff]  ;;  %v3078_v15 = vmul.f32 %v3024_v32, %v461_v17  ;;  %v3099_v17 = vmul.f32 %v3024_v32, %v468_v51  ;;  %v3108_v8 = vmul.f32 %v3024_v32, %v471_v52 }
 0x10d   : > { %v3111_v45 = vmul.f32 %v3024_v32, %v472_v58  ;;  %v3114_v59 = vmul.f32 %v3024_v32, %v473_v23  ;;  %v3117_v7 = vmul.f32 %v3024_v32, %v474_v44  ;;  %v3120_v51 = vmul.f32 %v3024_v32, %v475_v5  ;;  %v4138_v32 = vld [vmem:[#allocation28_spill] sm:$0xff] }
 0x10e   : > { %v971_v42 = vadd.f32 %v2035_v24, %v1979_v48  ;;  %v996_v9 = vadd.f32 %v2037_v27, %v1985_v53  ;;  %v1021_v52 = vadd.f32 %v2039_v28, %v1987_v54  ;;  %v1046_v58 = vadd.f32 %v2041_v29, %v1989_v55 }
 0x10f   : > { %v1071_v23 = vadd.f32 %v2047_v33, %v1991_v56  ;;  %v1096_v44 = vadd.f32 %v2049_v34, %v1997_v62  ;;  %v1121_v5 = vadd.f32 %v2051_v35, %v1999_v63  ;;  %v1146_v48 = vadd.f32 %v2053_v36, %v2001_v0  ;;  %v4011_v34 = vld [vmem:[#allocation31_spill] sm:$0xff]  ;;  %v4012_v36 = vld [vmem:[#allocation32_spill] sm:$0xff] }
 0x110   : > { %v972_v53 = vadd.f32 %v971_v42, %v2086_v2  ;;  %v997_v24 = vadd.f32 %v996_v9, %v2089_v3  ;;  %v1022_v54 = vadd.f32 %v1021_v52, %v2092_v4  ;;  %v1047_v55 = vadd.f32 %v1046_v58, %v2101_v11  ;;  %v4013_v3 = vld [vmem:[#allocation33_spill] sm:$0xff]  ;;  %v4014_v11 = vld [vmem:[#allocation34_spill] sm:$0xff]  ;;  %v4018_v52 = vld [vmem:[#allocation47_spill] sm:$0xff] }
 0x111   : > { %v1072_v27 = vadd.f32 %v1071_v23, %v2104_v12  ;;  %v1097_v56 = vadd.f32 %v1096_v44, %v2107_v13  ;;  %v1122_v62 = vadd.f32 %v1121_v5, %v2110_v14  ;;  %v1147_v28 = vadd.f32 %v1146_v48, %v2117_v19  ;;  %v4015_v13 = vld [vmem:[#allocation44_spill] sm:$0xff]  ;;  %v4016_v42 = vld [vmem:[#allocation45_spill] sm:$0xff]  ;;  %v4017_v9 = vld [vmem:[#allocation46_spill] sm:$0xff] }
 0x112   : > { %v973_v63 = vadd.f32 %v972_v53, %v2155_v39  ;;  %v998_v0 = vadd.f32 %v997_v24, %v2158_v40  ;;  %v1023_v29 = vadd.f32 %v1022_v54, %v2167_v37  ;;  %v1048_v33 = vadd.f32 %v1047_v55, %v2170_v10  ;;  %v4019_v58 = vld [vmem:[#allocation48_spill] sm:$0xff]  ;;  %v4020_v23 = vld [vmem:[#allocation49_spill] sm:$0xff]  ;;  %v4021_v44 = vld [vmem:[#allocation50_spill] sm:$0xff] }
 0x113   : > { %v1073_v35 = vadd.f32 %v1072_v27, %v4011_v34  ;;  %v1098_v2 = vadd.f32 %v1097_v56, %v4012_v36  ;;  %v1123_v4 = vadd.f32 %v1122_v62, %v4013_v3  ;;  %v1148_v12 = vadd.f32 %v1147_v28, %v4014_v11  ;;  %v4022_v48 = vld [vmem:[#allocation51_spill] sm:$0xff]  ;;  %v4023_v24 = vld [vmem:[#allocation61_spill] sm:$0xff]  ;;  %v4024_v55 = vld [vmem:[#allocation62_spill] sm:$0xff] }
 0x114   : > { %v974_v14 = vadd.f32 %v973_v63, %v4015_v13  ;;  %v999_v19 = vadd.f32 %v998_v0, %v4016_v42  ;;  %v1024_v39 = vadd.f32 %v1023_v29, %v4017_v9  ;;  %v1049_v40 = vadd.f32 %v1048_v33, %v4018_v52  ;;  %v4025_v56 = vld [vmem:[#allocation63_spill] sm:$0xff]  ;;  %v4026_v28 = vld [vmem:[#allocation64_spill] sm:$0xff]  ;;  %v4027_v0 = vld [vmem:[#allocation65_spill] sm:$0xff] }
 0x115   : > { %v1074_v37 = vadd.f32 %v1073_v35, %v4019_v58  ;;  %v1099_v10 = vadd.f32 %v1098_v2, %v4020_v23  ;;  %v1124_v5 = vadd.f32 %v1123_v4, %v4021_v44  ;;  %v1149_v53 = vadd.f32 %v1148_v12, %v4022_v48  ;;  %v4028_v34 = vld [vmem:[#allocation66_spill] sm:$0xff]  ;;  %v4029_v36 = vld [vmem:[#allocation67_spill] sm:$0xff]  ;;  %v4030_v3 = vld [vmem:[#allocation68_spill] sm:$0xff] }
 0x116   : > { %v975_v54 = vadd.f32 %v974_v14, %v4023_v24  ;;  %v1000_v27 = vadd.f32 %v999_v19, %v4024_v55  ;;  %v1025_v62 = vadd.f32 %v1024_v39, %v4025_v56  ;;  %v1050_v63 = vadd.f32 %v1049_v40, %v4026_v28  ;;  %v4031_v11 = vld [vmem:[#allocation78_spill] sm:$0xff]  ;;  %v4032_v13 = vld [vmem:[#allocation79_spill] sm:$0xff]  ;;  %v4033_v42 = vld [vmem:[#allocation80_spill] sm:$0xff] }
 0x117   : > { %v1075_v29 = vadd.f32 %v1074_v37, %v4027_v0  ;;  %v1100_v33 = vadd.f32 %v1099_v10, %v4028_v34  ;;  %v1125_v35 = vadd.f32 %v1124_v5, %v4029_v36  ;;  %v1150_v2 = vadd.f32 %v1149_v53, %v4030_v3  ;;  %v4034_v9 = vld [vmem:[#allocation81_spill] sm:$0xff]  ;;  %v4035_v52 = vld [vmem:[#allocation82_spill] sm:$0xff]  ;;  %v4036_v58 = vld [vmem:[#allocation83_spill] sm:$0xff] }
 0x118   : > { %v976_v4 = vadd.f32 %v975_v54, %v4031_v11  ;;  %v1001_v12 = vadd.f32 %v1000_v27, %v4032_v13  ;;  %v1026_v14 = vadd.f32 %v1025_v62, %v4033_v42  ;;  %v1051_v19 = vadd.f32 %v1050_v63, %v4034_v9  ;;  %v4037_v23 = vld [vmem:[#allocation84_spill] sm:$0xff]  ;;  %v4038_v44 = vld [vmem:[#allocation85_spill] sm:$0xff]  ;;  %v4039_v48 = vld [vmem:[#allocation95_spill] sm:$0xff] }
 0x119   : > { %v1076_v39 = vadd.f32 %v1075_v29, %v4035_v52  ;;  %v1101_v40 = vadd.f32 %v1100_v33, %v4036_v58  ;;  %v1126_v37 = vadd.f32 %v1125_v35, %v4037_v23  ;;  %v1151_v10 = vadd.f32 %v1150_v2, %v4038_v44  ;;  %v4040_v24 = vld [vmem:[#allocation96_spill] sm:$0xff]  ;;  %v4041_v55 = vld [vmem:[#allocation97_spill] sm:$0xff]  ;;  %v4042_v56 = vld [vmem:[#allocation98_spill] sm:$0xff] }
 0x11a   : > { %v977_v5 = vadd.f32 %v976_v4, %v4039_v48  ;;  %v1002_v53 = vadd.f32 %v1001_v12, %v4040_v24  ;;  %v1027_v54 = vadd.f32 %v1026_v14, %v4041_v55  ;;  %v1052_v27 = vadd.f32 %v1051_v19, %v4042_v56  ;;  %v4043_v28 = vld [vmem:[#allocation99_spill] sm:$0xff]  ;;  %v4044_v0 = vld [vmem:[#allocation100_spill] sm:$0xff]  ;;  %v4045_v34 = vld [vmem:[#allocation101_spill] sm:$0xff] }
 0x11b   : > { %v1077_v62 = vadd.f32 %v1076_v39, %v4043_v28  ;;  %v1102_v63 = vadd.f32 %v1101_v40, %v4044_v0  ;;  %v1127_v29 = vadd.f32 %v1126_v37, %v4045_v34  ;;  %v4046_v36 = vld [vmem:[#allocation102_spill] sm:$0xff]  ;;  %v4047_v3 = vld [vmem:[#allocation112_spill] sm:$0xff]  ;;  %v4048_v11 = vld [vmem:[#allocation113_spill] sm:$0xff] }
 0x11c   : > { %v1152_v33 = vadd.f32 %v1151_v10, %v4046_v36  ;;  %v978_v35 = vadd.f32 %v977_v5, %v4047_v3  ;;  %v1003_v2 = vadd.f32 %v1002_v53, %v4048_v11  ;;  %v4049_v13 = vld [vmem:[#allocation114_spill] sm:$0xff]  ;;  %v4050_v42 = vld [vmem:[#allocation115_spill] sm:$0xff]  ;;  %v4051_v9 = vld [vmem:[#allocation116_spill] sm:$0xff] }
 0x11d   : > { %v1028_v4 = vadd.f32 %v1027_v54, %v4049_v13  ;;  %v1053_v12 = vadd.f32 %v1052_v27, %v4050_v42  ;;  %v1078_v14 = vadd.f32 %v1077_v62, %v4051_v9  ;;  %v4052_v52 = vld [vmem:[#allocation117_spill] sm:$0xff]  ;;  %v4053_v58 = vld [vmem:[#allocation118_spill] sm:$0xff]  ;;  %v4054_v23 = vld [vmem:[#allocation119_spill] sm:$0xff] }
 0x11e   : > { %v1103_v19 = vadd.f32 %v1102_v63, %v4052_v52  ;;  %v1128_v39 = vadd.f32 %v1127_v29, %v4053_v58  ;;  %v1153_v40 = vadd.f32 %v1152_v33, %v4054_v23  ;;  %v4055_v44 = vld [vmem:[#allocation129_spill] sm:$0xff]  ;;  %v4056_v48 = vld [vmem:[#allocation130_spill] sm:$0xff]  ;;  %v4057_v24 = vld [vmem:[#allocation131_spill] sm:$0xff] }
 0x11f   : > { %v979_v37 = vadd.f32 %v978_v35, %v4055_v44  ;;  %v1004_v10 = vadd.f32 %v1003_v2, %v4056_v48  ;;  %v1029_v5 = vadd.f32 %v1028_v4, %v4057_v24  ;;  %v4058_v55 = vld [vmem:[#allocation132_spill] sm:$0xff]  ;;  %v4059_v56 = vld [vmem:[#allocation133_spill] sm:$0xff]  ;;  %v4060_v28 = vld [vmem:[#allocation134_spill] sm:$0xff] }
 0x120   : > { %v1054_v53 = vadd.f32 %v1053_v12, %v4058_v55  ;;  %v1079_v54 = vadd.f32 %v1078_v14, %v4059_v56  ;;  %v1104_v27 = vadd.f32 %v1103_v19, %v4060_v28  ;;  %v4061_v0 = vld [vmem:[#allocation135_spill] sm:$0xff]  ;;  %v4062_v34 = vld [vmem:[#allocation136_spill] sm:$0xff]  ;;  %v4063_v36 = vld [vmem:[#allocation146_spill] sm:$0xff] }
 0x121   : > { %v1129_v62 = vadd.f32 %v1128_v39, %v4061_v0  ;;  %v1154_v63 = vadd.f32 %v1153_v40, %v4062_v34  ;;  %v980_v29 = vadd.f32 %v979_v37, %v2608_v20  ;;  %v1005_v33 = vadd.f32 %v1004_v10, %v4063_v36  ;;  %v4064_v3 = vld [vmem:[#allocation147_spill] sm:$0xff]  ;;  %v4065_v11 = vld [vmem:[#allocation148_spill] sm:$0xff]  ;;  %v4066_v13 = vld [vmem:[#allocation149_spill] sm:$0xff] }
 0x122   : > { %v1030_v35 = vadd.f32 %v1029_v5, %v4064_v3  ;;  %v1055_v2 = vadd.f32 %v1054_v53, %v4065_v11  ;;  %v1080_v4 = vadd.f32 %v1079_v54, %v4066_v13  ;;  %v4067_v42 = vld [vmem:[#allocation150_spill] sm:$0xff]  ;;  %v4068_v9 = vld [vmem:[#allocation151_spill] sm:$0xff]  ;;  %v4069_v52 = vld [vmem:[#allocation152_spill] sm:$0xff] }
 0x123   : > { %v1105_v12 = vadd.f32 %v1104_v27, %v4067_v42  ;;  %v1130_v14 = vadd.f32 %v1129_v62, %v4068_v9  ;;  %v1155_v19 = vadd.f32 %v1154_v63, %v4069_v52  ;;  %v4070_v58 = vld [vmem:[#allocation162_spill] sm:$0xff]  ;;  %v4071_v23 = vld [vmem:[#allocation163_spill] sm:$0xff]  ;;  %v4072_v44 = vld [vmem:[#allocation164_spill] sm:$0xff] }
 0x124   : > { %v981_v39 = vadd.f32 %v980_v29, %v4070_v58  ;;  %v1006_v40 = vadd.f32 %v1005_v33, %v4071_v23  ;;  %v1031_v20 = vadd.f32 %v1030_v35, %v4072_v44  ;;  %v4073_v37 = vld [vmem:[#allocation165_spill] sm:$0xff]  ;;  %v4074_v10 = vld [vmem:[#allocation166_spill] sm:$0xff]  ;;  %v4075_v5 = vld [vmem:[#allocation167_spill] sm:$0xff] }
 0x125   : > { %v1056_v48 = vadd.f32 %v1055_v2, %v4073_v37  ;;  %v1081_v24 = vadd.f32 %v1080_v4, %v4074_v10  ;;  %v1106_v55 = vadd.f32 %v1105_v12, %v4075_v5  ;;  %v4076_v53 = vld [vmem:[#allocation168_spill] sm:$0xff]  ;;  %v4077_v54 = vld [vmem:[#allocation169_spill] sm:$0xff]  ;;  %v4078_v27 = vld [vmem:[#allocation179_spill] sm:$0xff] }
 0x126   : > { %v1131_v56 = vadd.f32 %v1130_v14, %v4076_v53  ;;  %v1156_v28 = vadd.f32 %v1155_v19, %v4077_v54  ;;  %v982_v0 = vadd.f32 %v981_v39, %v4078_v27  ;;  %v4079_v62 = vld [vmem:[#allocation180_spill] sm:$0xff]  ;;  %v4080_v63 = vld [vmem:[#allocation181_spill] sm:$0xff]  ;;  %v4081_v36 = vld [vmem:[#allocation182_spill] sm:$0xff] }
 0x127   : > { %v1007_v34 = vadd.f32 %v1006_v40, %v4079_v62  ;;  %v1032_v29 = vadd.f32 %v1031_v20, %v4080_v63  ;;  %v1057_v33 = vadd.f32 %v1056_v48, %v4081_v36  ;;  %v4082_v3 = vld [vmem:[#allocation183_spill] sm:$0xff]  ;;  %v4083_v11 = vld [vmem:[#allocation185_spill] sm:$0xff]  ;;  %v4084_v13 = vld [vmem:[#allocation186_spill] sm:$0xff] }
 0x128   : > { %v1082_v35 = vadd.f32 %v1081_v24, %v4082_v3  ;;  %v1107_v2 = vadd.f32 %v1106_v55, %v4083_v11  ;;  %v1132_v4 = vadd.f32 %v1131_v56, %v4084_v13  ;;  %v4085_v42 = vld [vmem:[#allocation187_spill] sm:$0xff]  ;;  %v4086_v9 = vld [vmem:[#allocation197_spill] sm:$0xff]  ;;  %v4087_v52 = vld [vmem:[#allocation198_spill] sm:$0xff] }
 0x129   : > { %v1157_v12 = vadd.f32 %v1156_v28, %v4085_v42  ;;  %v983_v14 = vadd.f32 %v982_v0, %v4086_v9  ;;  %v1008_v19 = vadd.f32 %v1007_v34, %v4087_v52  ;;  %v4088_v58 = vld [vmem:[#allocation199_spill] sm:$0xff]  ;;  %v4089_v23 = vld [vmem:[#allocation200_spill] sm:$0xff]  ;;  %v4090_v44 = vld [vmem:[#allocation202_spill] sm:$0xff] }
 0x12a   : > { %v1033_v39 = vadd.f32 %v1032_v29, %v4088_v58  ;;  %v1058_v40 = vadd.f32 %v1057_v33, %v4089_v23  ;;  %v1083_v20 = vadd.f32 %v1082_v35, %v4090_v44  ;;  %v4091_v37 = vld [vmem:[#allocation203_spill] sm:$0xff]  ;;  %v4092_v10 = vld [vmem:[#allocation204_spill] sm:$0xff]  ;;  %v4093_v5 = vld [vmem:[#allocation205_spill] sm:$0xff] }
 0x12b   : > { %v1108_v48 = vadd.f32 %v1107_v2, %v4091_v37  ;;  %v1133_v24 = vadd.f32 %v1132_v4, %v4092_v10  ;;  %v1158_v55 = vadd.f32 %v1157_v12, %v4093_v5  ;;  %v4094_v53 = vld [vmem:[#allocation214_spill] sm:$0xff]  ;;  %v4095_v54 = vld [vmem:[#allocation215_spill] sm:$0xff]  ;;  %v4096_v27 = vld [vmem:[#allocation216_spill] sm:$0xff] }
 0x12c   : > { %v984_v56 = vadd.f32 %v983_v14, %v4094_v53  ;;  %v1009_v28 = vadd.f32 %v1008_v19, %v4095_v54  ;;  %v1034_v0 = vadd.f32 %v1033_v39, %v4096_v27  ;;  %v4097_v62 = vld [vmem:[#allocation217_spill] sm:$0xff]  ;;  %v4098_v63 = vld [vmem:[#allocation219_spill] sm:$0xff]  ;;  %v4099_v36 = vld [vmem:[#allocation220_spill] sm:$0xff] }
 0x12d   : > { %v1059_v34 = vadd.f32 %v1058_v40, %v4097_v62  ;;  %v1084_v29 = vadd.f32 %v1083_v20, %v4098_v63  ;;  %v1109_v33 = vadd.f32 %v1108_v48, %v4099_v36  ;;  %v4100_v3 = vld [vmem:[#allocation221_spill] sm:$0xff]  ;;  %v4101_v11 = vld [vmem:[#allocation222_spill] sm:$0xff]  ;;  %v4102_v42 = vld [vmem:[#allocation231_spill] sm:$0xff] }
 0x12e   : > { %v1134_v35 = vadd.f32 %v1133_v24, %v4100_v3  ;;  %v1159_v2 = vadd.f32 %v1158_v55, %v4101_v11  ;;  %v985_v13 = vadd.f32 %v984_v56, %v2951_v16  ;;  %v1010_v4 = vadd.f32 %v1009_v28, %v2954_v6  ;;  %v4103_v9 = vld [vmem:[#allocation232_spill] sm:$0xff]  ;;  %v4104_v19 = vld [vmem:[#allocation234_spill] sm:$0xff]  ;;  %v4105_v39 = vld [vmem:[#allocation235_spill] sm:$0xff] }
 0x12f   : > { %v1035_v12 = vadd.f32 %v1034_v0, %v4102_v42  ;;  %v1060_v14 = vadd.f32 %v1059_v34, %v4103_v9  ;;  %v1085_v52 = vadd.f32 %v1084_v29, %v2968_v50  ;;  %v1110_v58 = vadd.f32 %v1109_v33, %v4104_v19  ;;  %v4106_v40 = vld [vmem:[#allocation236_spill] sm:$0xff]  ;;  %v478_v16 = vld [vmem:[%s1952_s5 + $0x998] sm:$0xff]  ;;  %v3256_v50 = vpop.permute.xlu0 %623  ;;  %v479_v5 = vld [vmem:[%s1952_s5 + $0x9a0] sm:$0xff] }
 0x130   : > { %v1135_v23 = vadd.f32 %v1134_v35, %v4105_v39  ;;  %v1160_v44 = vadd.f32 %v1159_v2, %v4106_v40  ;;  %v477_v20 = vld [vmem:[%s1952_s5 + $0x990] sm:$0xff]  ;;  %v986_v6 = vadd.f32 %v985_v13, %v3013_v60  ;;  %v1011_v37 = vadd.f32 %v1010_v4, %v3016_v22  ;;  %4108 = vst [vmem:[#allocation31_spill] sm:$0xff] %v3256_v50  ;;  %v480_v55 = vld [vmem:[%s1952_s5 + $0x9a8] sm:$0xff]  ;;  %v4112_v60 = vld [vmem:[#allocation250_spill] sm:$0xff] }
 0x131   : > { %v1036_v48 = vadd.f32 %v1035_v12, %v3019_v31  ;;  %v4107_v10 = vld [vmem:[#allocation245_spill] sm:$0xff]  ;;  %v4109_v56 = vld [vmem:[#allocation247_spill] sm:$0xff]  ;;  %v4110_v28 = vld [vmem:[#allocation248_spill] sm:$0xff]  ;;  %v938_v42 = vmul.f32 %v3256_v50, %v478_v16 }
 0x132   : > { %v1061_v24 = vadd.f32 %v1060_v14, %v4107_v10  ;;  %v481_v53 = vld [vmem:[%s1952_s5 + $0x9b0] sm:$0xff]  ;;  %v1086_v54 = vadd.f32 %v1085_v52, %v4109_v56  ;;  %v1111_v27 = vadd.f32 %v1110_v58, %v4110_v28  ;;  %v1161_v34 = vadd.f32 %v1160_v44, %v4112_v60  ;;  %v482_v22 = vld [vmem:[%s1952_s5 + $0x9b8] sm:$0xff]  ;;  %v483_v63 = vld [vmem:[%s1952_s5 + $0x9c0] sm:$0xff] }
 0x133   : > { %v4111_v0 = vld [vmem:[#allocation249_spill] sm:$0xff]  ;;  %v484_v31 = vld [vmem:[%s1952_s5 + $0x9c8] sm:$0xff]  ;;  %v987_v29 = vadd.f32 %v986_v6, %v3075_v61  ;;  %v1012_v36 = vadd.f32 %v1011_v37, %v3078_v15  ;;  %v1037_v33 = vadd.f32 %v1036_v48, %v3081_v46  ;;  %v495_v61 = vld [vmem:[%s1952_s5 + $0xa20] sm:$0xff]  ;;  %v937_v15 = vmul.f32 %v3256_v50, %v477_v20 }
 0x134   : > { %v1136_v62 = vadd.f32 %v1135_v23, %v4111_v0  ;;  %v1062_v3 = vadd.f32 %v1061_v24, %v3084_v41  ;;  %v1087_v35 = vadd.f32 %v1086_v54, %v3087_v21  ;;  %v1112_v11 = vadd.f32 %v1111_v27, %v3090_v57  ;;  %v494_v4 = vld [vmem:[%s1952_s5 + $0xa18] sm:$0xff]  ;;  %v3282_v21 = vpop.permute.xlu1 %628  ;;  %v496_v57 = vld [vmem:[%s1952_s5 + $0xa28] sm:$0xff]  ;;  %v497_v12 = vld [vmem:[%s1952_s5 + $0xa30] sm:$0xff] }
 0x135   : > { %v1162_v13 = vadd.f32 %v1161_v34, %v3096_v26  ;;  %v939_v46 = vmul.f32 %v3256_v50, %v479_v5  ;;  %v940_v41 = vmul.f32 %v3256_v50, %v480_v55  ;;  %4113 = vst [vmem:[#allocation32_spill] sm:$0xff] %v3282_v21  ;;  %v941_v26 = vmul.f32 %v3256_v50, %v481_v53  ;;  %v499_v19 = vld [vmem:[%s1952_s5 + $0xa40] sm:$0xff]  ;;  %v500_v58 = vld [vmem:[%s1952_s5 + $0xa48] sm:$0xff]  ;;  %v501_v39 = vld [vmem:[%s1952_s5 + $0xa50] sm:$0xff] }
 0x136   : > { %v1137_v2 = vadd.f32 %v1136_v62, %v3093_v18  ;;  %v498_v18 = vld [vmem:[%s1952_s5 + $0xa38] sm:$0xff]  ;;  %v942_v9 = vmul.f32 %v3256_v50, %v482_v22  ;;  %v943_v14 = vmul.f32 %v3256_v50, %v483_v63  ;;  %v944_v52 = vmul.f32 %v3256_v50, %v484_v31  ;;  %v485_v10 = vld [vmem:[%s1952_s5 + $0x9d0] sm:$0xff]  ;;  %v487_v54 = vld [vmem:[%s1952_s5 + $0x9e0] sm:$0xff] }
 0x137   : > { %v988_v23 = vadd.f32 %v987_v29, %v937_v15  ;;  %v1013_v40 = vadd.f32 %v1012_v36, %v938_v42  ;;  %v1038_v44 = vadd.f32 %v1037_v33, %v939_v46  ;;  %v1063_v20 = vadd.f32 %v1062_v3, %v940_v41  ;;  %v486_v24 = vld [vmem:[%s1952_s5 + $0x9d8] sm:$0xff]  ;;  %v488_v28 = vld [vmem:[%s1952_s5 + $0x9e8] sm:$0xff]  ;;  %v489_v27 = vld [vmem:[%s1952_s5 + $0x9f0] sm:$0xff] }
 0x138   : > { %v1088_v16 = vadd.f32 %v1087_v35, %v941_v26  ;;  %v1113_v6 = vadd.f32 %v1112_v11, %v942_v9  ;;  %v1138_v37 = vadd.f32 %v1137_v2, %v943_v14  ;;  %v1163_v48 = vadd.f32 %v1162_v13, %v944_v52  ;;  %v490_v22 = vld [vmem:[%s1952_s5 + $0x9f8] sm:$0xff]  ;;  %v491_v63 = vld [vmem:[%s1952_s5 + $0xa00] sm:$0xff]  ;;  %v492_v31 = vld [vmem:[%s1952_s5 + $0xa08] sm:$0xff] }
 0x139   : > { %v954_v5 = vmul.f32 %v3282_v21, %v494_v4  ;;  %v955_v55 = vmul.f32 %v3282_v21, %v495_v61  ;;  %v956_v53 = vmul.f32 %v3282_v21, %v496_v57  ;;  %v957_v56 = vmul.f32 %v3282_v21, %v497_v12  ;;  %v502_v4 = vld [vmem:[%s1952_s5 + $0xa58] sm:$0xff]  ;;  %v503_v61 = vld [vmem:[%s1952_s5 + $0xa60] sm:$0xff]  ;;  %v504_v15 = vld [vmem:[%s1952_s5 + $0xa68] sm:$0xff] }
 0x13a   : > { %v958_v0 = vmul.f32 %v3282_v21, %v498_v18  ;;  %v959_v62 = vmul.f32 %v3282_v21, %v499_v19  ;;  %v960_v60 = vmul.f32 %v3282_v21, %v500_v58  ;;  %v961_v34 = vmul.f32 %v3282_v21, %v501_v39  ;;  %v505_v12 = vld [vmem:[%s1952_s5 + $0xa70] sm:$0xff]  ;;  %v506_v18 = vld [vmem:[%s1952_s5 + $0xa78] sm:$0xff]  ;;  %v507_v26 = vld [vmem:[%s1952_s5 + $0xa80] sm:$0xff] }
 0x13b   : > { %v989_v29 = vadd.f32 %v988_v23, %v954_v5  ;;  %v1014_v36 = vadd.f32 %v1013_v40, %v955_v55  ;;  %v1039_v33 = vadd.f32 %v1038_v44, %v956_v53  ;;  %v1064_v3 = vadd.f32 %v1063_v20, %v957_v56  ;;  %v508_v58 = vld [vmem:[%s1952_s5 + $0xa88] sm:$0xff]  ;;  %v509_v39 = vld [vmem:[%s1952_s5 + $0xa90] sm:$0xff] }
 0x13c   : > { %v1089_v35 = vadd.f32 %v1088_v16, %v958_v0  ;;  %v1114_v11 = vadd.f32 %v1113_v6, %v959_v62  ;;  %v1139_v2 = vadd.f32 %v1138_v37, %v960_v60  ;;  %v1164_v13 = vadd.f32 %v1163_v48, %v961_v34 }
 0x13d   : > { %v3314_v42 = vmul.f32 %v3256_v50, %v485_v10  ;;  %v3317_v46 = vmul.f32 %v3256_v50, %v486_v24  ;;  %v3320_v41 = vmul.f32 %v3256_v50, %v487_v54  ;;  %v3323_v57 = vmul.f32 %v3256_v50, %v488_v28 }
 0x13e   : > { %v3329_v9 = vmul.f32 %v3256_v50, %v489_v27  ;;  %v3332_v14 = vmul.f32 %v3256_v50, %v490_v22  ;;  %v3335_v52 = vmul.f32 %v3256_v50, %v491_v63  ;;  %v3338_v19 = vmul.f32 %v3256_v50, %v492_v31 }
 0x13f   : > { %v990_v23 = vrot.slane %v989_v29, 4  ;;  %v1015_v40 = vrot.slane %v1014_v36, 4  ;;  %v1040_v44 = vrot.slane %v1039_v33, 4  ;;  %v1065_v20 = vrot.slane %v1064_v3, 4 }
 0x140   : > { %v1090_v16 = vrot.slane %v1089_v35, 4  ;;  %v1115_v6 = vrot.slane %v1114_v11, 4  ;;  %v1140_v37 = vrot.slane %v1139_v2, 4  ;;  %v1165_v48 = vrot.slane %v1164_v13, 4 }
 0x141   : > { %v3343_v10 = vmul.f32 %v3282_v21, %v502_v4  ;;  %v3346_v24 = vmul.f32 %v3282_v21, %v503_v61  ;;  %v3349_v5 = vmul.f32 %v3282_v21, %v504_v15  ;;  %v3352_v55 = vmul.f32 %v3282_v21, %v505_v12  ;;  %v4116_v4 = vld [vmem:[#allocation4_spill] sm:$0xff]  ;;  %v4117_v61 = vld [vmem:[#allocation13_spill] sm:$0xff] }
 0x142   : > { %v3355_v53 = vmul.f32 %v3282_v21, %v506_v18  ;;  %v3358_v56 = vmul.f32 %v3282_v21, %v507_v26  ;;  %v3361_v54 = vmul.f32 %v3282_v21, %v508_v58  ;;  %v3364_v28 = vmul.f32 %v3282_v21, %v509_v39  ;;  %v4118_v12 = vld [vmem:[#allocation5_spill] sm:$0xff]  ;;  %v4121_v26 = vld [vmem:[#allocation15_spill] sm:$0xff] }
 0x143   : > { %v3366_v27 = vadd.f32 %v990_v23, %v989_v29  ;;  %v3368_v0 = vadd.f32 %v1015_v40, %v1014_v36  ;;  %v3370_v62 = vadd.f32 %v1040_v44, %v1039_v33  ;;  %v3372_v60 = vadd.f32 %v1065_v20, %v1064_v3  ;;  %v4119_v29 = vld [vmem:[#allocation14_spill] sm:$0xff]  ;;  %v4122_v58 = vld [vmem:[#allocation7_spill] sm:$0xff]  ;;  %v4123_v3 = vld [vmem:[#allocation16_spill] sm:$0xff] }
 0x144   : > { %v3374_v34 = vadd.f32 %v1090_v16, %v1089_v35  ;;  %v3376_v22 = vadd.f32 %v1115_v6, %v1114_v11  ;;  %v3378_v63 = vadd.f32 %v1140_v37, %v1139_v2  ;;  %v3380_v31 = vadd.f32 %v1165_v48, %v1164_v13  ;;  %v4120_v36 = vld [vmem:[#allocation6_spill] sm:$0xff]  ;;  %v4124_v35 = vld [vmem:[#allocation8_spill] sm:$0xff]  ;;  %v4125_v23 = vld [vmem:[#allocation17_spill] sm:$0xff] }
 0x145   : > { %v1171_v15 = vadd.f32 %v4117_v61, %v4116_v4  ;;  %v1196_v18 = vadd.f32 %v4119_v29, %v4118_v12  ;;  %v1221_v33 = vadd.f32 %v4121_v26, %v4120_v36  ;;  %v1246_v39 = vadd.f32 %v4123_v3, %v4122_v58  ;;  %v4126_v40 = vld [vmem:[#allocation9_spill] sm:$0xff]  ;;  %v4127_v2 = vld [vmem:[#allocation18_spill] sm:$0xff]  ;;  %v4129_v20 = vld [vmem:[#allocation19_spill] sm:$0xff] }
 0x146   : > { %4114 = vst [vmem:[#allocation33_spill] sm:$0xff] %v3378_v63  ;;  %4115 = vst [vmem:[#allocation34_spill] sm:$0xff] %v3380_v31  ;;  %v1271_v11 = vadd.f32 %v4125_v23, %v4124_v35  ;;  %v1296_v44 = vadd.f32 %v4127_v2, %v4126_v40  ;;  %v4128_v13 = vld [vmem:[#allocation10_spill] sm:$0xff]  ;;  %v4130_v6 = vld [vmem:[#allocation11_spill] sm:$0xff] }
 0x147   : > { %v1321_v16 = vadd.f32 %v4129_v20, %v4128_v13  ;;  %v4131_v37 = vld [vmem:[#allocation20_spill] sm:$0xff]  ;;  %v4132_v4 = vld [vmem:[#allocation22_spill] sm:$0xff]  ;;  %v4133_v12 = vld [vmem:[#allocation23_spill] sm:$0xff] }
 0x148   : > { %v1346_v48 = vadd.f32 %v4131_v37, %v4130_v6  ;;  %v1172_v61 = vadd.f32 %v1171_v15, %v4132_v4  ;;  %v1197_v29 = vadd.f32 %v1196_v18, %v4133_v12  ;;  %v4134_v36 = vld [vmem:[#allocation24_spill] sm:$0xff]  ;;  %v4135_v21 = vld [vmem:[#allocation25_spill] sm:$0xff]  ;;  %v4136_v3 = vld [vmem:[#allocation26_spill] sm:$0xff] }
 0x149   : > { %v1222_v26 = vadd.f32 %v1221_v33, %v4134_v36  ;;  %v1247_v58 = vadd.f32 %v1246_v39, %v4135_v21  ;;  %v1272_v50 = vadd.f32 %v1271_v11, %v4136_v3  ;;  %v4137_v35 = vld [vmem:[#allocation27_spill] sm:$0xff]  ;;  %v1322_v40 = vadd.f32 %v1321_v16, %v4138_v32  ;;  %v4139_v2 = vld [vmem:[#allocation29_spill] sm:$0xff]  ;;  %v4141_v63 = vld [vmem:[#allocation36_spill] sm:$0xff] }
 0x14a   : > { %v1297_v23 = vadd.f32 %v1296_v44, %v4137_v35  ;;  %v1347_v31 = vadd.f32 %v1346_v48, %v4139_v2  ;;  %v4140_v13 = vld [vmem:[#allocation35_spill] sm:$0xff]  ;;  %v1198_v6 = vadd.f32 %v1197_v29, %v4141_v63  ;;  %v4142_v37 = vld [vmem:[#allocation37_spill] sm:$0xff]  ;;  %v4143_v4 = vld [vmem:[#allocation38_spill] sm:$0xff] }
 0x14b   : > { %v1173_v20 = vadd.f32 %v1172_v61, %v4140_v13  ;;  %v1223_v15 = vadd.f32 %v1222_v26, %v4142_v37  ;;  %v1248_v18 = vadd.f32 %v1247_v58, %v4143_v4  ;;  %v4144_v12 = vld [vmem:[#allocation39_spill] sm:$0xff]  ;;  %v4145_v36 = vld [vmem:[#allocation40_spill] sm:$0xff]  ;;  %v4146_v39 = vld [vmem:[#allocation41_spill] sm:$0xff] }
 0x14c   : > { %v1273_v33 = vadd.f32 %v1272_v50, %v4144_v12  ;;  %v1298_v21 = vadd.f32 %v1297_v23, %v4145_v36  ;;  %v1323_v11 = vadd.f32 %v1322_v40, %v4146_v39  ;;  %v4147_v3 = vld [vmem:[#allocation42_spill] sm:$0xff]  ;;  %v4148_v35 = vld [vmem:[#allocation52_spill] sm:$0xff]  ;;  %v4149_v16 = vld [vmem:[#allocation53_spill] sm:$0xff] }
 0x14d   : > { %v1348_v44 = vadd.f32 %v1347_v31, %v4147_v3  ;;  %v1174_v32 = vadd.f32 %v1173_v20, %v4148_v35  ;;  %v1199_v48 = vadd.f32 %v1198_v6, %v4149_v16  ;;  %v4150_v2 = vld [vmem:[#allocation54_spill] sm:$0xff]  ;;  %v4151_v13 = vld [vmem:[#allocation55_spill] sm:$0xff]  ;;  %v4152_v29 = vld [vmem:[#allocation56_spill] sm:$0xff] }
 0x14e   : > { %v1224_v61 = vadd.f32 %v1223_v15, %v4150_v2  ;;  %v1249_v63 = vadd.f32 %v1248_v18, %v4151_v13  ;;  %v1274_v26 = vadd.f32 %v1273_v33, %v4152_v29  ;;  %v4153_v37 = vld [vmem:[#allocation57_spill] sm:$0xff]  ;;  %v4154_v4 = vld [vmem:[#allocation58_spill] sm:$0xff]  ;;  %v4155_v12 = vld [vmem:[#allocation59_spill] sm:$0xff] }
 0x14f   : > { %v1299_v58 = vadd.f32 %v1298_v21, %v4153_v37  ;;  %v1324_v50 = vadd.f32 %v1323_v11, %v4154_v4  ;;  %v1349_v23 = vadd.f32 %v1348_v44, %v4155_v12  ;;  %v4156_v36 = vld [vmem:[#allocation69_spill] sm:$0xff]  ;;  %v4157_v39 = vld [vmem:[#allocation70_spill] sm:$0xff]  ;;  %v4158_v3 = vld [vmem:[#allocation71_spill] sm:$0xff] }
 0x150   : > { %v1175_v40 = vadd.f32 %v1174_v32, %v4156_v36  ;;  %v1200_v31 = vadd.f32 %v1199_v48, %v4157_v39  ;;  %v1225_v20 = vadd.f32 %v1224_v61, %v4158_v3  ;;  %v4159_v35 = vld [vmem:[#allocation72_spill] sm:$0xff]  ;;  %v4160_v16 = vld [vmem:[#allocation73_spill] sm:$0xff]  ;;  %v4161_v2 = vld [vmem:[#allocation74_spill] sm:$0xff] }
 0x151   : > { %v1250_v6 = vadd.f32 %v1249_v63, %v4159_v35  ;;  %v1275_v15 = vadd.f32 %v1274_v26, %v4160_v16  ;;  %v1300_v18 = vadd.f32 %v1299_v58, %v4161_v2  ;;  %v4162_v13 = vld [vmem:[#allocation75_spill] sm:$0xff]  ;;  %v4163_v29 = vld [vmem:[#allocation76_spill] sm:$0xff]  ;;  %v4164_v37 = vld [vmem:[#allocation86_spill] sm:$0xff] }
 0x152   : > { %v1325_v33 = vadd.f32 %v1324_v50, %v4162_v13  ;;  %v1350_v21 = vadd.f32 %v1349_v23, %v4163_v29  ;;  %v1176_v11 = vadd.f32 %v1175_v40, %v4164_v37  ;;  %v4165_v4 = vld [vmem:[#allocation87_spill] sm:$0xff]  ;;  %v4166_v12 = vld [vmem:[#allocation88_spill] sm:$0xff]  ;;  %v4167_v36 = vld [vmem:[#allocation89_spill] sm:$0xff] }
 0x153   : > { %v1201_v44 = vadd.f32 %v1200_v31, %v4165_v4  ;;  %v1226_v32 = vadd.f32 %v1225_v20, %v4166_v12  ;;  %v1251_v48 = vadd.f32 %v1250_v6, %v4167_v36  ;;  %v4168_v39 = vld [vmem:[#allocation90_spill] sm:$0xff]  ;;  %v4169_v3 = vld [vmem:[#allocation91_spill] sm:$0xff]  ;;  %v4170_v35 = vld [vmem:[#allocation92_spill] sm:$0xff] }
 0x154   : > { %v1276_v61 = vadd.f32 %v1275_v15, %v4168_v39  ;;  %v1301_v63 = vadd.f32 %v1300_v18, %v4169_v3  ;;  %v1326_v26 = vadd.f32 %v1325_v33, %v4170_v35  ;;  %v4171_v16 = vld [vmem:[#allocation93_spill] sm:$0xff]  ;;  %v4172_v2 = vld [vmem:[#allocation103_spill] sm:$0xff]  ;;  %v4173_v13 = vld [vmem:[#allocation104_spill] sm:$0xff] }
 0x155   : > { %v1351_v58 = vadd.f32 %v1350_v21, %v4171_v16  ;;  %v1177_v50 = vadd.f32 %v1176_v11, %v4172_v2  ;;  %v1202_v23 = vadd.f32 %v1201_v44, %v4173_v13  ;;  %v4174_v29 = vld [vmem:[#allocation105_spill] sm:$0xff]  ;;  %v4175_v37 = vld [vmem:[#allocation106_spill] sm:$0xff]  ;;  %v4176_v4 = vld [vmem:[#allocation107_spill] sm:$0xff] }
 0x156   : > { %v1227_v40 = vadd.f32 %v1226_v32, %v4174_v29  ;;  %v1252_v31 = vadd.f32 %v1251_v48, %v4175_v37  ;;  %v1277_v20 = vadd.f32 %v1276_v61, %v4176_v4  ;;  %v4177_v12 = vld [vmem:[#allocation108_spill] sm:$0xff]  ;;  %v4178_v36 = vld [vmem:[#allocation109_spill] sm:$0xff]  ;;  %v4179_v39 = vld [vmem:[#allocation110_spill] sm:$0xff] }
 0x157   : > { %v1302_v6 = vadd.f32 %v1301_v63, %v4177_v12  ;;  %v1327_v15 = vadd.f32 %v1326_v26, %v4178_v36  ;;  %v1352_v18 = vadd.f32 %v1351_v58, %v4179_v39  ;;  %v4180_v3 = vld [vmem:[#allocation120_spill] sm:$0xff]  ;;  %v4181_v35 = vld [vmem:[#allocation121_spill] sm:$0xff]  ;;  %v4182_v16 = vld [vmem:[#allocation122_spill] sm:$0xff] }
 0x158   : > { %v1178_v33 = vadd.f32 %v1177_v50, %v4180_v3  ;;  %v1203_v21 = vadd.f32 %v1202_v23, %v4181_v35  ;;  %v1228_v11 = vadd.f32 %v1227_v40, %v4182_v16  ;;  %v4183_v2 = vld [vmem:[#allocation123_spill] sm:$0xff]  ;;  %v4184_v13 = vld [vmem:[#allocation124_spill] sm:$0xff]  ;;  %v4185_v29 = vld [vmem:[#allocation125_spill] sm:$0xff] }
 0x159   : > { %v1253_v44 = vadd.f32 %v1252_v31, %v4183_v2  ;;  %v1278_v32 = vadd.f32 %v1277_v20, %v4184_v13  ;;  %v1303_v48 = vadd.f32 %v1302_v6, %v4185_v29  ;;  %v4186_v37 = vld [vmem:[#allocation126_spill] sm:$0xff]  ;;  %v4187_v4 = vld [vmem:[#allocation127_spill] sm:$0xff]  ;;  %v4188_v12 = vld [vmem:[#allocation137_spill] sm:$0xff] }
 0x15a   : > { %v1328_v61 = vadd.f32 %v1327_v15, %v4186_v37  ;;  %v1353_v63 = vadd.f32 %v1352_v18, %v4187_v4  ;;  %v1179_v26 = vadd.f32 %v1178_v33, %v4188_v12  ;;  %v4189_v36 = vld [vmem:[#allocation138_spill] sm:$0xff]  ;;  %v4190_v39 = vld [vmem:[#allocation139_spill] sm:$0xff]  ;;  %v4191_v3 = vld [vmem:[#allocation140_spill] sm:$0xff] }
 0x15b   : > { %v1204_v58 = vadd.f32 %v1203_v21, %v4189_v36  ;;  %v1229_v50 = vadd.f32 %v1228_v11, %v4190_v39  ;;  %v1254_v23 = vadd.f32 %v1253_v44, %v4191_v3  ;;  %v4192_v35 = vld [vmem:[#allocation141_spill] sm:$0xff]  ;;  %v4193_v16 = vld [vmem:[#allocation142_spill] sm:$0xff]  ;;  %v4194_v2 = vld [vmem:[#allocation143_spill] sm:$0xff] }
 0x15c   : > { %v1279_v40 = vadd.f32 %v1278_v32, %v4192_v35  ;;  %v1304_v31 = vadd.f32 %v1303_v48, %v4193_v16  ;;  %v1329_v20 = vadd.f32 %v1328_v61, %v4194_v2  ;;  %v4195_v13 = vld [vmem:[#allocation144_spill] sm:$0xff]  ;;  %v4196_v29 = vld [vmem:[#allocation153_spill] sm:$0xff]  ;;  %v4197_v37 = vld [vmem:[#allocation154_spill] sm:$0xff] }
 0x15d   : > { %v1354_v6 = vadd.f32 %v1353_v63, %v4195_v13  ;;  %v1180_v15 = vadd.f32 %v1179_v26, %v4196_v29  ;;  %v1205_v18 = vadd.f32 %v1204_v58, %v4197_v37  ;;  %v4198_v4 = vld [vmem:[#allocation155_spill] sm:$0xff]  ;;  %v4199_v12 = vld [vmem:[#allocation156_spill] sm:$0xff]  ;;  %v4200_v36 = vld [vmem:[#allocation157_spill] sm:$0xff] }
 0x15e   : > { %v1230_v33 = vadd.f32 %v1229_v50, %v4198_v4  ;;  %v1255_v21 = vadd.f32 %v1254_v23, %v4199_v12  ;;  %v1280_v11 = vadd.f32 %v1279_v40, %v4200_v36  ;;  %v4201_v39 = vld [vmem:[#allocation158_spill] sm:$0xff]  ;;  %v4202_v3 = vld [vmem:[#allocation159_spill] sm:$0xff]  ;;  %v4203_v35 = vld [vmem:[#allocation160_spill] sm:$0xff] }
 0x15f   : > { %v1305_v44 = vadd.f32 %v1304_v31, %v4201_v39  ;;  %v1330_v32 = vadd.f32 %v1329_v20, %v4202_v3  ;;  %v1355_v48 = vadd.f32 %v1354_v6, %v4203_v35  ;;  %v4204_v16 = vld [vmem:[#allocation170_spill] sm:$0xff]  ;;  %v4205_v2 = vld [vmem:[#allocation171_spill] sm:$0xff]  ;;  %v4206_v13 = vld [vmem:[#allocation172_spill] sm:$0xff] }
 0x160   : > { %v1181_v61 = vadd.f32 %v1180_v15, %v4204_v16  ;;  %v1206_v63 = vadd.f32 %v1205_v18, %v4205_v2  ;;  %v1231_v26 = vadd.f32 %v1230_v33, %v4206_v13  ;;  %v4207_v29 = vld [vmem:[#allocation173_spill] sm:$0xff]  ;;  %v4208_v37 = vld [vmem:[#allocation174_spill] sm:$0xff]  ;;  %v4209_v4 = vld [vmem:[#allocation175_spill] sm:$0xff] }
 0x161   : > { %v1256_v58 = vadd.f32 %v1255_v21, %v4207_v29  ;;  %v1281_v50 = vadd.f32 %v1280_v11, %v4208_v37  ;;  %v1306_v23 = vadd.f32 %v1305_v44, %v4209_v4  ;;  %v4210_v12 = vld [vmem:[#allocation176_spill] sm:$0xff]  ;;  %v4211_v36 = vld [vmem:[#allocation177_spill] sm:$0xff]  ;;  %v4214_v35 = vld [vmem:[#allocation190_spill] sm:$0xff] }
 0x162   : > { %v1331_v40 = vadd.f32 %v1330_v32, %v4210_v12  ;;  %v1356_v31 = vadd.f32 %v1355_v48, %v4211_v36  ;;  %v4212_v39 = vld [vmem:[#allocation188_spill] sm:$0xff]  ;;  %v4213_v3 = vld [vmem:[#allocation189_spill] sm:$0xff]  ;;  %v1232_v15 = vadd.f32 %v1231_v26, %v4214_v35  ;;  %v4215_v16 = vld [vmem:[#allocation191_spill] sm:$0xff] }
 0x163   : > { %v1182_v20 = vadd.f32 %v1181_v61, %v4212_v39  ;;  %v1207_v6 = vadd.f32 %v1206_v63, %v4213_v3  ;;  %v1257_v18 = vadd.f32 %v1256_v58, %v4215_v16  ;;  %v4216_v2 = vld [vmem:[#allocation192_spill] sm:$0xff]  ;;  %v4217_v13 = vld [vmem:[#allocation193_spill] sm:$0xff]  ;;  %v4218_v29 = vld [vmem:[#allocation194_spill] sm:$0xff] }
 0x164   : > { %v1282_v33 = vadd.f32 %v1281_v50, %v4216_v2  ;;  %v1307_v21 = vadd.f32 %v1306_v23, %v4217_v13  ;;  %v1332_v11 = vadd.f32 %v1331_v40, %v4218_v29  ;;  %v4219_v37 = vld [vmem:[#allocation195_spill] sm:$0xff]  ;;  %v4220_v4 = vld [vmem:[#allocation206_spill] sm:$0xff]  ;;  %v4222_v36 = vld [vmem:[#allocation208_spill] sm:$0xff] }
 0x165   : > { %v1357_v44 = vadd.f32 %v1356_v31, %v4219_v37  ;;  %v1183_v32 = vadd.f32 %v1182_v20, %v4220_v4  ;;  %v4221_v12 = vld [vmem:[#allocation207_spill] sm:$0xff]  ;;  %v1233_v61 = vadd.f32 %v1232_v15, %v4222_v36  ;;  %v4223_v39 = vld [vmem:[#allocation209_spill] sm:$0xff]  ;;  %v4224_v3 = vld [vmem:[#allocation210_spill] sm:$0xff] }
 0x166   : > { %v1208_v48 = vadd.f32 %v1207_v6, %v4221_v12  ;;  %v1258_v63 = vadd.f32 %v1257_v18, %v4223_v39  ;;  %v1283_v26 = vadd.f32 %v1282_v33, %v4224_v3  ;;  %v4225_v35 = vld [vmem:[#allocation211_spill] sm:$0xff]  ;;  %v4226_v16 = vld [vmem:[#allocation212_spill] sm:$0xff]  ;;  %v4227_v2 = vld [vmem:[#allocation213_spill] sm:$0xff] }
 0x167   : > { %v1308_v58 = vadd.f32 %v1307_v21, %v4225_v35  ;;  %v1333_v50 = vadd.f32 %v1332_v11, %v4226_v16  ;;  %v1358_v23 = vadd.f32 %v1357_v44, %v4227_v2  ;;  %v4228_v13 = vld [vmem:[#allocation223_spill] sm:$0xff]  ;;  %v4229_v29 = vld [vmem:[#allocation224_spill] sm:$0xff]  ;;  %v4230_v37 = vld [vmem:[#allocation225_spill] sm:$0xff] }
 0x168   : > { %v1184_v40 = vadd.f32 %v1183_v32, %v4228_v13  ;;  %v1209_v31 = vadd.f32 %v1208_v48, %v4229_v29  ;;  %v1234_v20 = vadd.f32 %v1233_v61, %v4230_v37  ;;  %v4231_v4 = vld [vmem:[#allocation226_spill] sm:$0xff]  ;;  %v4232_v12 = vld [vmem:[#allocation227_spill] sm:$0xff]  ;;  %v4233_v36 = vld [vmem:[#allocation228_spill] sm:$0xff] }
 0x169   : > { %v1259_v6 = vadd.f32 %v1258_v63, %v4231_v4  ;;  %v1284_v15 = vadd.f32 %v1283_v26, %v4232_v12  ;;  %v1309_v18 = vadd.f32 %v1308_v58, %v4233_v36  ;;  %v4234_v39 = vld [vmem:[#allocation229_spill] sm:$0xff]  ;;  %v4235_v3 = vld [vmem:[#allocation230_spill] sm:$0xff]  ;;  %v4238_v2 = vld [vmem:[#allocation239_spill] sm:$0xff] }
 0x16a   : > { %v1334_v33 = vadd.f32 %v1333_v50, %v4234_v39  ;;  %v1359_v21 = vadd.f32 %v1358_v23, %v4235_v3  ;;  %v4236_v35 = vld [vmem:[#allocation237_spill] sm:$0xff]  ;;  %v4237_v16 = vld [vmem:[#allocation238_spill] sm:$0xff]  ;;  %v1235_v32 = vadd.f32 %v1234_v20, %v4238_v2  ;;  %v4239_v13 = vld [vmem:[#allocation240_spill] sm:$0xff] }
 0x16b   : > { %v1185_v11 = vadd.f32 %v1184_v40, %v4236_v35  ;;  %v1210_v44 = vadd.f32 %v1209_v31, %v4237_v16  ;;  %v1260_v48 = vadd.f32 %v1259_v6, %v4239_v13  ;;  %v4240_v29 = vld [vmem:[#allocation241_spill] sm:$0xff]  ;;  %v4241_v37 = vld [vmem:[#allocation242_spill] sm:$0xff]  ;;  %v4242_v4 = vld [vmem:[#allocation243_spill] sm:$0xff] }
 0x16c   : > { %v1285_v61 = vadd.f32 %v1284_v15, %v4240_v29  ;;  %v1310_v63 = vadd.f32 %v1309_v18, %v4241_v37  ;;  %v1335_v26 = vadd.f32 %v1334_v33, %v4242_v4  ;;  %v4243_v12 = vld [vmem:[#allocation244_spill] sm:$0xff]  ;;  %v4244_v36 = vld [vmem:[#allocation251_spill] sm:$0xff]  ;;  %v4246_v3 = vld [vmem:[#allocation253_spill] sm:$0xff] }
 0x16d   : > { %v1360_v58 = vadd.f32 %v1359_v21, %v4243_v12  ;;  %v1186_v50 = vadd.f32 %v1185_v11, %v3045_v30  ;;  %v1211_v23 = vadd.f32 %v1210_v44, %v4244_v36  ;;  %v4245_v39 = vld [vmem:[#allocation252_spill] sm:$0xff]  ;;  %v1261_v31 = vadd.f32 %v1260_v48, %v4246_v3 }
 0x16e   : > { %v1236_v40 = vadd.f32 %v1235_v32, %v4245_v39  ;;  %v1286_v20 = vadd.f32 %v1285_v61, %v3060_v1  ;;  %v1311_v6 = vadd.f32 %v1310_v63, %v3063_v47  ;;  %v1336_v15 = vadd.f32 %v1335_v26, %v3066_v49  ;;  %v4247_v63 = vld [vmem:[#allocation33_spill] sm:$0xff]  ;;  %v4248_v26 = vld [vmem:[#allocation34_spill] sm:$0xff] }
 0x16f   : > { %v1361_v18 = vadd.f32 %v1360_v58, %v3069_v38  ;;  %v1187_v33 = vadd.f32 %v1186_v50, %v3099_v17  ;;  %v1212_v21 = vadd.f32 %v1211_v23, %v3102_v43  ;;  %v1262_v35 = vadd.f32 %v1261_v31, %v3108_v8 }
 0x170   : > { %v1237_v30 = vadd.f32 %v1236_v40, %v3105_v25  ;;  %v1287_v11 = vadd.f32 %v1286_v20, %v3111_v45  ;;  %v1312_v16 = vadd.f32 %v1311_v6, %v3114_v59  ;;  %v1337_v1 = vadd.f32 %v1336_v15, %v3117_v7 }
 0x171   : > { %v1362_v47 = vadd.f32 %v1361_v18, %v3120_v51  ;;  %v1188_v49 = vadd.f32 %v1187_v33, %v3314_v42  ;;  %v1213_v38 = vadd.f32 %v1212_v21, %v3317_v46  ;;  %v1263_v43 = vadd.f32 %v1262_v35, %v3323_v57 }
 0x172   : > { %v1238_v17 = vadd.f32 %v1237_v30, %v3320_v41  ;;  %v1288_v25 = vadd.f32 %v1287_v11, %v3329_v9  ;;  %v1313_v8 = vadd.f32 %v1312_v16, %v3332_v14  ;;  %v1338_v45 = vadd.f32 %v1337_v1, %v3335_v52 }
 0x173   : > { %v1363_v59 = vadd.f32 %v1362_v47, %v3338_v19  ;;  %v1189_v7 = vadd.f32 %v1188_v49, %v3343_v10  ;;  %v1214_v51 = vadd.f32 %v1213_v38, %v3346_v24  ;;  %v1264_v46 = vadd.f32 %v1263_v43, %v3352_v55 }
 0x174   : > { %v1239_v42 = vadd.f32 %v1238_v17, %v3349_v5  ;;  %v1289_v41 = vadd.f32 %v1288_v25, %v3355_v53  ;;  %v1314_v57 = vadd.f32 %v1313_v8, %v3358_v56  ;;  %v1339_v9 = vadd.f32 %v1338_v45, %v3361_v54  ;;  %v4249_v8 = vld [vmem:[#allocation12_spill] sm:$0xff]  ;;  %v4250_v45 = vld [vmem:[#allocation21_spill] sm:$0xff] }
 0x175   : > { %v1364_v14 = vadd.f32 %v1363_v59, %v3364_v28  ;;  %v992_v52 = vrot.slane %v3366_v27, 2  ;;  %v1017_v19 = vrot.slane %v3368_v0, 2  ;;  %v1190_v44 = vrot.slane %v1189_v7, 4 }
 0x176   : > { %v1215_v10 = vrot.slane %v1214_v51, 4  ;;  %v1042_v24 = vrot.slane %v3370_v62, 2  ;;  %v1240_v2 = vrot.slane %v1239_v42, 4  ;;  %v1265_v5 = vrot.slane %v1264_v46, 4 }
 0x177   : > { %v1290_v32 = vrot.slane %v1289_v41, 4  ;;  %v1067_v55 = vrot.slane %v3372_v60, 2  ;;  %v1092_v53 = vrot.slane %v3374_v34, 2  ;;  %v1315_v56 = vrot.slane %v1314_v57, 4 }
 0x178   : > { %v1340_v13 = vrot.slane %v1339_v9, 4  ;;  %v1117_v54 = vrot.slane %v3376_v22, 2  ;;  %v1191_v28 = vadd.f32 %v1190_v44, %v1189_v7  ;;  %v1216_v48 = vadd.f32 %v1215_v10, %v1214_v51 }
 0x179   : > { %v1365_v29 = vrot.slane %v1364_v14, 4  ;;  %v993_v61 = vadd.f32 %v992_v52, %v3366_v27  ;;  %v1018_v37 = vadd.f32 %v1017_v19, %v3368_v0  ;;  %v1142_v4 = vrot.slane %v4247_v63, 2  ;;  %v4251_v52 = vld [vmem:[#allocation30_spill] sm:$0xff] }
 0x17a   : > { %v1167_v12 = vrot.slane %v4248_v26, 2  ;;  %v1043_v58 = vadd.f32 %v1042_v24, %v3370_v62  ;;  %v1241_v50 = vadd.f32 %v1240_v2, %v1239_v42  ;;  %v1266_v36 = vadd.f32 %v1265_v5, %v1264_v46 }
 0x17b   : > { %v1291_v23 = vadd.f32 %v1290_v32, %v1289_v41  ;;  %v1068_v39 = vadd.f32 %v1067_v55, %v3372_v60  ;;  %v1093_v40 = vadd.f32 %v1092_v53, %v3374_v34  ;;  %v1316_v3 = vadd.f32 %v1315_v56, %v1314_v57  ;;  %v1400_v41 = vpop.permute.xlu0 %1399  ;;  %v4252_v53 = vld [vmem:[#allocation43_spill] sm:$0xff] }
 0x17c   : > { %v1341_v31 = vadd.f32 %v1340_v13, %v1339_v9  ;;  %v1118_v20 = vadd.f32 %v1117_v54, %v3376_v22  ;;  %v1192_v27 = vrot.slane %v1191_v28, 2  ;;  %v1217_v6 = vrot.slane %v1216_v48, 2 }
 0x17d   : > { %v1366_v0 = vadd.f32 %v1365_v29, %v1364_v14  ;;  %v994_v15 = vrot.slane %v993_v61, 1  ;;  %v1019_v18 = vrot.slane %v1018_v37, 1  ;;  %v1143_v33 = vadd.f32 %v1142_v4, %v4247_v63 }
 0x17e   : > { %v1168_v62 = vadd.f32 %v1167_v12, %v4248_v26  ;;  %v1044_v21 = vrot.slane %v1043_v58, 1  ;;  %v1242_v30 = vrot.slane %v1241_v50, 2  ;;  %v1267_v35 = vrot.slane %v1266_v36, 2  ;;  %v4255_v26 = vld [vmem:[#allocation60_spill] sm:$0xff] }
 0x17f   : > { %v1292_v11 = vrot.slane %v1291_v23, 2  ;;  %v1069_v60 = vrot.slane %v1068_v39, 1  ;;  %v1094_v16 = vrot.slane %v1093_v40, 1  ;;  %v1317_v34 = vrot.slane %v1316_v3, 2 }
 0x180   : > { %v1342_v1 = vrot.slane %v1341_v31, 2  ;;  %v1119_v47 = vrot.slane %v1118_v20, 1  ;;  %v1193_v49 = vadd.f32 %v1192_v27, %v1191_v28  ;;  %v1218_v22 = vadd.f32 %v1217_v6, %v1216_v48  ;;  %v4253_v48 = vld [vmem:[#allocation3_spill] sm:$0xff] }
 0x181   : > { %v1367_v38 = vrot.slane %v1366_v0, 2  ;;  %v995_v17 = vadd.f32 %v994_v15, %v993_v61  ;;  %v1144_v43 = vrot.slane %v1143_v33, 1  ;;  %v1169_v25 = vrot.slane %v1168_v62, 1 }
 0x182   : > { %v1371_v59 = vadd.f32 %v4250_v45, %v4249_v8  ;;  %v1020_v7 = vadd.f32 %v1019_v18, %v1018_v37  ;;  %v1243_v51 = vadd.f32 %v1242_v30, %v1241_v50  ;;  %v1268_v42 = vadd.f32 %v1267_v35, %v1266_v36  ;;  %v4259_v8 = vld [vmem:[#allocation128_spill] sm:$0xff] }
 0x183   : > { %v1293_v46 = vadd.f32 %v1292_v11, %v1291_v23  ;;  %v1045_v57 = vadd.f32 %v1044_v21, %v1043_v58  ;;  %v1318_v9 = vadd.f32 %v1317_v34, %v1316_v3  ;;  %v1343_v14 = vadd.f32 %v1342_v1, %v1341_v31  ;;  %v4258_v34 = vld [vmem:[#allocation111_spill] sm:$0xff] }
 0x184   : > { %v1372_v19 = vadd.f32 %v1371_v59, %v4251_v52  ;;  %v1070_v44 = vadd.f32 %v1069_v60, %v1068_v39  ;;  %v1194_v10 = vrot.slane %v1193_v49, 1  ;;  %v1219_v24 = vrot.slane %v1218_v22, 1  ;;  %v4256_v39 = vld [vmem:[#allocation77_spill] sm:$0xff] }
 0x185   : > { %v1368_v2 = vadd.f32 %v1367_v38, %v1366_v0  ;;  %v1095_v5 = vadd.f32 %v1094_v16, %v1093_v40  ;;  %v1120_v32 = vadd.f32 %v1119_v47, %v1118_v20  ;;  %v1145_v55 = vadd.f32 %v1144_v43, %v1143_v33 }
 0x186   : > { %v1373_v56 = vadd.f32 %v1372_v19, %v4252_v53  ;;  %v1244_v13 = vrot.slane %v1243_v51, 1  ;;  %v1269_v54 = vrot.slane %v1268_v42, 1  ;;  %v1294_v28 = vrot.slane %v1293_v46, 1 }
 0x187   : > { %v4254_v29 = vsub.s32 0, %v4253_v48  ;;  %v1170_v37 = vadd.f32 %v1169_v25, %v1168_v62  ;;  %v1319_v63 = vrot.slane %v1318_v9, 1  ;;  %v1344_v4 = vrot.slane %v1343_v14, 1  ;;  %v4257_v62 = vld [vmem:[#allocation94_spill] sm:$0xff] }
 0x188   : > { %v1374_v12 = vadd.f32 %v1373_v56, %v4255_v26  ;;  %v1195_v58 = vadd.f32 %v1194_v10, %v1193_v49  ;;  %v1220_v50 = vadd.f32 %v1219_v24, %v1218_v22  ;;  %v1369_v36 = vrot.slane %v1368_v2, 1 }
 0x189   : > { %v3564_v61 = vrot.slane %v1400_v41, %v4254_v29  ;;  %v1245_v27 = vadd.f32 %v1244_v13, %v1243_v51  ;;  %v1270_v6 = vadd.f32 %v1269_v54, %v1268_v42  ;;  %v1295_v0 = vadd.f32 %v1294_v28, %v1293_v46  ;;  %v425_v29 = vld [vmem:[%s1952_s5 + $0x7f0] sm:$0xff] }
 0x18a   : > { %v1375_v40 = vadd.f32 %v1374_v12, %v4256_v39  ;;  %v1320_v18 = vadd.f32 %v1319_v63, %v1318_v9  ;;  %v1345_v33 = vadd.f32 %v1344_v4, %v1343_v14  ;;  %v1370_v35 = vadd.f32 %v1369_v36, %v1368_v2  ;;  %v4260_v9 = vld [vmem:[#allocation145_spill] sm:$0xff]  ;;  %v4263_v12 = vld [vmem:[#allocation184_spill] sm:$0xff] }
 0x18b   : > { %v3568_v23 = vadd.f32 %v3564_v61, %v995_v17  ;;  %v3572_v3 = vadd.f32 %v3564_v61, %v1020_v7  ;;  %v3575_v31 = vadd.f32 %v3564_v61, %v1045_v57  ;;  %v3578_v20 = vadd.f32 %v3564_v61, %v1070_v44  ;;  %v4264_v39 = vld [vmem:[#allocation196_spill] sm:$0xff] }
 0x18c   : > { %v3581_v15 = vadd.f32 %v3564_v61, %v1095_v5  ;;  %v1376_v21 = vadd.f32 %v1375_v40, %v4257_v62  ;;  %v3585_v30 = vadd.f32 %v3564_v61, %v1120_v32  ;;  %v3588_v11 = vadd.f32 %v3564_v61, %v1145_v55  ;;  %v408_v5 = vld [vmem:[%s1952_s5 + $0x768] sm:$0xff]  ;;  %v4261_v32 = vld [vmem:[#allocation161_spill] sm:$0xff] }
 0x18d   : > { %v3591_v60 = vadd.f32 %v3564_v61, %v1170_v37  ;;  %v1440_v16 = vmin.f32 %v3568_v23, 20.0  ;;  %v1441_v47 = vmin.f32 %v3572_v3, 20.0  ;;  %v1442_v49 = vmin.f32 %v3575_v31, 20.0  ;;  %v4262_v37 = vld [vmem:[#allocation178_spill] sm:$0xff] }
 0x18e   : > { %v1377_v1 = vadd.f32 %v1376_v21, %v4258_v34  ;;  %v1443_v22 = vmin.f32 %v3578_v20, 20.0  ;;  %v3599_v38 = vadd.f32 %v3564_v61, %v1195_v58  ;;  %v3602_v17 = vadd.f32 %v3564_v61, %v1220_v50 }
 0x18f   : > { %v3605_v43 = vadd.f32 %v3564_v61, %v1245_v27  ;;  %v1444_v25 = vmin.f32 %v3581_v15, 20.0  ;;  %v3610_v59 = vadd.f32 %v3564_v61, %v1270_v6  ;;  %v3613_v7 = vadd.f32 %v3564_v61, %v1295_v0  ;;  %v442_v0 = vld [vmem:[%s1952_s5 + $0x878] sm:$0xff] }
 0x190   : > { %v1378_v45 = vadd.f32 %v1377_v1, %v4259_v8  ;;  %v1445_v51 = vmin.f32 %v3585_v30, 20.0  ;;  %v3617_v42 = vadd.f32 %v3564_v61, %v1320_v18  ;;  %v1446_v46 = vmin.f32 %v3588_v11, 20.0  ;;  %v4265_v18 = vld [vmem:[#allocation201_spill] sm:$0xff]  ;;  %v459_v1 = vld [vmem:[%s1952_s5 + $0x900] sm:$0xff] }
 0x191   : > { %v1447_v41 = vmin.f32 %v3591_v60, 20.0  ;;  %v1457_v57 = vmul.f32 1.442695, %v1440_v16  ;;  %v1459_v52 = vmul.f32 1.442695, %v1441_v47  ;;  %v3623_v10 = vadd.f32 %v3564_v61, %v1345_v33 }
 0x192   : > { %v1379_v14 = vadd.f32 %v1378_v45, %v4260_v9  ;;  %v1461_v19 = vmul.f32 1.442695, %v1442_v49  ;;  %v1463_v44 = vmul.f32 1.442695, %v1443_v22  ;;  %v1448_v24 = vmin.f32 %v3599_v38, 20.0  ;;  %v4266_v49 = vld [vmem:[#allocation218_spill] sm:$0xff] }
 0x193   : > { %1773 = vpow2.f32 %v1457_v57  ;;  %v1465_v2 = vmul.f32 1.442695, %v1444_v25  ;;  %v1449_v53 = vmin.f32 %v3602_v17, 20.0  ;;  %v1467_v56 = vmul.f32 1.442695, %v1445_v51  ;;  %v476_v45 = vld [vmem:[%s1952_s5 + $0x988] sm:$0xff] }
 0x194   : > { %v1380_v55 = vadd.f32 %v1379_v14, %v4261_v32  ;;  %1775 = vpow2.f32 %v1459_v52  ;;  %v3630_v13 = vadd.f32 %v3564_v61, %v1370_v35  ;;  %v1450_v54 = vmin.f32 %v3605_v43, 20.0  ;;  %v493_v14 = vld [vmem:[%s1952_s5 + $0xa10] sm:$0xff] }
 0x195   : > { %1777 = vpow2.f32 %v1461_v19  ;;  %v1469_v28 = vmul.f32 1.442695, %v1446_v46  ;;  %v1451_v4 = vmin.f32 %v3610_v59, 20.0  ;;  %v1471_v26 = vmul.f32 1.442695, %v1447_v41  ;;  %v4267_v46 = vld [vmem:[#allocation233_spill] sm:$0xff] }
 0x196   : > { %v1381_v63 = vadd.f32 %v1380_v55, %v4262_v37  ;;  %1779 = vpow2.f32 %v1463_v44  ;;  %v868_v58 = vmul.f32 %v4263_v12, %v408_v5  ;;  %v1452_v50 = vmin.f32 %v3613_v7, 20.0  ;;  %v4268_v19 = vld [vmem:[#allocation246_spill] sm:$0xff] }
 0x197   : > { %1781 = vpow2.f32 %v1465_v2  ;;  %v1473_v36 = vmul.f32 1.442695, %v1448_v24  ;;  %v1453_v27 = vmin.f32 %v3617_v42, 20.0  ;;  %v1475_v6 = vmul.f32 1.442695, %v1449_v53  ;;  %v510_v5 = vld [vmem:[%s1952_s5 + $0xa98] sm:$0xff] }
 0x198   : > { %v1382_v40 = vadd.f32 %v1381_v63, %v4264_v39  ;;  %1783 = vpow2.f32 %v1467_v56  ;;  %v885_v33 = vmul.f32 %v4265_v18, %v425_v29  ;;  %v1454_v62 = vmin.f32 %v3623_v10, 20.0  ;;  %v4269_v53 = vld [vmem:[#allocation31_spill] sm:$0xff] }
 0x199   : > { %1785 = vpow2.f32 %v1469_v28  ;;  %v1477_v21 = vmul.f32 1.442695, %v1450_v54  ;;  %v1455_v16 = vmin.f32 %v3630_v13, 20.0  ;;  %v1479_v34 = vmul.f32 1.442695, %v1451_v4  ;;  %v4270_v4 = vld [vmem:[#allocation32_spill] sm:$0xff] }
 0x19a   : > { %v1383_v35 = vadd.f32 %v1382_v40, %v868_v58  ;;  %1787 = vpow2.f32 %v1471_v26  ;;  %v1481_v47 = vmul.f32 1.442695, %v1452_v50  ;;  %v902_v22 = vmul.f32 %v4266_v49, %v442_v0 }
 0x19b   : > { %1789 = vpow2.f32 %v1473_v36  ;;  %v1483_v8 = vmul.f32 1.442695, %v1453_v27  ;;  %v1485_v51 = vmul.f32 1.442695, %v1454_v62  ;;  %v919_v41 = vmul.f32 %v4267_v46, %v459_v1 }
 0x19c   : > { %v1384_v25 = vadd.f32 %v1383_v35, %v885_v33  ;;  %1791 = vpow2.f32 %v1475_v6  ;;  %v1487_v9 = vmul.f32 1.442695, %v1455_v16  ;;  %v936_v44 = vmul.f32 %v4268_v19, %v476_v45 }
 0x19d   : > { %1793 = vpow2.f32 %v1477_v21  ;;  %v953_v56 = vmul.f32 %v4269_v53, %v493_v14  ;;  %v970_v26 = vmul.f32 %v4270_v4, %v510_v5  ;;  %v1850_v40 = vmov 1966171168  }
 0x19e   : > { %v1385_v57 = vadd.f32 %v1384_v25, %v902_v22  ;;  %1795 = vpow2.f32 %v1479_v34  ;;  %v1581_v27 = vunpack.c.l.s4 %v1850_v40  ;;  %vm1423_vm0 = vcmp.gt.f32.partialorder %v3568_v23, 20.0 }
 0x19f   : > { %1797 = vpow2.f32 %v1481_v47  ;;  %vm1424_vm1 = vcmp.gt.f32.partialorder %v3572_v3, 20.0  ;;  %vm1425_vm2 = vcmp.gt.f32.partialorder %v3575_v31, 20.0  ;;  %vm1426_vm3 = vcmp.gt.f32.partialorder %v3578_v20, 20.0 }
 0x1a0   : > { %v1774_v52 = vpop.eup %1773  ;;  %v1386_v24 = vadd.f32 %v1385_v57, %v919_v41  ;;  %1799 = vpow2.f32 %v1483_v8  ;;  %v1582_v47 = vunpack.c.0.s8 %v1581_v27  ;;  %vm1427_vm4 = vcmp.gt.f32.partialorder %v3581_v15, 20.0 }
 0x1a1   : > { %v1776_v2 = vpop.eup %1775  ;;  %1801 = vpow2.f32 %v1485_v51  ;;  %v1491_v32 = vadd.f32 1.0, %v1774_v52  ;;  %vm1428_vm5 = vcmp.gt.f32.partialorder %v3585_v30, 20.0  ;;  %vm1429_vm6 = vcmp.gt.f32.partialorder %v3588_v11, 20.0 }
 0x1a2   : > { %v1778_v55 = vpop.eup %1777  ;;  %v1387_v54 = vadd.f32 %v1386_v24, %v936_v44  ;;  %1803 = vpow2.f32 %v1487_v9  ;;  %v1492_v28 = vadd.f32 1.0, %v1776_v2  ;;  %v3654_v14 = vsub.s32 %v1582_v47, %v4253_v48 }
 0x1a3   : > { %v1780_v29 = vpop.eup %1779  ;;  %v1493_v37 = vadd.f32 1.0, %v1778_v55  ;;  %1805 = vlog2.f32 %v1491_v32  ;;  %vm1430_vm7 = vcmp.gt.f32.partialorder %v3591_v60, 20.0  ;;  %vm1431_vm8 = vcmp.gt.f32.partialorder %v3599_v38, 20.0 }
 0x1a4   : > { %v1782_v63 = vpop.eup %1781  ;;  %v1388_v12 = vadd.f32 %v1387_v54, %v953_v56  ;;  %v1494_v58 = vadd.f32 1.0, %v1780_v29  ;;  %1807 = vlog2.f32 %v1492_v28  ;;  %vm1432_vm9 = vcmp.gt.f32.partialorder %v3602_v17, 20.0 }
 0x1a5   : > { %v1784_v50 = vpop.eup %1783  ;;  %v1495_v36 = vadd.f32 1.0, %v1782_v63  ;;  %1809 = vlog2.f32 %v1493_v37  ;;  %vm1433_vm10 = vcmp.gt.f32.partialorder %v3605_v43, 20.0  ;;  %vm1434_vm11 = vcmp.gt.f32.partialorder %v3610_v59, 20.0 }
 0x1a6   : > { %v1786_v39 = vpop.eup %1785  ;;  %v1389_v6 = vadd.f32 %v1388_v12, %v970_v26  ;;  %v1496_v0 = vadd.f32 1.0, %v1784_v50  ;;  %1811 = vlog2.f32 %v1494_v58  ;;  %vm1435_vm12 = vcmp.gt.f32.partialorder %v3613_v7, 20.0 }
 0x1a7   : > { %v1788_v18 = vpop.eup %1787  ;;  %v1497_v33 = vadd.f32 1.0, %v1786_v39  ;;  %1813 = vlog2.f32 %v1495_v36  ;;  %vm1436_vm13 = vcmp.gt.f32.partialorder %v3617_v42, 20.0  ;;  %vm1437_vm14 = vcmp.gt.f32.partialorder %v3623_v10, 20.0 }
 0x1a8   : > { %v1790_v62 = vpop.eup %1789  ;;  %v1390_v21 = vrot.slane %v1389_v6, 4  ;;  %v1498_v35 = vadd.f32 1.0, %v1788_v18  ;;  %1815 = vlog2.f32 %v1496_v0  ;;  %vm1438_vm15 = vcmp.gt.f32.partialorder %v3630_v13, 20.0 }
 0x1a9   : > { %v1792_v16 = vpop.eup %1791  ;;  %v1499_v34 = vadd.f32 1.0, %v1790_v62  ;;  %1817 = vlog2.f32 %v1497_v33 }
 0x1aa   : > { %v1794_v1 = vpop.eup %1793  ;;  %v1391_v49 = vadd.f32 %v1390_v21, %v1389_v6  ;;  %v1500_v22 = vadd.f32 1.0, %v1792_v16  ;;  %1819 = vlog2.f32 %v1498_v35 }
 0x1ab   : > { %v1796_v25 = vpop.eup %1795  ;;  %v1501_v8 = vadd.f32 1.0, %v1794_v1  ;;  %1821 = vlog2.f32 %v1499_v34 }
 0x1ac   : > { %v1798_v45 = vpop.eup %1797  ;;  %v1392_v51 = vrot.slane %v1391_v49, 2  ;;  %v1502_v46 = vadd.f32 1.0, %v1796_v25  ;;  %1823 = vlog2.f32 %v1500_v22 }
 0x1ad   : > { %v1800_v41 = vpop.eup %1799  ;;  %v1503_v57 = vadd.f32 1.0, %v1798_v45  ;;  %1825 = vlog2.f32 %v1501_v8 }
 0x1ae   : > { %v1802_v9 = vpop.eup %1801  ;;  %v1393_v52 = vadd.f32 %v1392_v51, %v1391_v49  ;;  %v1504_v19 = vadd.f32 1.0, %v1800_v41  ;;  %1827 = vlog2.f32 %v1502_v46 }
 0x1af   : > { %v1804_v44 = vpop.eup %1803  ;;  %v1505_v24 = vadd.f32 1.0, %v1802_v9  ;;  %1829 = vlog2.f32 %v1503_v57 }
 0x1b0   : > { %v1806_v2 = vpop.eup %1805  ;;  %v1394_v5 = vrot.slane %v1393_v52, 1  ;;  %v1506_v32 = vadd.f32 1.0, %v1804_v44  ;;  %1831 = vlog2.f32 %v1504_v19 }
 0x1b1   : > { %v1808_v55 = vpop.eup %1807  ;;  %v1509_v48 = vmul.f32 0.6931472, %v1806_v2  ;;  %1833 = vlog2.f32 %v1505_v24 }
 0x1b2   : > { %v1810_v53 = vpop.eup %1809  ;;  %v1395_v56 = vadd.f32 %v1394_v5, %v1393_v52  ;;  %v1511_v54 = vmul.f32 0.6931472, %v1808_v55  ;;  %1835 = vlog2.f32 %v1506_v32 }
 0x1b3   : > { %v1812_v28 = vpop.eup %1811  ;;  %v1513_v29 = vmul.f32 0.6931472, %v1810_v53  ;;  %v1542_v37 = vsel %vm1423_vm0, %v3568_v23, %v1509_v48 }
 0x1b4   : > { %v1814_v63 = vpop.eup %1813  ;;  %v3668_v4 = vadd.f32 %v3564_v61, %v1395_v56  ;;  %v1515_v26 = vmul.f32 0.6931472, %v1812_v28  ;;  %v1543_v12 = vsel %vm1424_vm1, %v3572_v3, %v1511_v54 }
 0x1b5   : > { %v1816_v58 = vpop.eup %1815  ;;  %v1517_v50 = vmul.f32 0.6931472, %v1814_v63  ;;  %v1544_v36 = vsel %vm1425_vm2, %v3575_v31, %v1513_v29  ;;  %v1576_v23 = vcombine.low %v1542_v37, %v1543_v12 }
 0x1b6   : > { %v1818_v39 = vpop.eup %1817  ;;  %v1456_v61 = vmin.f32 %v3668_v4, 20.0  ;;  %v1519_v40 = vmul.f32 0.6931472, %v1816_v58  ;;  %v1545_v27 = vsel %vm1426_vm3, %v3578_v20, %v1515_v26  ;;  %vm1439_vm0 = vcmp.gt.f32.partialorder %v3668_v4, 20.0 }
 0x1b7   : > { %v1820_v3 = vpop.eup %1819  ;;  %v1521_v6 = vmul.f32 0.6931472, %v1818_v39  ;;  %v1546_v0 = vsel %vm1427_vm4, %v3581_v15, %v1517_v50  ;;  %v1577_v31 = vcombine.low %v1544_v36, %v1545_v27  ;;  %v1586_v35 = vrot.slane %v1576_v23, %v3654_v14 }
 0x1b8   : > { %v1822_v18 = vpop.eup %1821  ;;  %v1489_v33 = vmul.f32 1.442695, %v1456_v61  ;;  %v1523_v62 = vmul.f32 0.6931472, %v1820_v3  ;;  %v1547_v21 = vsel %vm1428_vm5, %v3585_v30, %v1519_v40 }
 0x1b9   : > { %v1824_v16 = vpop.eup %1823  ;;  %v1525_v20 = vmul.f32 0.6931472, %v1822_v18  ;;  %v1548_v34 = vsel %vm1429_vm6, %v3588_v11, %v1521_v6  ;;  %v1578_v1 = vcombine.low %v1546_v0, %v1547_v21  ;;  %v1593_v47 = vrot.slane %v1577_v31, %v3654_v14 }
 0x1ba   : > { %v1826_v15 = vpop.eup %1825  ;;  %1837 = vpow2.f32 %v1489_v33  ;;  %v1527_v49 = vmul.f32 0.6931472, %v1824_v16  ;;  %v1549_v30 = vsel %vm1430_vm7, %v3591_v60, %v1523_v62  ;;  %v4271_v6 = vlaneseq }
 0x1bb   : > { %v1828_v22 = vpop.eup %1827  ;;  %v1529_v25 = vmul.f32 0.6931472, %v1826_v15  ;;  %v1550_v8 = vsel %vm1431_vm8, %v3599_v38, %v1525_v20  ;;  %v1579_v45 = vcombine.low %v1548_v34, %v1549_v30  ;;  %v1600_v11 = vrot.slane %v1578_v1, %v3654_v14 }
 0x1bc   : > { %v1830_v51 = vpop.eup %1829  ;;  %v1531_v46 = vmul.f32 0.6931472, %v1828_v22  ;;  %v1551_v41 = vsel %vm1432_vm9, %v3602_v17, %v1527_v49  ;;  %v1608_v57 = vcombine.low %v1586_v35, %v1593_v47  ;;  %vm1695_vm1 = vcmp.lt.s32.totalorder %v4271_v6, 128 }
 0x1bd   : > { %v1832_v60 = vpop.eup %1831  ;;  %v1533_v9 = vmul.f32 0.6931472, %v1830_v51  ;;  %v1552_v52 = vsel %vm1433_vm10, %v3605_v43, %v1529_v25  ;;  %v1607_v38 = vrot.slane %v1579_v45, %v3654_v14  ;;  %v1625_v19 = vcombine.low %v1550_v8, %v1551_v41 }
 0x1be   : > { %v1834_v44 = vpop.eup %1833  ;;  %v1535_v24 = vmul.f32 0.6931472, %v1832_v60  ;;  %v1553_v2 = vsel %vm1434_vm11, %v3610_v59, %v1531_v46  ;;  %v1616_v17 = vrot.slane %v1608_v57, %v3654_v14 }
 0x1bf   : > { %v1836_v5 = vpop.eup %1835  ;;  %v1537_v32 = vmul.f32 0.6931472, %v1834_v44  ;;  %v1554_v55 = vsel %vm1435_vm12, %v3613_v7, %v1533_v9  ;;  %v1609_v43 = vcombine.low %v1600_v11, %v1607_v38  ;;  %v1626_v48 = vcombine.low %v1552_v52, %v1553_v2 }
 0x1c0   : > { %v1539_v53 = vmul.f32 0.6931472, %v1836_v5  ;;  %v1555_v56 = vsel %vm1436_vm13, %v3617_v42, %v1535_v24  ;;  %v1635_v59 = vrot.slane %v1625_v19, %v3654_v14 }
 0x1c1   : > { %v1556_v54 = vsel %vm1437_vm14, %v3623_v10, %v1537_v32  ;;  %v1623_v28 = vrot.slane %v1609_v43, %v3654_v14  ;;  %v1627_v29 = vcombine.low %v1554_v55, %v1555_v56  ;;  %v1642_v37 = vrot.slane %v1626_v48, %v3654_v14 }
 0x1c2   : > { %v1557_v7 = vsel %vm1438_vm15, %v3630_v13, %v1539_v53 }
 0x1c3   : > { %v1624_v63 = vcombine.low %v1616_v17, %v1623_v28  ;;  %v1628_v26 = vcombine.low %v1556_v54, %v1557_v7  ;;  %v1649_v12 = vrot.slane %v1627_v29, %v3654_v14  ;;  %v1657_v58 = vcombine.low %v1635_v59, %v1642_v37 }
 0x1c5   : > { %v1656_v42 = vrot.slane %v1628_v26, %v3654_v14  ;;  %1691 = vst [vmem:[%s170_s8] sm:$0xff] %v1624_v63  ;;  %v1665_v36 = vrot.slane %v1657_v58, %v3654_v14 }
 0x1c7   : > { %v1838_v10 = vpop.eup %1837  ;;  %v1658_v50 = vcombine.low %v1649_v12, %v1656_v42 }
 0x1c8   : > { %v1507_v23 = vadd.f32 1.0, %v1838_v10 }
 0x1c9   : > { %v1672_v39 = vrot.slane %v1658_v50, %v3654_v14 }
 0x1ca   : > { %1839 = vlog2.f32 %v1507_v23 }
 0x1cb   : > { %v1673_v13 = vcombine.low %v1665_v36, %v1672_v39 }
 0x1cd   : > { %1692 = vst [vmem:[%s170_s8 + $0x8] sm:$0xff] %v1673_v13 }
 0x1d7   : > { %v1840_v61 = vpop.eup %1839 }
 0x1d8   : > { %v1541_v40 = vmul.f32 0.6931472, %v1840_v61 }
 0x1da   : > { %v1558_v27 = vsel %vm1439_vm0, %v3668_v4, %v1541_v40 }
 0x1db   : > { %v1680_v3 = vrot.slane %v1558_v27, %v3654_v14 }
 0x1dd   : > { %v1687_v0 = vrot.slane %v1680_v3, %v3654_v14 }
 0x1df   : > { %1697 = vst.msk [vmem:[%s170_s8 + $0x10] sm:$0x1] %vm1695_vm1, %v1687_v0 }
 0x1e0 PF: > { %s15_s14 = sadd.s32 1, %s1847_s14  }
 0x1e1   : > { %p12_p4 = scmp.ge.s32.totalorder %s15_s14, 4  }
 0x1e3   :  { %14 = sbr.rel (!%p12_p4) target bundleno = 3 (0x3), region = 62 }

</bundles_post_ra>
